<compile_context>
chip_gen: v5e
topology: v5e:2x2
jax: 0.10.0
libtpu: 0.0.40
codegen_flags: <defaults>
</compile_context>

<pallas_src>
import functools

import jax
import jax.numpy as jnp
import numpy as np
from jax.experimental import pallas as pl
from jax.experimental.pallas import tpu as pltpu

NUM_GROUPS = 8
GN_EPS = 1e-5


def _silu(v):
    return v * jax.nn.sigmoid(v)


# ----------------------------------------------------------------------------
# Pallas kernel: one (batch block, layer) grid step.
# ----------------------------------------------------------------------------
def midcoder_kernel(x_ref, add_ref, const_ref, seg_ref, pv_ref,
                    w1_ref, w2_ref, m_ref, o_ref, patch_ref, *, H, W, BT):
    C = x_ref.shape[1]
    HW = H * W
    BHW = BT * HW
    layer = pl.program_id(1)

    # Layer 0: seed the VMEM-resident output block with the input activation;
    # later layers read the previous layer's result straight back from o_ref.
    @pl.when(layer == 0)
    def _():
        o_ref[...] = x_ref[...]

    res = o_ref[0]                               # (C, BHW) layer input / residual

    pv = pv_ref[0]                               # (C, 8) packed per-layer vectors
    b1, g1, be1 = pv[:, 0:1], pv[:, 1:2], pv[:, 2:3]
    b2, g2, be2 = pv[:, 3:4], pv[:, 4:5], pv[:, 5:6]

    segT = const_ref[9:9 + BT, :]                # (BT, BHW) image-membership rows
    seg = seg_ref[...]                           # (BHW, BT)
    m = m_ref[...]                               # (C, C) group membership
    inv_cnt = jnp.float32(1.0 / (HW * (C // NUM_GROUPS)))

    def conv3x3(h, w, bias):
        # h: (C, BHW) f32; w: (C, 9C) bf16 (tap-major, channel-minor);
        # bias: (C, 1) f32.  im2col via 9 masked lane-rolls staged into the
        # persistent bf16 scratch patch, then one MXU matmul with K = 9C.
        idx = 0
        for dh in range(3):
            for dw in range(3):
                off = (dh - 1) * W + (dw - 1)
                if off == 0:
                    tap = h
                else:
                    tap = pltpu.roll(h, shift=(-off) % BHW, axis=1)
                    tap = tap * const_ref[idx:idx + 1, :]   # precomputed border mask
                patch_ref[idx * C:(idx + 1) * C, :] = tap.astype(jnp.bfloat16)
                idx += 1
        return jnp.dot(w, patch_ref[...],
                       preferred_element_type=jnp.float32) + bias

    def group_norm_silu(h, gamma, beta, extra=None):
        # h: (C, BHW).  Per-image GroupNorm stats (strictly f32), affine folded
        # into a single scale/shift, broadcast back to lanes with one small
        # matmul against the image-segment rows.  Optional `extra` (C, BT) is a
        # per-image channel bias added after SiLU (time/class adapters).
        hh = jnp.concatenate([h, h * h], axis=0)                          # (2C, BHW)
        per_img = jnp.dot(hh, seg, preferred_element_type=jnp.float32)   # (2C, BT)
        grouped = jnp.dot(
            m, jnp.concatenate([per_img[:C], per_img[C:]], axis=1),
            preferred_element_type=jnp.float32) * inv_cnt                # (C, 2BT)
        mean = grouped[:, :BT]
        var = grouped[:, BT:] - mean * mean
        scale = jax.lax.rsqrt(var + GN_EPS) * gamma                      # (C, BT)
        shift = beta - mean * scale
        rows = [scale, shift] if extra is None else [scale, shift, extra]
        bc = jnp.dot(jnp.concatenate(rows, axis=0), segT,
                     preferred_element_type=jnp.float32)                 # (kC, BHW)
        hn = h * bc[:C] + bc[C:2 * C]
        hn = hn * jax.nn.sigmoid(hn)                                     # SiLU
        if extra is not None:
            hn = hn + bc[2 * C:]
        return hn

    # block1: conv -> GN -> SiLU, then the precomputed time+class embedding add
    h = conv3x3(res, w1_ref[0], b1)
    h = group_norm_silu(h, g1, be1, extra=add_ref[0, 0])
    # block2: conv -> GN -> SiLU, then the residual connection
    h = conv3x3(h, w2_ref[0], b2)
    h = group_norm_silu(h, g2, be2)
    o_ref[0] = h + res


# ----------------------------------------------------------------------------
# Wrapper helpers
# ----------------------------------------------------------------------------
def _group_membership(C):
    cg = C // NUM_GROUPS
    gid = np.arange(C) // cg
    return jnp.asarray((gid[:, None] == gid[None, :]).astype(np.float32))


def _border_masks_and_segments(H, W, BT):
    # Rows 0..8: zero-padding masks per 3x3 tap, tiled per image (period HW).
    # Rows 9..9+BT-1: image-membership indicator rows (segT).
    HW = H * W
    h_idx = np.arange(HW) // W
    w_idx = np.arange(HW) % W
    rows = []
    for dh in range(3):
        for dw in range(3):
            oh, ow = dh - 1, dw - 1
            ok = ((h_idx + oh >= 0) & (h_idx + oh < H) &
                  (w_idx + ow >= 0) & (w_idx + ow < W))
            rows.append(ok.astype(np.float32))
    mask9 = np.tile(np.stack(rows), (1, BT))                          # (9, BT*HW)
    segT = np.repeat(np.eye(BT, dtype=np.float32), HW, axis=1)        # (BT, BT*HW)
    const_rows = np.concatenate([mask9, segT], axis=0)                # (9+BT, BT*HW)
    return jnp.asarray(const_rows), jnp.asarray(segT.T)               # +(BT*HW, BT)


def _conv_w_to_mat(w_hwio):
    # (3, 3, Cin, Cout) HWIO -> (Cout, 9*Cin) bf16, tap-major / channel-minor.
    _, _, cin, cout = w_hwio.shape
    return (jnp.transpose(w_hwio, (3, 0, 1, 2))
            .reshape(cout, 9 * cin).astype(jnp.bfloat16))


def _pack_layer_vectors(p, C):
    cols = [p["b1"], p["g1"], p["be1"], p["b2"], p["g2"], p["be2"]]
    v = jnp.stack([c.reshape(C) for c in cols], axis=1)               # (C, 6)
    return jnp.pad(v, ((0, 0), (0, 2))).astype(jnp.float32)           # (C, 8)


def _pick_bt(bs, HW, max_lanes=2048, max_bt=8):
    bt = 1
    for cand in range(1, min(bs, max_bt) + 1):
        if bs % cand == 0 and cand * HW <= max_lanes:
            bt = cand
    return bt


# ----------------------------------------------------------------------------
# Forward wrapper
# ----------------------------------------------------------------------------
@jax.jit
def midcoder_forward(x_nchw, t_embed, y_embed, params):
    bs, C, H, W = x_nchw.shape
    HW = H * W
    L = len(params)
    BT = _pick_bt(bs, HW)
    nb = bs // BT
    BHW = BT * HW

    # Lane layout: pack BT images side-by-side along lanes -> (nb, C, BT*HW).
    x = (x_nchw.astype(jnp.float32).reshape(nb, BT, C, HW)
         .transpose(0, 2, 1, 3).reshape(nb, C, BHW))

    # Stacked per-layer parameters (weights in bf16; small vectors packed).
    W1 = jnp.stack([_conv_w_to_mat(p["w1"]) for p in params])         # (L, C, 9C)
    W2 = jnp.stack([_conv_w_to_mat(p["w2"]) for p in params])
    PV = jnp.stack([_pack_layer_vectors(p, C) for p in params])       # (L, C, 8)

    # Precompute (SiLU -> Linear) adapters outside the kernel; fused per
    # (layer, image, channel) bias, broadcast over space inside the kernel.
    adds = jnp.stack([
        _silu(t_embed) @ p["wt"] + p["bt"] + _silu(y_embed) @ p["wy"] + p["by"]
        for p in params]).astype(jnp.float32)                          # (L, bs, C)
    adds = adds.reshape(L, nb, BT, C).transpose(0, 1, 3, 2)            # (L, nb, C, BT)

    const_rows, seg = _border_masks_and_segments(H, W, BT)
    m_mat = _group_membership(C)

    per_layer = lambda b, l: (l, 0, 0)
    const_map = lambda b, l: (0, 0)

    out = pl.pallas_call(
        functools.partial(midcoder_kernel, H=H, W=W, BT=BT),
        out_shape=jax.ShapeDtypeStruct((nb, C, BHW), jnp.float32),
        grid=(nb, L),
        in_specs=[
            pl.BlockSpec((1, C, BHW), lambda b, l: (b, 0, 0)),         # x
            pl.BlockSpec((1, 1, C, BT), lambda b, l: (l, b, 0, 0)),    # adapter adds
            pl.BlockSpec((9 + BT, BHW), const_map),                    # masks + segT
            pl.BlockSpec((BHW, BT), const_map),                        # seg columns
            pl.BlockSpec((1, C, 8), per_layer),                        # packed vectors
            pl.BlockSpec((1, C, 9 * C), per_layer),                    # conv1 W (bf16)
            pl.BlockSpec((1, C, 9 * C), per_layer),                    # conv2 W (bf16)
            pl.BlockSpec((C, C), const_map),                           # group membership
        ],
        out_specs=pl.BlockSpec((1, C, BHW), lambda b, l: (b, 0, 0)),
        scratch_shapes=[pltpu.VMEM((9 * C, BHW), jnp.bfloat16)],       # im2col patch
        input_output_aliases={0: 0},
        compiler_params=pltpu.CompilerParams(
            dimension_semantics=("parallel", "arbitrary"),
            vmem_limit_bytes=64 * 1024 * 1024),
    )(x, adds, const_rows, seg, PV, W1, W2, m_mat)

    return (out.reshape(nb, C, BT, HW).transpose(0, 2, 1, 3)
            .reshape(bs, C, H, W))


# ----------------------------------------------------------------------------
# Pure-JAX reference (mirrors the PyTorch module semantics, full f32)
# ----------------------------------------------------------------------------
def _ref_residual_layer(x, t, y, p):
    def conv(h, w, b):
        out = jax.lax.conv_general_dilated(
            h, w, window_strides=(1, 1), padding=((1, 1), (1, 1)),
            dimension_numbers=("NHWC", "HWIO", "NHWC"))
        return out + b.reshape(1, 1, 1, -1)

    def gn(h, gamma, beta):
        bs, H, W, C = h.shape
        cg = C // NUM_GROUPS
        hg = h.reshape(bs, H, W, NUM_GROUPS, cg)
        mean = jnp.mean(hg, axis=(1, 2, 4), keepdims=True)
        var = jnp.mean((hg - mean) ** 2, axis=(1, 2, 4), keepdims=True)
        hn = ((hg - mean) / jnp.sqrt(var + GN_EPS)).reshape(bs, H, W, C)
        return hn * gamma.reshape(1, 1, 1, -1) + beta.reshape(1, 1, 1, -1)

    res = x
    h = _silu(gn(conv(x, p["w1"], p["b1"]), p["g1"], p["be1"]))
    t_add = _silu(t) @ p["wt"] + p["bt"]
    y_add = _silu(y) @ p["wy"] + p["by"]
    h = h + t_add[:, None, None, :] + y_add[:, None, None, :]
    h = _silu(gn(conv(h, p["w2"], p["b2"]), p["g2"], p["be2"]))
    return h + res


def midcoder_ref(x_nchw, t_embed, y_embed, params):
    x = jnp.transpose(x_nchw, (0, 2, 3, 1)).astype(jnp.float32)
    for p in params:
        x = _ref_residual_layer(x, t_embed, y_embed, p)
    return jnp.transpose(x, (0, 3, 1, 2))


# ----------------------------------------------------------------------------
# Deterministic parameter init (shapes follow the nn.Module __init__)
# ----------------------------------------------------------------------------
def init_params(key, num_layers, C, T, Y):
    params = []
    for _ in range(num_layers):
        key, *ks = jax.random.split(key, 12)
        n = lambda k, s, scale=0.1: scale * jax.random.normal(k, s, jnp.float32)
        params.append({
            "w1": n(ks[0], (3, 3, C, C)),     # HWIO
            "b1": n(ks[1], (1, C)),
            "g1": 1.0 + n(ks[2], (1, C)),
            "be1": n(ks[3], (1, C)),
            "w2": n(ks[4], (3, 3, C, C)),
            "b2": n(ks[5], (1, C)),
            "g2": 1.0 + n(ks[6], (1, C)),
            "be2": n(ks[7], (1, C)),
            "wt": n(ks[8], (T, C)),           # time_adapter Linear, (in, out)
            "bt": n(ks[9], (1, C)),
            "wy": n(ks[10], (Y, C)),          # y_adapter Linear, (in, out)
            "by": jnp.zeros((1, C), jnp.float32),
        })
    return params


if __name__ == "__main__":
    bs, C, H, W = 2, 16, 16, 16
    T, Y = 32, 32
    num_layers = 2

    key = jax.random.PRNGKey(0)
    kx, kt, ky, kp = jax.random.split(key, 4)
    x = jax.random.normal(kx, (bs, C, H, W), jnp.float32)   # NCHW, like PyTorch
    t_embed = jax.random.normal(kt, (bs, T), jnp.float32)
    y_embed = jax.random.normal(ky, (bs, Y), jnp.float32)
    params = init_params(kp, num_layers, C, T, Y)

    out = jax.block_until_ready(midcoder_forward(x, t_embed, y_embed, params))
    ref = jax.block_until_ready(midcoder_ref(x, t_embed, y_embed, params))
    # bf16 MXU operands (f32 accumulation) vs. the all-f32 reference.
    np.testing.assert_allclose(np.asarray(out), np.asarray(ref),
                               rtol=2e-2, atol=2e-2)
    print("KERNEL_OK")
</pallas_src>

<mosaic_0001>
module attributes {stable_mosaic.version = 11 : i64} {
  func.func @midcoder_kernel(%arg0: i32, %arg1: i32, %arg2: memref<1x16x512xf32, #tpu.memory_space<vmem>>, %arg3: memref<1x1x16x2xf32, #tpu.memory_space<vmem>>, %arg4: memref<11x512xf32, #tpu.memory_space<vmem>>, %arg5: memref<512x2xf32, #tpu.memory_space<vmem>>, %arg6: memref<1x16x8xf32, #tpu.memory_space<vmem>>, %arg7: memref<1x16x144xbf16, #tpu.memory_space<vmem>>, %arg8: memref<1x16x144xbf16, #tpu.memory_space<vmem>>, %arg9: memref<16x16xf32, #tpu.memory_space<vmem>>, %arg10: memref<1x16x512xf32, #tpu.memory_space<vmem>>, %arg11: memref<144x512xbf16, #tpu.memory_space<vmem>>) attributes {dimension_semantics = [#tpu.dimension_semantics<parallel>, #tpu.dimension_semantics<arbitrary>], iteration_bounds = array<i64: 1, 2>, scalar_prefetch = 0 : i64, scratch_operands = 1 : i64, tpu.core_type = #tpu.core_type<tc>, window_params = [{transform_indices = @transform_0, window_bounds = array<i64: 1, 16, 512>}, {transform_indices = @transform_1, window_bounds = array<i64: 1, 1, 16, 2>}, {pipeline_mode = #tpu.pipeline_mode<synchronous>, transform_indices = @transform_2, window_bounds = array<i64: 11, 512>}, {pipeline_mode = #tpu.pipeline_mode<synchronous>, transform_indices = @transform_3, window_bounds = array<i64: 512, 2>}, {transform_indices = @transform_4, window_bounds = array<i64: 1, 16, 8>}, {transform_indices = @transform_5, window_bounds = array<i64: 1, 16, 144>}, {transform_indices = @transform_6, window_bounds = array<i64: 1, 16, 144>}, {pipeline_mode = #tpu.pipeline_mode<synchronous>, transform_indices = @transform_7, window_bounds = array<i64: 16, 16>}, {transform_indices = @transform_8, window_bounds = array<i64: 1, 16, 512>}]} {
    %c0_i32 = arith.constant 0 : i32
    %0 = arith.cmpi eq, %arg1, %c0_i32 : i32
    %1 = arith.extui %0 : i1 to i32
    %c0_i32_0 = arith.constant 0 : i32
    %2 = arith.cmpi ne, %1, %c0_i32_0 : i32
    scf.if %2 {
      %c0_102 = arith.constant 0 : index
      %c0_103 = arith.constant 0 : index
      %c0_104 = arith.constant 0 : index
      %202 = vector.load %arg2[%c0_102, %c0_103, %c0_104] : memref<1x16x512xf32, #tpu.memory_space<vmem>>, vector<1x16x512xf32>
      %c0_105 = arith.constant 0 : index
      %c0_106 = arith.constant 0 : index
      %c0_107 = arith.constant 0 : index
      %203 = vector.load %arg10[%c0_105, %c0_106, %c0_107] : memref<1x16x512xf32, #tpu.memory_space<vmem>>, vector<1x16x512xf32>
      tpu.vector_store %arg10[%c0_105, %c0_106, %c0_107], %202 {strides = array<i32>} : memref<1x16x512xf32, #tpu.memory_space<vmem>>, vector<1x16x512xf32>,
    } else {
    }
    %c0 = arith.constant 0 : index
    %c0_1 = arith.constant 0 : index
    %c0_2 = arith.constant 0 : index
    %3 = vector.load %arg10[%c0, %c0_1, %c0_2] : memref<1x16x512xf32, #tpu.memory_space<vmem>>, vector<1x16x512xf32>
    %4 = vector.shape_cast %3 : vector<1x16x512xf32> to vector<16x512xf32>
    %c0_3 = arith.constant 0 : index
    %c0_4 = arith.constant 0 : index
    %c0_5 = arith.constant 0 : index
    %5 = vector.load %arg6[%c0_3, %c0_4, %c0_5] : memref<1x16x8xf32, #tpu.memory_space<vmem>>, vector<1x16x8xf32>
    %6 = vector.shape_cast %5 : vector<1x16x8xf32> to vector<16x8xf32>
    %7 = vector.extract_strided_slice %6 {offsets = [0, 0], sizes = [16, 1], strides = [1, 1]} : vector<16x8xf32> to vector<16x1xf32>
    %8 = vector.extract_strided_slice %6 {offsets = [0, 1], sizes = [16, 1], strides = [1, 1]} : vector<16x8xf32> to vector<16x1xf32>
    %9 = vector.extract_strided_slice %6 {offsets = [0, 2], sizes = [16, 1], strides = [1, 1]} : vector<16x8xf32> to vector<16x1xf32>
    %10 = vector.extract_strided_slice %6 {offsets = [0, 3], sizes = [16, 1], strides = [1, 1]} : vector<16x8xf32> to vector<16x1xf32>
    %11 = vector.extract_strided_slice %6 {offsets = [0, 4], sizes = [16, 1], strides = [1, 1]} : vector<16x8xf32> to vector<16x1xf32>
    %12 = vector.extract_strided_slice %6 {offsets = [0, 5], sizes = [16, 1], strides = [1, 1]} : vector<16x8xf32> to vector<16x1xf32>
    %c9 = arith.constant 9 : index
    %c0_6 = arith.constant 0 : index
    %13 = vector.load %arg4[%c9, %c0_6] : memref<11x512xf32, #tpu.memory_space<vmem>>, vector<2x512xf32>
    %c0_7 = arith.constant 0 : index
    %c0_8 = arith.constant 0 : index
    %14 = vector.load %arg5[%c0_7, %c0_8] : memref<512x2xf32, #tpu.memory_space<vmem>>, vector<512x2xf32>
    %c0_9 = arith.constant 0 : index
    %c0_10 = arith.constant 0 : index
    %15 = vector.load %arg9[%c0_9, %c0_10] : memref<16x16xf32, #tpu.memory_space<vmem>>, vector<16x16xf32>
    %c0_11 = arith.constant 0 : index
    %c0_12 = arith.constant 0 : index
    %c0_13 = arith.constant 0 : index
    %16 = vector.load %arg7[%c0_11, %c0_12, %c0_13] : memref<1x16x144xbf16, #tpu.memory_space<vmem>>, vector<1x16x144xbf16>
    %17 = vector.shape_cast %16 : vector<1x16x144xbf16> to vector<16x144xbf16>
    %c17_i32 = arith.constant 17 : i32
    %18 = tpu.dynamic_rotate %4 by %c17_i32 dim 1 : vector<16x512xf32>, i32 -> vector<16x512xf32>
    %c0_14 = arith.constant 0 : index
    %c0_15 = arith.constant 0 : index
    %19 = vector.load %arg4[%c0_14, %c0_15] : memref<11x512xf32, #tpu.memory_space<vmem>>, vector<1x512xf32>
    %20 = vector.broadcast %19 : vector<1x512xf32> to vector<16x512xf32>
    %21 = arith.mulf %18, %20 : vector<16x512xf32>
    %22 = arith.truncf %21 : vector<16x512xf32> to vector<16x512xbf16>
    %c0_16 = arith.constant 0 : index
    %c0_17 = arith.constant 0 : index
    %23 = vector.load %arg11[%c0_16, %c0_17] : memref<144x512xbf16, #tpu.memory_space<vmem>>, vector<16x512xbf16>
    tpu.vector_store %arg11[%c0_16, %c0_17], %22 {strides = array<i32>} : memref<144x512xbf16, #tpu.memory_space<vmem>>, vector<16x512xbf16>,
    %c16_i32 = arith.constant 16 : i32
    %24 = tpu.dynamic_rotate %4 by %c16_i32 dim 1 : vector<16x512xf32>, i32 -> vector<16x512xf32>
    %c1 = arith.constant 1 : index
    %c0_18 = arith.constant 0 : index
    %25 = vector.load %arg4[%c1, %c0_18] : memref<11x512xf32, #tpu.memory_space<vmem>>, vector<1x512xf32>
    %26 = vector.broadcast %25 : vector<1x512xf32> to vector<16x512xf32>
    %27 = arith.mulf %24, %26 : vector<16x512xf32>
    %28 = arith.truncf %27 : vector<16x512xf32> to vector<16x512xbf16>
    %c16 = arith.constant 16 : index
    %c0_19 = arith.constant 0 : index
    %29 = vector.load %arg11[%c16, %c0_19] : memref<144x512xbf16, #tpu.memory_space<vmem>>, vector<16x512xbf16>
    tpu.vector_store %arg11[%c16, %c0_19], %28 {strides = array<i32>} : memref<144x512xbf16, #tpu.memory_space<vmem>>, vector<16x512xbf16>,
    %c15_i32 = arith.constant 15 : i32
    %30 = tpu.dynamic_rotate %4 by %c15_i32 dim 1 : vector<16x512xf32>, i32 -> vector<16x512xf32>
    %c2 = arith.constant 2 : index
    %c0_20 = arith.constant 0 : index
    %31 = vector.load %arg4[%c2, %c0_20] : memref<11x512xf32, #tpu.memory_space<vmem>>, vector<1x512xf32>
    %32 = vector.broadcast %31 : vector<1x512xf32> to vector<16x512xf32>
    %33 = arith.mulf %30, %32 : vector<16x512xf32>
    %34 = arith.truncf %33 : vector<16x512xf32> to vector<16x512xbf16>
    %c32 = arith.constant 32 : index
    %c0_21 = arith.constant 0 : index
    %35 = vector.load %arg11[%c32, %c0_21] : memref<144x512xbf16, #tpu.memory_space<vmem>>, vector<16x512xbf16>
    tpu.vector_store %arg11[%c32, %c0_21], %34 {strides = array<i32>} : memref<144x512xbf16, #tpu.memory_space<vmem>>, vector<16x512xbf16>,
    %c1_i32 = arith.constant 1 : i32
    %36 = tpu.dynamic_rotate %4 by %c1_i32 dim 1 : vector<16x512xf32>, i32 -> vector<16x512xf32>
    %c3 = arith.constant 3 : index
    %c0_22 = arith.constant 0 : index
    %37 = vector.load %arg4[%c3, %c0_22] : memref<11x512xf32, #tpu.memory_space<vmem>>, vector<1x512xf32>
    %38 = vector.broadcast %37 : vector<1x512xf32> to vector<16x512xf32>
    %39 = arith.mulf %36, %38 : vector<16x512xf32>
    %40 = arith.truncf %39 : vector<16x512xf32> to vector<16x512xbf16>
    %c48 = arith.constant 48 : index
    %c0_23 = arith.constant 0 : index
    %41 = vector.load %arg11[%c48, %c0_23] : memref<144x512xbf16, #tpu.memory_space<vmem>>, vector<16x512xbf16>
    tpu.vector_store %arg11[%c48, %c0_23], %40 {strides = array<i32>} : memref<144x512xbf16, #tpu.memory_space<vmem>>, vector<16x512xbf16>,
    %42 = arith.truncf %4 : vector<16x512xf32> to vector<16x512xbf16>
    %c64 = arith.constant 64 : index
    %c0_24 = arith.constant 0 : index
    %43 = vector.load %arg11[%c64, %c0_24] : memref<144x512xbf16, #tpu.memory_space<vmem>>, vector<16x512xbf16>
    tpu.vector_store %arg11[%c64, %c0_24], %42 {strides = array<i32>} : memref<144x512xbf16, #tpu.memory_space<vmem>>, vector<16x512xbf16>,
    %c511_i32 = arith.constant 511 : i32
    %44 = tpu.dynamic_rotate %4 by %c511_i32 dim 1 : vector<16x512xf32>, i32 -> vector<16x512xf32>
    %c5 = arith.constant 5 : index
    %c0_25 = arith.constant 0 : index
    %45 = vector.load %arg4[%c5, %c0_25] : memref<11x512xf32, #tpu.memory_space<vmem>>, vector<1x512xf32>
    %46 = vector.broadcast %45 : vector<1x512xf32> to vector<16x512xf32>
    %47 = arith.mulf %44, %46 : vector<16x512xf32>
    %48 = arith.truncf %47 : vector<16x512xf32> to vector<16x512xbf16>
    %c80 = arith.constant 80 : index
    %c0_26 = arith.constant 0 : index
    %49 = vector.load %arg11[%c80, %c0_26] : memref<144x512xbf16, #tpu.memory_space<vmem>>, vector<16x512xbf16>
    tpu.vector_store %arg11[%c80, %c0_26], %48 {strides = array<i32>} : memref<144x512xbf16, #tpu.memory_space<vmem>>, vector<16x512xbf16>,
    %c497_i32 = arith.constant 497 : i32
    %50 = tpu.dynamic_rotate %4 by %c497_i32 dim 1 : vector<16x512xf32>, i32 -> vector<16x512xf32>
    %c6 = arith.constant 6 : index
    %c0_27 = arith.constant 0 : index
    %51 = vector.load %arg4[%c6, %c0_27] : memref<11x512xf32, #tpu.memory_space<vmem>>, vector<1x512xf32>
    %52 = vector.broadcast %51 : vector<1x512xf32> to vector<16x512xf32>
    %53 = arith.mulf %50, %52 : vector<16x512xf32>
    %54 = arith.truncf %53 : vector<16x512xf32> to vector<16x512xbf16>
    %c96 = arith.constant 96 : index
    %c0_28 = arith.constant 0 : index
    %55 = vector.load %arg11[%c96, %c0_28] : memref<144x512xbf16, #tpu.memory_space<vmem>>, vector<16x512xbf16>
    tpu.vector_store %arg11[%c96, %c0_28], %54 {strides = array<i32>} : memref<144x512xbf16, #tpu.memory_space<vmem>>, vector<16x512xbf16>,
    %c496_i32 = arith.constant 496 : i32
    %56 = tpu.dynamic_rotate %4 by %c496_i32 dim 1 : vector<16x512xf32>, i32 -> vector<16x512xf32>
    %c7 = arith.constant 7 : index
    %c0_29 = arith.constant 0 : index
    %57 = vector.load %arg4[%c7, %c0_29] : memref<11x512xf32, #tpu.memory_space<vmem>>, vector<1x512xf32>
    %58 = vector.broadcast %57 : vector<1x512xf32> to vector<16x512xf32>
    %59 = arith.mulf %56, %58 : vector<16x512xf32>
    %60 = arith.truncf %59 : vector<16x512xf32> to vector<16x512xbf16>
    %c112 = arith.constant 112 : index
    %c0_30 = arith.constant 0 : index
    %61 = vector.load %arg11[%c112, %c0_30] : memref<144x512xbf16, #tpu.memory_space<vmem>>, vector<16x512xbf16>
    tpu.vector_store %arg11[%c112, %c0_30], %60 {strides = array<i32>} : memref<144x512xbf16, #tpu.memory_space<vmem>>, vector<16x512xbf16>,
    %c495_i32 = arith.constant 495 : i32
    %62 = tpu.dynamic_rotate %4 by %c495_i32 dim 1 : vector<16x512xf32>, i32 -> vector<16x512xf32>
    %c8 = arith.constant 8 : index
    %c0_31 = arith.constant 0 : index
    %63 = vector.load %arg4[%c8, %c0_31] : memref<11x512xf32, #tpu.memory_space<vmem>>, vector<1x512xf32>
    %64 = vector.broadcast %63 : vector<1x512xf32> to vector<16x512xf32>
    %65 = arith.mulf %62, %64 : vector<16x512xf32>
    %66 = arith.truncf %65 : vector<16x512xf32> to vector<16x512xbf16>
    %c128 = arith.constant 128 : index
    %c0_32 = arith.constant 0 : index
    %67 = vector.load %arg11[%c128, %c0_32] : memref<144x512xbf16, #tpu.memory_space<vmem>>, vector<16x512xbf16>
    tpu.vector_store %arg11[%c128, %c0_32], %66 {strides = array<i32>} : memref<144x512xbf16, #tpu.memory_space<vmem>>, vector<16x512xbf16>,
    %c0_33 = arith.constant 0 : index
    %c0_34 = arith.constant 0 : index
    %68 = vector.load %arg11[%c0_33, %c0_34] : memref<144x512xbf16, #tpu.memory_space<vmem>>, vector<144x512xbf16>
    %cst = arith.constant dense<0.000000e+00> : vector<16x512xf32>
    %69 = tpu.matmul %17, %68, %cst {dimension_numbers = #tpu.dot_dimension_numbers<[1], [0], [0], [1], [0, 0, 1, 1], [], []>} : vector<16x144xbf16>, vector<144x512xbf16>, vector<16x512xf32> -> vector<16x512xf32>
    %70 = vector.broadcast %7 : vector<16x1xf32> to vector<16x512xf32>
    %71 = arith.addf %69, %70 : vector<16x512xf32>
    %c0_35 = arith.constant 0 : index
    %c0_36 = arith.constant 0 : index
    %c0_37 = arith.constant 0 : index
    %c0_38 = arith.constant 0 : index
    %72 = vector.load %arg3[%c0_35, %c0_36, %c0_37, %c0_38] : memref<1x1x16x2xf32, #tpu.memory_space<vmem>>, vector<1x1x16x2xf32>
    %73 = vector.shape_cast %72 : vector<1x1x16x2xf32> to vector<16x2xf32>
    %74 = arith.mulf %71, %71 : vector<16x512xf32>
    %75 = tpu.concatenate %71, %74 in 0 : vector<16x512xf32>, vector<16x512xf32> -> vector<32x512xf32>
    %cst_39 = arith.constant dense<0.000000e+00> : vector<32x2xf32>
    %76 = tpu.matmul %75, %14, %cst_39 {dimension_numbers = #tpu.dot_dimension_numbers<[1], [0], [0], [1], [0, 0, 1, 1], [], []>} : vector<32x512xf32>, vector<512x2xf32>, vector<32x2xf32> -> vector<32x2xf32>
    %77 = vector.extract_strided_slice %76 {offsets = [0, 0], sizes = [16, 2], strides = [1, 1]} : vector<32x2xf32> to vector<16x2xf32>
    %78 = vector.extract_strided_slice %76 {offsets = [16, 0], sizes = [16, 2], strides = [1, 1]} : vector<32x2xf32> to vector<16x2xf32>
    %79 = tpu.concatenate %77, %78 in 1 : vector<16x2xf32>, vector<16x2xf32> -> vector<16x4xf32>
    %cst_40 = arith.constant dense<0.000000e+00> : vector<16x4xf32>
    %80 = tpu.matmul %15, %79, %cst_40 {dimension_numbers = #tpu.dot_dimension_numbers<[1], [0], [0], [1], [0, 0, 1, 1], [], []>} : vector<16x16xf32>, vector<16x4xf32>, vector<16x4xf32> -> vector<16x4xf32>
    %cst_41 = arith.constant 0.001953125 : f32
    %81 = vector.broadcast %cst_41 : f32 to vector<16x4xf32>
    %82 = arith.mulf %80, %81 : vector<16x4xf32>
    %83 = vector.extract_strided_slice %82 {offsets = [0, 0], sizes = [16, 2], strides = [1, 1]} : vector<16x4xf32> to vector<16x2xf32>
    %84 = vector.extract_strided_slice %82 {offsets = [0, 2], sizes = [16, 2], strides = [1, 1]} : vector<16x4xf32> to vector<16x2xf32>
    %85 = arith.mulf %83, %83 : vector<16x2xf32>
    %86 = arith.subf %84, %85 : vector<16x2xf32>
    %cst_42 = arith.constant 9.99999974E-6 : f32
    %87 = vector.broadcast %cst_42 : f32 to vector<16x2xf32>
    %88 = arith.addf %86, %87 : vector<16x2xf32>
    %89 = math.rsqrt %88 : vector<16x2xf32>
    %90 = vector.broadcast %8 : vector<16x1xf32> to vector<16x2xf32>
    %91 = arith.mulf %89, %90 : vector<16x2xf32>
    %92 = arith.mulf %83, %91 : vector<16x2xf32>
    %93 = vector.broadcast %9 : vector<16x1xf32> to vector<16x2xf32>
    %94 = arith.subf %93, %92 : vector<16x2xf32>
    %95 = tpu.concatenate %91, %94, %73 in 0 : vector<16x2xf32>, vector<16x2xf32>, vector<16x2xf32> -> vector<48x2xf32>
    %cst_43 = arith.constant dense<0.000000e+00> : vector<48x512xf32>
    %96 = tpu.matmul %95, %13, %cst_43 {dimension_numbers = #tpu.dot_dimension_numbers<[1], [0], [0], [1], [0, 0, 1, 1], [], []>} : vector<48x2xf32>, vector<2x512xf32>, vector<48x512xf32> -> vector<48x512xf32>
    %97 = vector.extract_strided_slice %96 {offsets = [0, 0], sizes = [16, 512], strides = [1, 1]} : vector<48x512xf32> to vector<16x512xf32>
    %98 = arith.mulf %71, %97 : vector<16x512xf32>
    %99 = vector.extract_strided_slice %96 {offsets = [16, 0], sizes = [16, 512], strides = [1, 1]} : vector<48x512xf32> to vector<16x512xf32>
    %100 = arith.addf %98, %99 : vector<16x512xf32>
    %101 = arith.negf %100 : vector<16x512xf32>
    %102 = math.exp %101 : vector<16x512xf32>
    %cst_44 = arith.constant 1.000000e+00 : f32
    %103 = vector.broadcast %cst_44 : f32 to vector<16x512xf32>
    %104 = arith.addf %103, %102 : vector<16x512xf32>
    %105 = arith.divf %103, %104 : vector<16x512xf32>
    %106 = arith.mulf %100, %105 : vector<16x512xf32>
    %107 = vector.extract_strided_slice %96 {offsets = [32, 0], sizes = [16, 512], strides = [1, 1]} : vector<48x512xf32> to vector<16x512xf32>
    %108 = arith.addf %106, %107 : vector<16x512xf32>
    %c0_45 = arith.constant 0 : index
    %c0_46 = arith.constant 0 : index
    %c0_47 = arith.constant 0 : index
    %109 = vector.load %arg8[%c0_45, %c0_46, %c0_47] : memref<1x16x144xbf16, #tpu.memory_space<vmem>>, vector<1x16x144xbf16>
    %110 = vector.shape_cast %109 : vector<1x16x144xbf16> to vector<16x144xbf16>
    %c17_i32_48 = arith.constant 17 : i32
    %111 = tpu.dynamic_rotate %108 by %c17_i32_48 dim 1 : vector<16x512xf32>, i32 -> vector<16x512xf32>
    %c0_49 = arith.constant 0 : index
    %c0_50 = arith.constant 0 : index
    %112 = vector.load %arg4[%c0_49, %c0_50] : memref<11x512xf32, #tpu.memory_space<vmem>>, vector<1x512xf32>
    %113 = vector.broadcast %112 : vector<1x512xf32> to vector<16x512xf32>
    %114 = arith.mulf %111, %113 : vector<16x512xf32>
    %115 = arith.truncf %114 : vector<16x512xf32> to vector<16x512xbf16>
    %c0_51 = arith.constant 0 : index
    %c0_52 = arith.constant 0 : index
    %116 = vector.load %arg11[%c0_51, %c0_52] : memref<144x512xbf16, #tpu.memory_space<vmem>>, vector<16x512xbf16>
    tpu.vector_store %arg11[%c0_51, %c0_52], %115 {strides = array<i32>} : memref<144x512xbf16, #tpu.memory_space<vmem>>, vector<16x512xbf16>,
    %c16_i32_53 = arith.constant 16 : i32
    %117 = tpu.dynamic_rotate %108 by %c16_i32_53 dim 1 : vector<16x512xf32>, i32 -> vector<16x512xf32>
    %c1_54 = arith.constant 1 : index
    %c0_55 = arith.constant 0 : index
    %118 = vector.load %arg4[%c1_54, %c0_55] : memref<11x512xf32, #tpu.memory_space<vmem>>, vector<1x512xf32>
    %119 = vector.broadcast %118 : vector<1x512xf32> to vector<16x512xf32>
    %120 = arith.mulf %117, %119 : vector<16x512xf32>
    %121 = arith.truncf %120 : vector<16x512xf32> to vector<16x512xbf16>
    %c16_56 = arith.constant 16 : index
    %c0_57 = arith.constant 0 : index
    %122 = vector.load %arg11[%c16_56, %c0_57] : memref<144x512xbf16, #tpu.memory_space<vmem>>, vector<16x512xbf16>
    tpu.vector_store %arg11[%c16_56, %c0_57], %121 {strides = array<i32>} : memref<144x512xbf16, #tpu.memory_space<vmem>>, vector<16x512xbf16>,
    %c15_i32_58 = arith.constant 15 : i32
    %123 = tpu.dynamic_rotate %108 by %c15_i32_58 dim 1 : vector<16x512xf32>, i32 -> vector<16x512xf32>
    %c2_59 = arith.constant 2 : index
    %c0_60 = arith.constant 0 : index
    %124 = vector.load %arg4[%c2_59, %c0_60] : memref<11x512xf32, #tpu.memory_space<vmem>>, vector<1x512xf32>
    %125 = vector.broadcast %124 : vector<1x512xf32> to vector<16x512xf32>
    %126 = arith.mulf %123, %125 : vector<16x512xf32>
    %127 = arith.truncf %126 : vector<16x512xf32> to vector<16x512xbf16>
    %c32_61 = arith.constant 32 : index
    %c0_62 = arith.constant 0 : index
    %128 = vector.load %arg11[%c32_61, %c0_62] : memref<144x512xbf16, #tpu.memory_space<vmem>>, vector<16x512xbf16>
    tpu.vector_store %arg11[%c32_61, %c0_62], %127 {strides = array<i32>} : memref<144x512xbf16, #tpu.memory_space<vmem>>, vector<16x512xbf16>,
    %c1_i32_63 = arith.constant 1 : i32
    %129 = tpu.dynamic_rotate %108 by %c1_i32_63 dim 1 : vector<16x512xf32>, i32 -> vector<16x512xf32>
    %c3_64 = arith.constant 3 : index
    %c0_65 = arith.constant 0 : index
    %130 = vector.load %arg4[%c3_64, %c0_65] : memref<11x512xf32, #tpu.memory_space<vmem>>, vector<1x512xf32>
    %131 = vector.broadcast %130 : vector<1x512xf32> to vector<16x512xf32>
    %132 = arith.mulf %129, %131 : vector<16x512xf32>
    %133 = arith.truncf %132 : vector<16x512xf32> to vector<16x512xbf16>
    %c48_66 = arith.constant 48 : index
    %c0_67 = arith.constant 0 : index
    %134 = vector.load %arg11[%c48_66, %c0_67] : memref<144x512xbf16, #tpu.memory_space<vmem>>, vector<16x512xbf16>
    tpu.vector_store %arg11[%c48_66, %c0_67], %133 {strides = array<i32>} : memref<144x512xbf16, #tpu.memory_space<vmem>>, vector<16x512xbf16>,
    %135 = arith.truncf %108 : vector<16x512xf32> to vector<16x512xbf16>
    %c64_68 = arith.constant 64 : index
    %c0_69 = arith.constant 0 : index
    %136 = vector.load %arg11[%c64_68, %c0_69] : memref<144x512xbf16, #tpu.memory_space<vmem>>, vector<16x512xbf16>
    tpu.vector_store %arg11[%c64_68, %c0_69], %135 {strides = array<i32>} : memref<144x512xbf16, #tpu.memory_space<vmem>>, vector<16x512xbf16>,
    %c511_i32_70 = arith.constant 511 : i32
    %137 = tpu.dynamic_rotate %108 by %c511_i32_70 dim 1 : vector<16x512xf32>, i32 -> vector<16x512xf32>
    %c5_71 = arith.constant 5 : index
    %c0_72 = arith.constant 0 : index
    %138 = vector.load %arg4[%c5_71, %c0_72] : memref<11x512xf32, #tpu.memory_space<vmem>>, vector<1x512xf32>
    %139 = vector.broadcast %138 : vector<1x512xf32> to vector<16x512xf32>
    %140 = arith.mulf %137, %139 : vector<16x512xf32>
    %141 = arith.truncf %140 : vector<16x512xf32> to vector<16x512xbf16>
    %c80_73 = arith.constant 80 : index
    %c0_74 = arith.constant 0 : index
    %142 = vector.load %arg11[%c80_73, %c0_74] : memref<144x512xbf16, #tpu.memory_space<vmem>>, vector<16x512xbf16>
    tpu.vector_store %arg11[%c80_73, %c0_74], %141 {strides = array<i32>} : memref<144x512xbf16, #tpu.memory_space<vmem>>, vector<16x512xbf16>,
    %c497_i32_75 = arith.constant 497 : i32
    %143 = tpu.dynamic_rotate %108 by %c497_i32_75 dim 1 : vector<16x512xf32>, i32 -> vector<16x512xf32>
    %c6_76 = arith.constant 6 : index
    %c0_77 = arith.constant 0 : index
    %144 = vector.load %arg4[%c6_76, %c0_77] : memref<11x512xf32, #tpu.memory_space<vmem>>, vector<1x512xf32>
    %145 = vector.broadcast %144 : vector<1x512xf32> to vector<16x512xf32>
    %146 = arith.mulf %143, %145 : vector<16x512xf32>
    %147 = arith.truncf %146 : vector<16x512xf32> to vector<16x512xbf16>
    %c96_78 = arith.constant 96 : index
    %c0_79 = arith.constant 0 : index
    %148 = vector.load %arg11[%c96_78, %c0_79] : memref<144x512xbf16, #tpu.memory_space<vmem>>, vector<16x512xbf16>
    tpu.vector_store %arg11[%c96_78, %c0_79], %147 {strides = array<i32>} : memref<144x512xbf16, #tpu.memory_space<vmem>>, vector<16x512xbf16>,
    %c496_i32_80 = arith.constant 496 : i32
    %149 = tpu.dynamic_rotate %108 by %c496_i32_80 dim 1 : vector<16x512xf32>, i32 -> vector<16x512xf32>
    %c7_81 = arith.constant 7 : index
    %c0_82 = arith.constant 0 : index
    %150 = vector.load %arg4[%c7_81, %c0_82] : memref<11x512xf32, #tpu.memory_space<vmem>>, vector<1x512xf32>
    %151 = vector.broadcast %150 : vector<1x512xf32> to vector<16x512xf32>
    %152 = arith.mulf %149, %151 : vector<16x512xf32>
    %153 = arith.truncf %152 : vector<16x512xf32> to vector<16x512xbf16>
    %c112_83 = arith.constant 112 : index
    %c0_84 = arith.constant 0 : index
    %154 = vector.load %arg11[%c112_83, %c0_84] : memref<144x512xbf16, #tpu.memory_space<vmem>>, vector<16x512xbf16>
    tpu.vector_store %arg11[%c112_83, %c0_84], %153 {strides = array<i32>} : memref<144x512xbf16, #tpu.memory_space<vmem>>, vector<16x512xbf16>,
    %c495_i32_85 = arith.constant 495 : i32
    %155 = tpu.dynamic_rotate %108 by %c495_i32_85 dim 1 : vector<16x512xf32>, i32 -> vector<16x512xf32>
    %c8_86 = arith.constant 8 : index
    %c0_87 = arith.constant 0 : index
    %156 = vector.load %arg4[%c8_86, %c0_87] : memref<11x512xf32, #tpu.memory_space<vmem>>, vector<1x512xf32>
    %157 = vector.broadcast %156 : vector<1x512xf32> to vector<16x512xf32>
    %158 = arith.mulf %155, %157 : vector<16x512xf32>
    %159 = arith.truncf %158 : vector<16x512xf32> to vector<16x512xbf16>
    %c128_88 = arith.constant 128 : index
    %c0_89 = arith.constant 0 : index
    %160 = vector.load %arg11[%c128_88, %c0_89] : memref<144x512xbf16, #tpu.memory_space<vmem>>, vector<16x512xbf16>
    tpu.vector_store %arg11[%c128_88, %c0_89], %159 {strides = array<i32>} : memref<144x512xbf16, #tpu.memory_space<vmem>>, vector<16x512xbf16>,
    %c0_90 = arith.constant 0 : index
    %c0_91 = arith.constant 0 : index
    %161 = vector.load %arg11[%c0_90, %c0_91] : memref<144x512xbf16, #tpu.memory_space<vmem>>, vector<144x512xbf16>
    %cst_92 = arith.constant dense<0.000000e+00> : vector<16x512xf32>
    %162 = tpu.matmul %110, %161, %cst_92 {dimension_numbers = #tpu.dot_dimension_numbers<[1], [0], [0], [1], [0, 0, 1, 1], [], []>} : vector<16x144xbf16>, vector<144x512xbf16>, vector<16x512xf32> -> vector<16x512xf32>
    %163 = vector.broadcast %10 : vector<16x1xf32> to vector<16x512xf32>
    %164 = arith.addf %162, %163 : vector<16x512xf32>
    %165 = arith.mulf %164, %164 : vector<16x512xf32>
    %166 = tpu.concatenate %164, %165 in 0 : vector<16x512xf32>, vector<16x512xf32> -> vector<32x512xf32>
    %cst_93 = arith.constant dense<0.000000e+00> : vector<32x2xf32>
    %167 = tpu.matmul %166, %14, %cst_93 {dimension_numbers = #tpu.dot_dimension_numbers<[1], [0], [0], [1], [0, 0, 1, 1], [], []>} : vector<32x512xf32>, vector<512x2xf32>, vector<32x2xf32> -> vector<32x2xf32>
    %168 = vector.extract_strided_slice %167 {offsets = [0, 0], sizes = [16, 2], strides = [1, 1]} : vector<32x2xf32> to vector<16x2xf32>
    %169 = vector.extract_strided_slice %167 {offsets = [16, 0], sizes = [16, 2], strides = [1, 1]} : vector<32x2xf32> to vector<16x2xf32>
    %170 = tpu.concatenate %168, %169 in 1 : vector<16x2xf32>, vector<16x2xf32> -> vector<16x4xf32>
    %cst_94 = arith.constant dense<0.000000e+00> : vector<16x4xf32>
    %171 = tpu.matmul %15, %170, %cst_94 {dimension_numbers = #tpu.dot_dimension_numbers<[1], [0], [0], [1], [0, 0, 1, 1], [], []>} : vector<16x16xf32>, vector<16x4xf32>, vector<16x4xf32> -> vector<16x4xf32>
    %cst_95 = arith.constant 0.001953125 : f32
    %172 = vector.broadcast %cst_95 : f32 to vector<16x4xf32>
    %173 = arith.mulf %171, %172 : vector<16x4xf32>
    %174 = vector.extract_strided_slice %173 {offsets = [0, 0], sizes = [16, 2], strides = [1, 1]} : vector<16x4xf32> to vector<16x2xf32>
    %175 = vector.extract_strided_slice %173 {offsets = [0, 2], sizes = [16, 2], strides = [1, 1]} : vector<16x4xf32> to vector<16x2xf32>
    %176 = arith.mulf %174, %174 : vector<16x2xf32>
    %177 = arith.subf %175, %176 : vector<16x2xf32>
    %cst_96 = arith.constant 9.99999974E-6 : f32
    %178 = vector.broadcast %cst_96 : f32 to vector<16x2xf32>
    %179 = arith.addf %177, %178 : vector<16x2xf32>
    %180 = math.rsqrt %179 : vector<16x2xf32>
    %181 = vector.broadcast %11 : vector<16x1xf32> to vector<16x2xf32>
    %182 = arith.mulf %180, %181 : vector<16x2xf32>
    %183 = arith.mulf %174, %182 : vector<16x2xf32>
    %184 = vector.broadcast %12 : vector<16x1xf32> to vector<16x2xf32>
    %185 = arith.subf %184, %183 : vector<16x2xf32>
    %186 = tpu.concatenate %182, %185 in 0 : vector<16x2xf32>, vector<16x2xf32> -> vector<32x2xf32>
    %cst_97 = arith.constant dense<0.000000e+00> : vector<32x512xf32>
    %187 = tpu.matmul %186, %13, %cst_97 {dimension_numbers = #tpu.dot_dimension_numbers<[1], [0], [0], [1], [0, 0, 1, 1], [], []>} : vector<32x2xf32>, vector<2x512xf32>, vector<32x512xf32> -> vector<32x512xf32>
    %188 = vector.extract_strided_slice %187 {offsets = [0, 0], sizes = [16, 512], strides = [1, 1]} : vector<32x512xf32> to vector<16x512xf32>
    %189 = arith.mulf %164, %188 : vector<16x512xf32>
    %190 = vector.extract_strided_slice %187 {offsets = [16, 0], sizes = [16, 512], strides = [1, 1]} : vector<32x512xf32> to vector<16x512xf32>
    %191 = arith.addf %189, %190 : vector<16x512xf32>
    %192 = arith.negf %191 : vector<16x512xf32>
    %193 = math.exp %192 : vector<16x512xf32>
    %cst_98 = arith.constant 1.000000e+00 : f32
    %194 = vector.broadcast %cst_98 : f32 to vector<16x512xf32>
    %195 = arith.addf %194, %193 : vector<16x512xf32>
    %196 = arith.divf %194, %195 : vector<16x512xf32>
    %197 = arith.mulf %191, %196 : vector<16x512xf32>
    %198 = arith.addf %197, %4 : vector<16x512xf32>
    %c0_99 = arith.constant 0 : index
    %c0_100 = arith.constant 0 : index
    %c0_101 = arith.constant 0 : index
    %199 = vector.load %arg10[%c0_99, %c0_100, %c0_101] : memref<1x16x512xf32, #tpu.memory_space<vmem>>, vector<1x16x512xf32>
    %200 = vector.shape_cast %199 : vector<1x16x512xf32> to vector<16x512xf32>
    %201 = vector.shape_cast %198 : vector<16x512xf32> to vector<1x16x512xf32>
    tpu.vector_store %arg10[%c0_99, %c0_100, %c0_101], %201 {strides = array<i32>} : memref<1x16x512xf32, #tpu.memory_space<vmem>>, vector<1x16x512xf32>,
    return
  }
  func.func @transform_0(%arg0: i32, %arg1: i32) -> (i32, i32, i32) {
    %c0_i32 = arith.constant 0 : i32
    %c0_i32_0 = arith.constant 0 : i32
    %c0_i32_1 = arith.constant 0 : i32
    return %arg0, %c0_i32, %c0_i32_0 : i32, i32, i32
  }
  func.func @transform_1(%arg0: i32, %arg1: i32) -> (i32, i32, i32, i32) {
    %c0_i32 = arith.constant 0 : i32
    %c0_i32_0 = arith.constant 0 : i32
    %c0_i32_1 = arith.constant 0 : i32
    return %arg1, %arg0, %c0_i32, %c0_i32_0 : i32, i32, i32, i32
  }
  func.func @transform_2(%arg0: i32, %arg1: i32) -> (i32, i32) {
    %c0_i32 = arith.constant 0 : i32
    %c0_i32_0 = arith.constant 0 : i32
    %c0_i32_1 = arith.constant 0 : i32
    return %c0_i32, %c0_i32_0 : i32, i32
  }
  func.func @transform_3(%arg0: i32, %arg1: i32) -> (i32, i32) {
    %c0_i32 = arith.constant 0 : i32
    %c0_i32_0 = arith.constant 0 : i32
    %c0_i32_1 = arith.constant 0 : i32
    return %c0_i32, %c0_i32_0 : i32, i32
  }
  func.func @transform_4(%arg0: i32, %arg1: i32) -> (i32, i32, i32) {
    %c0_i32 = arith.constant 0 : i32
    %c0_i32_0 = arith.constant 0 : i32
    %c0_i32_1 = arith.constant 0 : i32
    return %arg1, %c0_i32, %c0_i32_0 : i32, i32, i32
  }
  func.func @transform_5(%arg0: i32, %arg1: i32) -> (i32, i32, i32) {
    %c0_i32 = arith.constant 0 : i32
    %c0_i32_0 = arith.constant 0 : i32
    %c0_i32_1 = arith.constant 0 : i32
    return %arg1, %c0_i32, %c0_i32_0 : i32, i32, i32
  }
  func.func @transform_6(%arg0: i32, %arg1: i32) -> (i32, i32, i32) {
    %c0_i32 = arith.constant 0 : i32
    %c0_i32_0 = arith.constant 0 : i32
    %c0_i32_1 = arith.constant 0 : i32
    return %arg1, %c0_i32, %c0_i32_0 : i32, i32, i32
  }
  func.func @transform_7(%arg0: i32, %arg1: i32) -> (i32, i32) {
    %c0_i32 = arith.constant 0 : i32
    %c0_i32_0 = arith.constant 0 : i32
    %c0_i32_1 = arith.constant 0 : i32
    return %c0_i32, %c0_i32_0 : i32, i32
  }
  func.func @transform_8(%arg0: i32, %arg1: i32) -> (i32, i32, i32) {
    %c0_i32 = arith.constant 0 : i32
    %c0_i32_0 = arith.constant 0 : i32
    %c0_i32_1 = arith.constant 0 : i32
    return %arg0, %c0_i32, %c0_i32_0 : i32, i32, i32
  }
}

</mosaic_0001>

<bundles_post_ra>
// kernel: midcoder_forward.1
= control target key start
LH: loop header
LB: loop body
LE: loop exit
PB: predicated region body
PF: predicated region fallthrough
CT: control target
= control target key end

     0   :  { %s4112_s27 = smov 0   ;;  %s4114_s28 = smov 0   ;;  %s6285_s0 = inlined_call_operand.vmem [shape: f32[1,16,512], index: 0, kind: input, shape index: {}, may-alias: {0,8}]   ;;  %s6286_s1 = inlined_call_operand.vmem [shape: f32[2,1,16,2], index: 1, kind: input, shape index: {}]   ;;  %s6287_s2 = inlined_call_operand.vmem [shape: f32[11,512], index: 2, kind: input, shape index: {}]   ;;  %s6288_s3 = inlined_call_operand.vmem [shape: f32[512,2], index: 3, kind: input, shape index: {}]   ;;  %s6289_s4 = inlined_call_operand.vmem [shape: f32[2,16,8], index: 4, kind: input, shape index: {}]   ;;  %s6290_s5 = inlined_call_operand.vmem [shape: bf16[2,16,144], index: 5, kind: input, shape index: {}]   ;;  %s6291_s6 = inlined_call_operand.vmem [shape: bf16[2,16,144], index: 6, kind: input, shape index: {}]   ;;  %s6292_s7 = inlined_call_operand.vmem [shape: f32[16,16], index: 7, kind: input, shape index: {}]   ;;  %s6293_s8 = inlined_call_operand.vmem [shape: f32[1,16,512], index: 8, kind: output, shape index: {}, may-alias: {0,8}]  }
   0x1   :  { %s4116_s29 = smov 0  }
   0x2 LB: > { %s27_s30 = sadd.s32 1, %s4045_s28  ;;  %p3328_p0 = scmp.ge.s32.totalorder %s4049_s29, 1  ;;  %s4049_s29 = sphi %s4116_s29, %s18_s29   ;;  %s4045_s28 = sphi %s4114_s28, %s6385_s28   ;;  %s4041_s27 = sphi %s4112_s27, %s6384_s27  }
   0x3   : > { %p28_p1 = scmp.ge.s32.totalorder %s27_s30, 2  ;;  %p320_p2 = scmp.lt.s32.totalorder %s4049_s29, 3 }
   0x5   : > { %s6387_s30 = smov (%p28_p1, %s27_s30), 0  ;;  %p321_p3 = pnand %p3328_p0, %p320_p2 }
   0x6   : > { %p383_p4 = scmp.lt.s32.totalorder (!%p321_p3), %s4041_s27, 1  ;;  %p3337_p5 = scmp.ne.s32.totalorder (!%p321_p3), %s4041_s27, 0 }
   0x7   : > { %324 = sbr.rel (%p321_p3) target bundleno = 3028 (0xbd4), region = 52 }
   0xc   : > { %s384_s9 = scalar_select %p383_p4, %s4041_s27, 1 }
   0xd   : > { %416 = sbr.rel (%p3337_p5) target bundleno = 62 (0x3e), region = 56 }
   0xe   : > { %s3735_s10 = sshll.u32 %s384_s9, 4 }
   0xf   : > { %s4133_s13 = scalar_lea.vmem %s6286_s1, %s3735_s10  ;;  %s4138_s16 = scalar_lea.vmem %s6289_s4, %s3735_s10 }
  0x10   : > { %s4143_s19 = scalar_lea.vmem %s6290_s5, %s3735_s10  ;;  %s4148_s22 = scalar_lea.vmem %s6291_s6, %s3735_s10 }
  0x12   : > { %v417_v0 = vld [vmem:[%s6285_s0] sm:$0xff]  ;;  %v418_v1 = vld [vmem:[%s6285_s0 + $0x8] sm:$0xff]  ;;  %v419_v2 = vld [vmem:[%s6285_s0 + $0x10] sm:$0xff] }
  0x13   : > { %425 = vst [vmem:[%s6293_s8] sm:$0xff] %v417_v0 }
  0x1a   : > { %v420_v3 = vld [vmem:[%s6285_s0 + $0x18] sm:$0xff] }
  0x1b   : > { %426 = vst [vmem:[%s6293_s8 + $0x8] sm:$0xff] %v418_v1 }
  0x22   : > { %v421_v4 = vld [vmem:[%s6285_s0 + $0x20] sm:$0xff] }
  0x23   : > { %427 = vst [vmem:[%s6293_s8 + $0x10] sm:$0xff] %v419_v2 }
  0x2a   : > { %v422_v5 = vld [vmem:[%s6285_s0 + $0x28] sm:$0xff] }
  0x2b   : > { %428 = vst [vmem:[%s6293_s8 + $0x18] sm:$0xff] %v420_v3 }
  0x32   : > { %v423_v6 = vld [vmem:[%s6285_s0 + $0x30] sm:$0xff] }
  0x33   : > { %429 = vst [vmem:[%s6293_s8 + $0x20] sm:$0xff] %v421_v4 }
  0x3a   : > { %v424_v7 = vld [vmem:[%s6285_s0 + $0x38] sm:$0xff] }
  0x3b   : > { %430 = vst [vmem:[%s6293_s8 + $0x28] sm:$0xff] %v422_v5 }
  0x3c   : > { %431 = vst [vmem:[%s6293_s8 + $0x30] sm:$0xff] %v423_v6 }
  0x3d   : > { %432 = vst [vmem:[%s6293_s8 + $0x38] sm:$0xff] %v424_v7 }
  0x3e PF: > { %v4201_v8 = vld [vmem:[%s6293_s8 + $0x10] sm:$0xff]  ;;  %v4206_v9 = vld [vmem:[%s6293_s8 + $0x8] sm:$0xff]  ;;  %v4211_v10 = vld [vmem:[%s6293_s8] sm:$0xff]  ;;  %s4051_s10 = smov 112   ;;  %s4052_s23 = smov 113   ;;  %v531_v18 = vlaneseq  ;;  %vm6300_vm6 = vcmask 130048  }
  0x3f   : > { %844 = vrot.lane.b32.xlu2 %v4201_v8, %s4051_s10  ;;  %840 = vrot.lane.b32.xlu1 %v4206_v9, %s4051_s10  ;;  %v4232_v13 = vld [vmem:[%s6293_s8 + $0x20] sm:$0xff]  ;;  %s4053_s24 = smov 111   ;;  %s4054_s25 = smov 127   ;;  %v4279_v14 = vld [vmem:[%s6293_s8 + $0x18] sm:$0xff]  ;;  %vm6299_vm9 = vcmask 15360   ;;  %vm6298_vm10 = vcmask 1041408  }
  0x40   : > { %836 = vrot.lane.b32.xlu0 %v4211_v10, %s4051_s10  ;;  %s4055_s14 = smov 1   ;;  %s6296_s15 = smov 15   ;;  %v4326_v20 = vand.u32 127, %v531_v18  ;;  %v4331_v21 = vld [vmem:[%s6287_s2 + $0x7] ss:$8 sm:$0xf] }
  0x41   : > { %s6294_s18 = smov 16   ;;  %v865_v22 = vperm.slane %v4331_v21, 1  ;;  %v864_v23 = vperm.slane %v4331_v21, 0  ;;  %v4381_v43 = vld [vmem:[%s6287_s2 + $0x6] ss:$8 sm:$0xf] }
  0x42   : > { %v4227_v12 = vld [vmem:[%s6293_s8 + $0x28] sm:$0xff]  ;;  %vm852_vm0 = vcmp.lt.s32.totalorder %v4326_v20, 112  ;;  %vm800_vm1 = vcmp.lt.s32.totalorder %v4326_v20, 113  ;;  %v812_v44 = vperm.slane %v4381_v43, 0  ;;  %v813_v45 = vperm.slane %v4381_v43, 1  ;;  %s4058_s26 = smov 17  }
  0x43   : > { %v4222_v11 = vld [vmem:[%s6293_s8 + $0x30] sm:$0xff]  ;;  %vm6301_vm2 = vcmp.lt.s32.totalorder %v4326_v20, 111  ;;  %v814_v7 = vperm.slane %v4381_v43, 2  ;;  %vm748_vm3 = vcmp.lt.s32.totalorder %v4326_v20, 127  ;;  %vm688_vm4 = vcmp.lt.s32.totalorder %v4326_v20, 1  ;;  %s4060_s20 = smov 2  }
  0x44   : > { %v4284_v15 = vld [vmem:[%s6293_s8 + $0x38] sm:$0xff]  ;;  %vm636_vm5 = vcmp.lt.s32.totalorder %v4326_v20, 15  ;;  %vm6303_vm7 = vcmp.lt.s32.totalorder %v4326_v20, 16  ;;  %vm6302_vm8 = vcmp.lt.s32.totalorder %v4326_v20, 17  ;;  %s4063_s11 = smov 126   ;;  %s6325_s12 = smov 16  }
  0x45   : > { %v4417_v3 = vld [vmem:[%s6287_s2 + $0x20] ss:$8 sm:$0xf] }
  0x46   : > { %v916_v5 = vperm.slane %v4417_v3, 0 }
  0x47   : > { %846 = vrot.lane.b32.xlu2 %v4222_v11, %s4051_s10  ;;  %842 = vrot.lane.b32.xlu1 %v4227_v12, %s4051_s10 }
  0x48   : > { %838 = vrot.lane.b32.xlu0 %v4232_v13, %s4051_s10 }
  0x4f   : > { %788 = vrot.lane.b32.xlu2 %v4206_v9, %s4052_s23  ;;  %786 = vrot.lane.b32.xlu1 %v4232_v13, %s4052_s23 }
  0x50   : > { %784 = vrot.lane.b32.xlu0 %v4211_v10, %s4052_s23 }
  0x57   : > { %794 = vrot.lane.b32.xlu2 %v4222_v11, %s4052_s23  ;;  %792 = vrot.lane.b32.xlu1 %v4201_v8, %s4052_s23 }
  0x58   : > { %790 = vrot.lane.b32.xlu0 %v4227_v12, %s4052_s23 }
  0x5f   : > { %892 = vrot.lane.b32.xlu2 %v4206_v9, %s4053_s24  ;;  %890 = vrot.lane.b32.xlu1 %v4232_v13, %s4053_s24 }
  0x60   : > { %888 = vrot.lane.b32.xlu0 %v4211_v10, %s4053_s24 }
  0x67   : > { %898 = vrot.lane.b32.xlu2 %v4222_v11, %s4053_s24  ;;  %896 = vrot.lane.b32.xlu1 %v4201_v8, %s4053_s24 }
  0x68   : > { %894 = vrot.lane.b32.xlu0 %v4227_v12, %s4053_s24 }
  0x6f   : > { %736 = vrot.lane.b32.xlu2 %v4206_v9, %s4054_s25  ;;  %734 = vrot.lane.b32.xlu1 %v4232_v13, %s4054_s25 }
  0x70   : > { %732 = vrot.lane.b32.xlu0 %v4211_v10, %s4054_s25 }
  0x77   : > { %742 = vrot.lane.b32.xlu2 %v4222_v11, %s4054_s25  ;;  %740 = vrot.lane.b32.xlu1 %v4201_v8, %s4054_s25 }
  0x78   : > { %738 = vrot.lane.b32.xlu0 %v4227_v12, %s4054_s25 }
  0x7f   : > { %796 = vrot.lane.b32.xlu2 %v4279_v14, %s4052_s23  ;;  %850 = vrot.lane.b32.xlu1 %v4284_v15, %s4051_s10 }
  0x80   : > { %848 = vrot.lane.b32.xlu0 %v4279_v14, %s4051_s10 }
  0x87   : > { %674 = vrot.lane.b32.xlu2 %v4232_v13, %s4055_s14  ;;  %672 = vrot.lane.b32.xlu1 %v4211_v10, %s4055_s14 }
  0x88   : > { %798 = vrot.lane.b32.xlu0 %v4284_v15, %s4052_s23 }
  0x8f   : > { %684 = vrot.lane.b32.xlu2 %v4279_v14, %s4055_s14  ;;  %678 = vrot.lane.b32.xlu1 %v4227_v12, %s4055_s14 }
  0x90   : > { %676 = vrot.lane.b32.xlu0 %v4206_v9, %s4055_s14 }
  0x97   : > { %746 = vrot.lane.b32.xlu2 %v4284_v15, %s4054_s25  ;;  %744 = vrot.lane.b32.xlu1 %v4279_v14, %s4054_s25 }
  0x98   : > { %686 = vrot.lane.b32.xlu0 %v4284_v15, %s4055_s14 }
  0x99   : > { %v4310_v16 = vpop.permute.xlu2 %844 }
  0x9f   : > { %624 = vrot.lane.b32.xlu2 %v4206_v9, %s6296_s15  ;;  %622 = vrot.lane.b32.xlu1 %v4232_v13, %s6296_s15 }
  0xa0   : > { %620 = vrot.lane.b32.xlu0 %v4211_v10, %s6296_s15 }
  0xa1   : > { %v4318_v17 = vpop.permute.xlu2 %846 }
  0xa7   : > { %634 = vrot.lane.b32.xlu2 %v4284_v15, %s6296_s15  ;;  %632 = vrot.lane.b32.xlu1 %v4279_v14, %s6296_s15 }
  0xa8   : > { %626 = vrot.lane.b32.xlu0 %v4227_v12, %s6296_s15 }
  0xa9   : > { %v789_v19 = vpop.permute.xlu2 %788 }
  0xaf   : > { %568 = vrot.lane.b32.xlu2 %v4211_v10, %s6294_s18  ;;  %902 = vrot.lane.b32.xlu1 %v4284_v15, %s4053_s24 }
  0xb0   : > { %900 = vrot.lane.b32.xlu0 %v4279_v14, %s4053_s24 }
  0xb1   : > { %v4342_v24 = vpop.permute.xlu2 %794  ;;  %v841_v25 = vpop.permute.xlu1 %840 }
  0xb2   : > { %v855_v26 = vsel %vm852_vm0, %v841_v25, %v4310_v16  ;;  %v4347_v27 = vpop.permute.xlu0 %836 }
  0xb3   : > { %v873_v28 = vmul.f32 %v865_v22, %v855_v26  ;;  %v857_v29 = vsel %vm852_vm0, %v4347_v27, %v841_v25 }
  0xb4   : > { %v872_v30 = vmul.f32 %v864_v23, %v857_v29 }
  0xb6   : > { %v880_v31 = vpack.c.bf16 %v873_v28, %v872_v30 }
  0xb7   : > { %574 = vrot.lane.b32.xlu2 %v4227_v12, %s6294_s18  ;;  %572 = vrot.lane.b32.xlu1 %v4206_v9, %s6294_s18 }
  0xb8   : > { %884 = vst [vmem:[#allocation2 + $0xe0] sm:$0xff] %v880_v31  ;;  %570 = vrot.lane.b32.xlu0 %v4232_v13, %s6294_s18 }
  0xb9   : > { %v4358_v32 = vpop.permute.xlu2 %892  ;;  %v843_v33 = vpop.permute.xlu1 %842 }
  0xba   : > { %v856_v34 = vsel %vm852_vm0, %v843_v33, %v4318_v17  ;;  %v4363_v35 = vpop.permute.xlu0 %838 }
  0xbb   : > { %v877_v36 = vmul.f32 %v865_v22, %v856_v34  ;;  %v858_v37 = vsel %vm852_vm0, %v4363_v35, %v843_v33  ;;  %v815_v22 = vperm.slane %v4381_v43, 3 }
  0xbc   : > { %v876_v38 = vmul.f32 %v864_v23, %v858_v37  ;;  %v917_v23 = vperm.slane %v4417_v3, 1 }
  0xbe   : > { %v882_v39 = vpack.c.bf16 %v877_v36, %v876_v38 }
  0xbf   : > { %680 = vrot.lane.b32.xlu2 %v4201_v8, %s4055_s14  ;;  %582 = vrot.lane.b32.xlu1 %v4284_v15, %s6294_s18  ;;  %v3467_v46 = vld [vmem:[#allocation2 + $0xe0] sm:$0xf]  ;;  %v3769_v48 = vld [vmem:[#allocation2 + $0xe4] sm:$0xf] }
  0xc0   : > { %886 = vst [vmem:[#allocation2 + $0xf0] sm:$0xff] %v882_v39  ;;  %580 = vrot.lane.b32.xlu0 %v4279_v14, %s6294_s18 }
  0xc1   : > { %v4374_v40 = vpop.permute.xlu2 %898  ;;  %v4376_v41 = vpop.permute.xlu1 %786 }
  0xc2   : > { %v785_v42 = vpop.permute.xlu0 %784 }
  0xc3   : > { %v805_v50 = vsel %vm800_vm1, %v785_v42, %v789_v19 }
  0xc4   : > { %v820_v57 = vmul.f32 %v812_v44, %v805_v50 }
  0xc7   : > { %517 = vrot.lane.b32.xlu2 %v4232_v13, %s4058_s26  ;;  %515 = vrot.lane.b32.xlu1 %v4211_v10, %s4058_s26  ;;  %v3771_v47 = vld [vmem:[#allocation2 + $0xec] sm:$0xf0]  ;;  %v3469_v49 = vld [vmem:[#allocation2 + $0xf0] sm:$0xf0] }
  0xc8   : > { %682 = vrot.lane.b32.xlu0 %v4222_v11, %s4055_s14  ;;  %v3468_v51 = vor.u32 %v3771_v47, %v3467_v46  ;;  %v3472_v52 = vor.u32 %v3769_v48, %v3469_v49 }
  0xc9   : > { %v4394_v53 = vpop.permute.xlu2 %736  ;;  %v793_v54 = vpop.permute.xlu1 %792 }
  0xca   : > { %v803_v55 = vsel %vm800_vm1, %v789_v19, %v793_v54  ;;  %1179 = vmatpush.bf16.msra.mxu0 %v3468_v51  ;;  %1207 = vmatpush.bf16.msra.mxu2 %v3472_v52  ;;  %v791_v56 = vpop.permute.xlu0 %790 }
  0xcb   : > { %v821_v58 = vmul.f32 %v813_v45, %v803_v55  ;;  %v804_v59 = vsel %vm800_vm1, %v791_v56, %v4342_v24  ;;  %v806_v60 = vsel %vm800_vm1, %v4376_v41, %v791_v56  ;;  %v4469_v55 = vld [vmem:[%s6287_s2 + $0x5] ss:$8 sm:$0xf] }
  0xcc   : > { %v824_v61 = vmul.f32 %v812_v44, %v806_v60  ;;  %v825_v62 = vmul.f32 %v813_v45, %v804_v59  ;;  %v760_v56 = vperm.slane %v4469_v55, 0 }
  0xcd   : > { %v828_v63 = vpack.c.bf16 %v821_v58, %v820_v57  ;;  %v761_v58 = vperm.slane %v4469_v55, 1 }
  0xce   : > { %v830_v0 = vpack.c.bf16 %v825_v62, %v824_v61 }
  0xcf   : > { %832 = vst [vmem:[#allocation2 + $0xc0] sm:$0xff] %v828_v63  ;;  %527 = vrot.lane.b32.xlu2 %v4279_v14, %s4058_s26  ;;  %521 = vrot.lane.b32.xlu1 %v4227_v12, %s4058_s26 }
  0xd0   : > { %834 = vst [vmem:[#allocation2 + $0xd0] sm:$0xff] %v830_v0  ;;  %519 = vrot.lane.b32.xlu0 %v4206_v9, %s4058_s26 }
  0xd1   : > { %v4410_v1 = vpop.permute.xlu2 %742  ;;  %v4412_v2 = vpop.permute.xlu1 %890 }
  0xd2   : > { %v4419_v4 = vpop.permute.xlu0 %888 }
  0xd3   : > { %v909_v6 = vsel %vm6301_vm2, %v4419_v4, %v4358_v32 }
  0xd4   : > { %v924_v30 = vmul.f32 %v916_v5, %v909_v6 }
  0xd6   : > { %v3451_v18 = vld [vmem:[#allocation2 + $0xc0] sm:$0xf]  ;;  %v3765_v19 = vld [vmem:[#allocation2 + $0xc4] sm:$0xf] }
  0xd7   : > { %630 = vrot.lane.b32.xlu2 %v4222_v11, %s6296_s15  ;;  %628 = vrot.lane.b32.xlu1 %v4201_v8, %s6296_s15  ;;  %v3767_v25 = vld [vmem:[#allocation2 + $0xcc] sm:$0xf0]  ;;  %v3453_v26 = vld [vmem:[#allocation2 + $0xd0] sm:$0xf0] }
  0xd8   : > { %529 = vrot.lane.b32.xlu0 %v4284_v15, %s4058_s26  ;;  %v3452_v28 = vor.u32 %v3767_v25, %v3451_v18  ;;  %v3456_v29 = vor.u32 %v3765_v19, %v3453_v26 }
  0xd9   : > { %v797_v31 = vpop.permute.xlu2 %796  ;;  %v4436_v33 = vpop.permute.xlu1 %896 }
  0xda   : > { %v801_v34 = vsel %vm800_vm1, %v793_v54, %v797_v31  ;;  %v807_v36 = vsel %vm800_vm1, %v797_v31, %v785_v42  ;;  %v907_v37 = vsel %vm6301_vm2, %v4358_v32, %v4436_v33  ;;  %1180 = vmatpush.bf16.msra.mxu0 %v3452_v28  ;;  %1208 = vmatpush.bf16.msra.mxu2 %v3456_v29  ;;  %v895_v38 = vpop.permute.xlu0 %894 }
  0xdb   : > { %v822_v39 = vmul.f32 %v814_v7, %v801_v34  ;;  %v823_v44 = vmul.f32 %v815_v22, %v807_v36  ;;  %v925_v45 = vmul.f32 %v917_v23, %v907_v37  ;;  %v908_v46 = vsel %vm6301_vm2, %v895_v38, %v4374_v40 }
  0xdc   : > { %v910_v42 = vsel %vm6301_vm2, %v4412_v2, %v895_v38  ;;  %v929_v47 = vmul.f32 %v917_v23, %v908_v46  ;;  %v724_v31 = vpack.c.bf16 %v4206_v9, %v4211_v10  ;;  %v762_v37 = vperm.slane %v4469_v55, 2 }
  0xdd   : > { %v829_v32 = vpack.c.bf16 %v823_v44, %v822_v39  ;;  %v932_v48 = vpack.c.bf16 %v925_v45, %v924_v30  ;;  %v928_v49 = vmul.f32 %v916_v5, %v910_v42  ;;  %v763_v38 = vperm.slane %v4469_v55, 3  ;;  %v4580_v55 = vld [vmem:[%s6287_s2 + $0x2] ss:$8 sm:$0xf] }
  0xde   : > { %728 = vst [vmem:[#allocation2 + $0x80] sm:$0xff] %v724_v31  ;;  %v866_v39 = vperm.slane %v4331_v21, 2  ;;  %v867_v44 = vperm.slane %v4331_v21, 3 }
  0xdf   : > { %833 = vst [vmem:[#allocation2 + $0xc8] sm:$0xff] %v829_v32  ;;  %v934_v50 = vpack.c.bf16 %v929_v47, %v928_v49  ;;  %578 = vrot.lane.b32.xlu1 %v4222_v11, %s6294_s18  ;;  %523 = vrot.lane.b32.xlu2 %v4201_v8, %s4058_s26 }
  0xe0   : > { %936 = vst [vmem:[#allocation2 + $0x100] sm:$0xff] %v932_v48  ;;  %576 = vrot.lane.b32.xlu0 %v4201_v8, %s6294_s18 }
  0xe1   : > { %938 = vst [vmem:[#allocation2 + $0x110] sm:$0xff] %v934_v50  ;;  %v4462_v51 = vpop.permute.xlu2 %674  ;;  %v735_v52 = vpop.permute.xlu1 %734 }
  0xe2   : > { %v4464_v54 = vpop.permute.xlu0 %732 }
  0xe3   : > { %v753_v57 = vsel %vm748_vm3, %v4464_v54, %v4394_v53 }
  0xe4   : > { %v768_v18 = vmul.f32 %v760_v56, %v753_v57 }
  0xe7   : > { %v3483_v59 = vld [vmem:[#allocation2 + $0x100] sm:$0xf]  ;;  %v3773_v60 = vld [vmem:[#allocation2 + $0x104] sm:$0xf] }
  0xe8   : > { %525 = vrot.lane.b32.xlu0 %v4222_v11, %s4058_s26  ;;  %v3775_v61 = vld [vmem:[#allocation2 + $0x10c] sm:$0xf0]  ;;  %v3485_v62 = vld [vmem:[#allocation2 + $0x110] sm:$0xf0] }
  0xe9   : > { %v4480_v63 = vpop.permute.xlu2 %684  ;;  %v4482_v0 = vpop.permute.xlu1 %740  ;;  %v3484_v5 = vor.u32 %v3775_v61, %v3483_v59  ;;  %v3488_v6 = vor.u32 %v3773_v60, %v3485_v62  ;;  %v3757_v59 = vld [vmem:[#allocation2 + $0x84] sm:$0xf] }
  0xea   : > { %v751_v19 = vsel %vm748_vm3, %v4394_v53, %v4482_v0  ;;  %v739_v23 = vpop.permute.xlu0 %738  ;;  %v726_v53 = vpack.c.bf16 %v4227_v12, %v4232_v13 }
  0xeb   : > { %v769_v25 = vmul.f32 %v761_v58, %v751_v19  ;;  %1200 = vmatpush.bf16.msra.mxu1 %v3484_v5  ;;  %1228 = vmatpush.bf16.msra.mxu3 %v3488_v6  ;;  %v752_v26 = vsel %vm748_vm3, %v739_v23, %v4410_v1  ;;  %v754_v28 = vsel %vm748_vm3, %v735_v52, %v739_v23 }
  0xec   : > { %v772_v29 = vmul.f32 %v760_v56, %v754_v28  ;;  %v773_v30 = vmul.f32 %v761_v58, %v752_v26  ;;  %730 = vst [vmem:[#allocation2 + $0x90] sm:$0xff] %v726_v53  ;;  %v3419_v56 = vld [vmem:[#allocation2 + $0x80] sm:$0xf] }
  0xed   : > { %v776_v34 = vpack.c.bf16 %v769_v25, %v768_v18 }
  0xee   : > { %v778_v36 = vpack.c.bf16 %v773_v30, %v772_v29 }
  0xef   : > { %780 = vst [vmem:[#allocation2 + $0xa0] sm:$0xff] %v776_v34  ;;  %v4537_v34 = vld [vmem:[%s6287_s2 + $0x3] ss:$8 sm:$0xf] }
  0xf0   : > { %782 = vst [vmem:[#allocation2 + $0xb0] sm:$0xff] %v778_v36  ;;  %v700_v36 = vperm.slane %v4537_v34, 0 }
  0xf1   : > { %v747_v45 = vpop.permute.xlu2 %746  ;;  %v851_v46 = vpop.permute.xlu1 %850 }
  0xf2   : > { %v750_v9 = vsel %vm748_vm3, %v4410_v1, %v747_v45  ;;  %v756_v10 = vsel %vm748_vm3, %v747_v45, %v735_v52  ;;  %v854_v12 = vsel %vm852_vm0, %v4318_v17, %v851_v46  ;;  %v860_v13 = vsel %vm852_vm0, %v851_v46, %v4363_v35  ;;  %v849_v21 = vpop.permute.xlu0 %848 }
  0xf3   : > { %v774_v42 = vmul.f32 %v762_v37, %v750_v9  ;;  %v775_v47 = vmul.f32 %v763_v38, %v756_v10  ;;  %v878_v32 = vmul.f32 %v866_v39, %v854_v12  ;;  %v879_v1 = vmul.f32 %v867_v44, %v860_v13  ;;  %v3421_v18 = vld [vmem:[#allocation2 + $0x90] sm:$0xf0]  ;;  %v3459_v13 = vld [vmem:[#allocation2 + $0xc8] sm:$0xf] }
  0xf4   : > { %v853_v48 = vsel %vm852_vm0, %v4310_v16, %v849_v21  ;;  %v859_v17 = vsel %vm852_vm0, %v849_v21, %v4347_v27  ;;  %v3759_v16 = vld [vmem:[#allocation2 + $0x8c] sm:$0xf0]  ;;  %v3424_v26 = vor.u32 %v3757_v59, %v3421_v18 }
  0xf5   : > { %v779_v49 = vpack.c.bf16 %v775_v47, %v774_v42  ;;  %v883_v50 = vpack.c.bf16 %v879_v1, %v878_v32  ;;  %v874_v35 = vmul.f32 %v866_v39, %v853_v48  ;;  %v875_v52 = vmul.f32 %v867_v44, %v859_v17 }
  0xf6   : > { %v3435_v57 = vld [vmem:[#allocation2 + $0xa0] sm:$0xf]  ;;  %v3761_v58 = vld [vmem:[#allocation2 + $0xa4] sm:$0xf]  ;;  %v3420_v25 = vor.u32 %v3759_v16, %v3419_v56 }
  0xf7   : > { %783 = vst [vmem:[#allocation2 + $0xb8] sm:$0xff] %v779_v49  ;;  %v881_v60 = vpack.c.bf16 %v875_v52, %v874_v35  ;;  %v3763_v61 = vld [vmem:[#allocation2 + $0xac] sm:$0xf0]  ;;  %v3437_v62 = vld [vmem:[#allocation2 + $0xb0] sm:$0xf0] }
  0xf8   : > { %887 = vst [vmem:[#allocation2 + $0xf8] sm:$0xff] %v883_v50  ;;  %v3436_v5 = vor.u32 %v3763_v61, %v3435_v57  ;;  %v3440_v6 = vor.u32 %v3761_v58, %v3437_v62  ;;  %v3349_v61 = vld [vmem:[%s4143_s19 + $0x8] sm:$0xf0]  ;;  %v702_v62 = vperm.slane %v4537_v34, 2 }
  0xf9   : > { %885 = vst [vmem:[#allocation2 + $0xe8] sm:$0xff] %v881_v60  ;;  %v4522_v19 = vpop.permute.xlu2 %624  ;;  %v673_v27 = vpop.permute.xlu1 %672  ;;  %v3739_v60 = vld [vmem:[%s4143_s19 + $0x4] sm:$0xf] }
  0xfa   : > { %1181 = vmatpush.bf16.msra.mxu0 %v3436_v5  ;;  %1209 = vmatpush.bf16.msra.mxu2 %v3440_v6  ;;  %v799_v23 = vpop.permute.xlu0 %798  ;;  %v695_v43 = vsel %vm688_vm4, %v4480_v63, %v673_v27  ;;  %v703_v5 = vperm.slane %v4537_v34, 3 }
  0xfb   : > { %v802_v28 = vsel %vm800_vm1, %v4342_v24, %v799_v23  ;;  %v808_v29 = vsel %vm800_vm1, %v799_v23, %v4376_v41  ;;  %v701_v41 = vperm.slane %v4537_v34, 1  ;;  %v708_v9 = vmul.f32 %v700_v36, %v695_v43 }
  0xfc   : > { %v826_v30 = vmul.f32 %v814_v7, %v802_v28  ;;  %v827_v31 = vmul.f32 %v815_v22, %v808_v29  ;;  %v648_v29 = vperm.slane %v4580_v55, 0 }
  0xfe   : > { %v831_v53 = vpack.c.bf16 %v827_v31, %v826_v30  ;;  %1182 = vmatpush.bf16.msra.mxu0 %v3420_v25  ;;  %1210 = vmatpush.bf16.msra.mxu2 %v3424_v26  ;;  %v3764_v18 = vld [vmem:[#allocation2 + $0xb4] sm:$0xf0] }
  0xff   : > { %v3772_v24 = vld [vmem:[#allocation2 + $0xf4] sm:$0xf0] }
 0x100   : > { %835 = vst [vmem:[#allocation2 + $0xd8] sm:$0xff] %v831_v53  ;;  %v3475_v7 = vld [vmem:[#allocation2 + $0xe8] sm:$0xf] }
 0x101   : > { %v4545_v22 = vpop.permute.xlu2 %634  ;;  %v4547_v39 = vpop.permute.xlu1 %678  ;;  %v3476_v44 = vor.u32 %v3772_v24, %v3475_v7 }
 0x102   : > { %v677_v45 = vpop.permute.xlu0 %676  ;;  %v694_v47 = vsel %vm688_vm4, %v4462_v51, %v4547_v39 }
 0x103   : > { %1235 = vmatpush.bf16.msrb.mxu1 %v3476_v44  ;;  %v693_v46 = vsel %vm688_vm4, %v673_v27, %v677_v45 }
 0x104   : > { %v709_v10 = vmul.f32 %v701_v41, %v693_v46 }
 0x106   : > { %v716_v12 = vpack.c.bf16 %v709_v10, %v708_v9 }
 0x107   : > { %v3768_v21 = vld [vmem:[#allocation2 + $0xd4] sm:$0xf0] }
 0x108   : > { %720 = vst [vmem:[#allocation2 + $0x60] sm:$0xff] %v716_v12  ;;  %v3460_v42 = vor.u32 %v3768_v21, %v3459_v13  ;;  %v725_v21 = vpack.c.bf16 %v4279_v14, %v4201_v8 }
 0x109   : > { %v4555_v32 = vpop.permute.xlu2 %568  ;;  %v745_v1 = vpop.permute.xlu1 %744 }
 0x10a   : > { %v749_v48 = vsel %vm748_vm3, %v4482_v0, %v745_v1  ;;  %v755_v17 = vsel %vm748_vm3, %v745_v1, %v4464_v54  ;;  %1236 = vmatpush.bf16.msrb.mxu1 %v3460_v42  ;;  %v4563_v49 = vpop.permute.xlu0 %686  ;;  %v713_v0 = vmul.f32 %v701_v41, %v694_v47  ;;  %729 = vst [vmem:[#allocation2 + $0x88] sm:$0xff] %v725_v21 }
 0x10b   : > { %v770_v50 = vmul.f32 %v762_v37, %v749_v48  ;;  %v771_v35 = vmul.f32 %v763_v38, %v755_v17  ;;  %v696_v52 = vsel %vm688_vm4, %v4563_v49, %v4462_v51  ;;  %v4582_v38 = vor.u32 %v3739_v60, %v3349_v61 }
 0x10c   : > { %v712_v56 = vmul.f32 %v700_v36, %v696_v52  ;;  %v649_v51 = vperm.slane %v4580_v55, 1  ;;  %v727_v48 = vpack.c.bf16 %v4284_v15, %v4222_v11  ;;  %v918_v17 = vperm.slane %v4417_v3, 2 }
 0x10d   : > { %v777_v57 = vpack.c.bf16 %v771_v35, %v770_v50  ;;  %3498 = vmatmul.msk.bf16.vlgmr.msra.gmra.mxu3 %vm6300_vm6, %v4582_v38  ;;  %3497 = vmatmul.msk.bf16.vlgmr.msra.gmra.mxu1 %vm6300_vm6, %v4582_v38  ;;  %v919_v50 = vperm.slane %v4417_v3, 3 }
 0x10e   : > { %v718_v58 = vpack.c.bf16 %v713_v0, %v712_v56  ;;  %731 = vst [vmem:[#allocation2 + $0x98] sm:$0xff] %v727_v48 }
 0x10f   : > { %781 = vst [vmem:[#allocation2 + $0xa8] sm:$0xff] %v777_v57  ;;  %v3403_v27 = vld [vmem:[#allocation2 + $0x60] sm:$0xf]  ;;  %v3753_v26 = vld [vmem:[#allocation2 + $0x64] sm:$0xf] }
 0x110   : > { %722 = vst [vmem:[#allocation2 + $0x70] sm:$0xff] %v718_v58 }
 0x111   : > { %v4573_v54 = vpop.permute.xlu2 %574  ;;  %v623_v59 = vpop.permute.xlu1 %622  ;;  %v3427_v60 = vld [vmem:[#allocation2 + $0x88] sm:$0xf] }
 0x112   : > { %v621_v37 = vpop.permute.xlu0 %620  ;;  %v644_v53 = vsel %vm636_vm5, %v4545_v22, %v623_v59 }
 0x113   : > { %v641_v6 = vsel %vm636_vm5, %v621_v37, %v4522_v19 }
 0x114   : > { %v657_v24 = vmul.f32 %v649_v51, %v641_v6 }
 0x116   : > { %v3443_v16 = vld [vmem:[#allocation2 + $0xa8] sm:$0xf] }
 0x117   : > { %v3444_v23 = vor.u32 %v3764_v18, %v3443_v16  ;;  %v3755_v25 = vld [vmem:[#allocation2 + $0x6c] sm:$0xf0]  ;;  %v3405_v28 = vld [vmem:[#allocation2 + $0x70] sm:$0xf0] }
 0x118   : > { %v3404_v30 = vor.u32 %v3755_v25, %v3403_v27  ;;  %v3408_v31 = vor.u32 %v3753_v26, %v3405_v28  ;;  %v3760_v27 = vld [vmem:[#allocation2 + $0x94] sm:$0xf0]  ;;  %v3477_v26 = vld [vmem:[#allocation2 + $0xf8] sm:$0xf0] }
 0x119   : > { %v681_v36 = vpop.permute.xlu2 %680  ;;  %v4599_v41 = vpop.permute.xlu1 %632  ;;  %1237 = vmatpush.bf16.msrb.mxu1 %v3444_v23  ;;  %v4645_v25 = vld [vmem:[%s6287_s2 + $0x1] ss:$8 sm:$0xf] }
 0x11a   : > { %v689_v7 = vsel %vm688_vm4, %v681_v36, %v4480_v63  ;;  %v691_v43 = vsel %vm688_vm4, %v677_v45, %v681_v36  ;;  %v643_v44 = vsel %vm636_vm5, %v4599_v41, %v621_v37  ;;  %v4609_v46 = vpop.permute.xlu0 %626  ;;  %1183 = vmatpush.bf16.msra.mxu0 %v3404_v30  ;;  %1211 = vmatpush.bf16.msra.mxu2 %v3408_v31  ;;  %v597_v28 = vperm.slane %v4645_v25, 1  ;;  %v3770_v30 = vld [vmem:[#allocation2 + $0xec] sm:$0xf] }
 0x11b   : > { %v710_v9 = vmul.f32 %v702_v62, %v691_v43  ;;  %v711_v10 = vmul.f32 %v703_v5, %v689_v7  ;;  %v656_v12 = vmul.f32 %v648_v29, %v643_v44  ;;  %v642_v63 = vsel %vm636_vm5, %v623_v59, %v4609_v46 }
 0x11c   : > { %v660_v45 = vmul.f32 %v648_v29, %v644_v53  ;;  %v661_v13 = vmul.f32 %v649_v51, %v642_v63  ;;  %v650_v53 = vperm.slane %v4580_v55, 2  ;;  %v596_v36 = vperm.slane %v4645_v25, 0 }
 0x11d   : > { %v717_v42 = vpack.c.bf16 %v711_v10, %v710_v9  ;;  %v664_v47 = vpack.c.bf16 %v657_v24, %v656_v12  ;;  %v651_v24 = vperm.slane %v4580_v55, 3  ;;  %v3480_v12 = vor.u32 %v3770_v30, %v3477_v26 }
 0x11e   : > { %v666_v1 = vpack.c.bf16 %v661_v13, %v660_v45 }
 0x11f   : > { %721 = vst [vmem:[#allocation2 + $0x68] sm:$0xff] %v717_v42 }
 0x120   : > { %668 = vst [vmem:[#allocation2 + $0x40] sm:$0xff] %v664_v47  ;;  %v3461_v47 = vld [vmem:[#allocation2 + $0xd8] sm:$0xf0] }
 0x121   : > { %670 = vst [vmem:[#allocation2 + $0x50] sm:$0xff] %v666_v1  ;;  %v4624_v35 = vpop.permute.xlu2 %517  ;;  %v903_v52 = vpop.permute.xlu1 %902 }
 0x122   : > { %v906_v8 = vsel %vm6301_vm2, %v4374_v40, %v903_v52  ;;  %v912_v14 = vsel %vm6301_vm2, %v903_v52, %v4412_v2  ;;  %v901_v11 = vpop.permute.xlu0 %900  ;;  %v3766_v52 = vld [vmem:[#allocation2 + $0xcc] sm:$0xf] }
 0x123   : > { %v930_v15 = vmul.f32 %v918_v17, %v906_v8  ;;  %v931_v0 = vmul.f32 %v919_v50, %v912_v14  ;;  %v905_v3 = vsel %vm6301_vm2, %v4436_v33, %v901_v11  ;;  %v911_v56 = vsel %vm6301_vm2, %v901_v11, %v4419_v4 }
 0x124   : > { %v926_v57 = vmul.f32 %v918_v17, %v905_v3  ;;  %v927_v58 = vmul.f32 %v919_v50, %v911_v56  ;;  %v3428_v4 = vor.u32 %v3760_v27, %v3427_v60  ;;  %v3464_v11 = vor.u32 %v3766_v52, %v3461_v47  ;;  %v3445_v3 = vld [vmem:[#allocation2 + $0xb8] sm:$0xf0]  ;;  %v3758_v56 = vld [vmem:[#allocation2 + $0x8c] sm:$0xf] }
 0x125   : > { %v935_v59 = vpack.c.bf16 %v931_v0, %v930_v15  ;;  %v3762_v0 = vld [vmem:[#allocation2 + $0xac] sm:$0xf] }
 0x126   : > { %v933_v40 = vpack.c.bf16 %v927_v58, %v926_v57  ;;  %1238 = vmatpush.bf16.msrb.mxu1 %v3428_v4  ;;  %v3429_v57 = vld [vmem:[#allocation2 + $0x98] sm:$0xf0]  ;;  %v3448_v58 = vor.u32 %v3762_v0, %v3445_v3  ;;  %v3411_v47 = vld [vmem:[#allocation2 + $0x68] sm:$0xf] }
 0x127   : > { %939 = vst [vmem:[#allocation2 + $0x118] sm:$0xff] %v935_v59  ;;  %v3387_v61 = vld [vmem:[#allocation2 + $0x40] sm:$0xf]  ;;  %v3749_v2 = vld [vmem:[#allocation2 + $0x44] sm:$0xf] }
 0x128   : > { %937 = vst [vmem:[#allocation2 + $0x108] sm:$0xff] %v933_v40  ;;  %v3751_v37 = vld [vmem:[#allocation2 + $0x4c] sm:$0xf0]  ;;  %v3389_v51 = vld [vmem:[#allocation2 + $0x50] sm:$0xf0] }
 0x129   : > { %v4638_v6 = vpop.permute.xlu2 %527  ;;  %v4640_v16 = vpop.permute.xlu1 %572  ;;  %v3388_v33 = vor.u32 %v3751_v37, %v3387_v61  ;;  %v3392_v18 = vor.u32 %v3749_v2, %v3389_v51  ;;  %v3432_v61 = vor.u32 %v3758_v56, %v3429_v57  ;;  %v4691_v2 = vld [vmem:[%s6287_s2] ss:$8 sm:$0xf] }
 0x12a   : > { %v571_v23 = vpop.permute.xlu0 %570  ;;  %v589_v44 = vsel %vm6303_vm7, %v4555_v32, %v4640_v16  ;;  %v546_v34 = vperm.slane %v4691_v2, 2 }
 0x12b   : > { %1184 = vmatpush.bf16.msra.mxu0 %v3388_v33  ;;  %1212 = vmatpush.bf16.msra.mxu2 %v3392_v18  ;;  %v590_v31 = vsel %vm6303_vm7, %v571_v23, %v4573_v54  ;;  %v547_v18 = vperm.slane %v4691_v2, 3 }
 0x12c   : > { %v609_v63 = vmul.f32 %v597_v28, %v590_v31 }
 0x12e   : > { %v3776_v29 = vld [vmem:[#allocation2 + $0x114] sm:$0xf0] }
 0x12f   : > { %v3491_v7 = vld [vmem:[#allocation2 + $0x108] sm:$0xf] }
 0x130   : > { %v3492_v43 = vor.u32 %v3776_v29, %v3491_v7 }
 0x131   : > { %v631_v9 = vpop.permute.xlu2 %630  ;;  %v4659_v10 = vpop.permute.xlu1 %582 }
 0x132   : > { %v638_v45 = vsel %vm636_vm5, %v631_v9, %v4545_v22  ;;  %v640_v13 = vsel %vm636_vm5, %v4609_v46, %v631_v9  ;;  %v592_v21 = vsel %vm6303_vm7, %v4659_v10, %v571_v23  ;;  %1256 = vmatpush.bf16.msrb.mxu3 %v3492_v43  ;;  %v4670_v42 = vpop.permute.xlu0 %580  ;;  %v605_v46 = vmul.f32 %v597_v28, %v589_v44  ;;  %v4713_v43 = vld [vmem:[%s4138_s16] sm:$0xff] }
 0x133   : > { %v662_v1 = vmul.f32 %v650_v53, %v640_v13  ;;  %v663_v48 = vmul.f32 %v651_v24, %v638_v45  ;;  %v608_v17 = vmul.f32 %v596_v36, %v592_v21  ;;  %v591_v22 = vsel %vm6303_vm7, %v4670_v42, %v4555_v32 }
 0x134   : > { %v604_v50 = vmul.f32 %v596_v36, %v591_v22  ;;  %v545_v23 = vperm.slane %v4691_v2, 1  ;;  %v4059_v45 = vmov 0  }
 0x135   : > { %v667_v8 = vpack.c.bf16 %v663_v48, %v662_v1  ;;  %v614_v14 = vpack.c.bf16 %v609_v63, %v608_v17  ;;  %3499 = vmatmul.msk.bf16.vlgmr.msrb.gmra.mxu3 %vm6300_vm6, %v4582_v38  ;;  %3857 = vset.pattern.permute.xlu1 %v4059_v45  ;;  %v3754_v48 = vld [vmem:[#allocation2 + $0x6c] sm:$0xf] }
 0x136   : > { %1263 = vmatpush.bf16.msra.mxu3 %v3480_v12  ;;  %v612_v15 = vpack.c.bf16 %v605_v46, %v604_v50  ;;  %3858 = vset.pattern.permute.xlu2 %v4059_v45 }
 0x137   : > { %671 = vst [vmem:[#allocation2 + $0x58] sm:$0xff] %v667_v8  ;;  %978 = vperm.xlu1 %3857, %v4713_v43  }
 0x138   : > { %618 = vst [vmem:[#allocation2 + $0x30] sm:$0xff] %v614_v14 }
 0x139   : > { %616 = vst [vmem:[#allocation2 + $0x20] sm:$0xff] %v612_v15  ;;  %v516_v32 = vpop.permute.xlu1 %515  ;;  %v524_v33 = vpop.permute.xlu2 %523 }
 0x13a   : > { %1264 = vmatpush.bf16.msra.mxu3 %v3464_v11  ;;  %v683_v59 = vpop.permute.xlu0 %682  ;;  %v534_v27 = vsel %vm6302_vm8, %v524_v33, %v4638_v6  ;;  %v540_v28 = vsel %vm6302_vm8, %v4638_v6, %v516_v32 }
 0x13b   : > { %v690_v40 = vsel %vm688_vm4, %v683_v59, %v4563_v49  ;;  %v692_v60 = vsel %vm688_vm4, %v4547_v39, %v683_v59  ;;  %v544_v39 = vperm.slane %v4691_v2, 0  ;;  %v555_v36 = vmul.f32 %v547_v18, %v534_v27  ;;  %v459_v2 = vld [vmem:[%s6288_s3 + $0x60] sm:$0xff] }
 0x13c   : > { %v714_v37 = vmul.f32 %v702_v62, %v692_v60  ;;  %v715_v51 = vmul.f32 %v703_v5, %v690_v40  ;;  %v599_v59 = vperm.slane %v4645_v25, 3 }
 0x13d   : > { %v552_v12 = vmul.f32 %v544_v39, %v540_v28 }
 0x13e   : > { %1265 = vmatpush.bf16.msra.mxu3 %v3448_v58  ;;  %v719_v49 = vpack.c.bf16 %v715_v51, %v714_v37  ;;  %v4740_v58 = vld [vmem:[%s4138_s16 + $0x8] sm:$0xff] }
 0x13f   : > { %v3747_v4 = vld [vmem:[#allocation2 + $0x2c] sm:$0xf0]  ;;  %v3373_v62 = vld [vmem:[#allocation2 + $0x30] sm:$0xf0]  ;;  %983 = vperm.xlu2 %3858, %v4740_v58  }
 0x140   : > { %723 = vst [vmem:[#allocation2 + $0x78] sm:$0xff] %v719_v49  ;;  %v3371_v5 = vld [vmem:[#allocation2 + $0x20] sm:$0xf]  ;;  %v3745_v26 = vld [vmem:[#allocation2 + $0x24] sm:$0xf] }
 0x141   : > { %v4708_v29 = vpop.permute.xlu1 %521  ;;  %v3372_v30 = vor.u32 %v3747_v4, %v3371_v5  ;;  %v3376_v31 = vor.u32 %v3745_v26, %v3373_v62  ;;  %v3493_v49 = vld [vmem:[#allocation2 + $0x118] sm:$0xf0] }
 0x142   : > { %1266 = vmatpush.bf16.msra.mxu3 %v3432_v61  ;;  %v520_v7 = vpop.permute.xlu0 %519  ;;  %v539_v50 = vsel %vm6302_vm8, %v4624_v35, %v4708_v29 }
 0x143   : > { %v536_v44 = vsel %vm6302_vm8, %v520_v7, %v524_v33  ;;  %v538_v9 = vsel %vm6302_vm8, %v516_v32, %v520_v7  ;;  %1185 = vmatpush.bf16.msra.mxu0 %v3372_v30  ;;  %1213 = vmatpush.bf16.msra.mxu2 %v3376_v31  ;;  %v557_v56 = vmul.f32 %v545_v23, %v539_v50  ;;  %v3774_v33 = vld [vmem:[#allocation2 + $0x10c] sm:$0xf] }
 0x144   : > { %v553_v6 = vmul.f32 %v545_v23, %v538_v9  ;;  %v554_v63 = vmul.f32 %v546_v34, %v536_v44  ;;  %v3752_v23 = vld [vmem:[#allocation2 + $0x54] sm:$0xf0]  ;;  %v3496_v9 = vor.u32 %v3774_v33, %v3493_v49 }
 0x145   : > { %v462_v44 = vld [vmem:[%s6288_s3 + $0x78] sm:$0xff] }
 0x146   : > { %v560_v13 = vpack.c.bf16 %v553_v6, %v552_v12  ;;  %v561_v21 = vpack.c.bf16 %v555_v36, %v554_v63  ;;  %v470_v33 = vld [vmem:[%s6288_s3 + $0xb8] sm:$0xff] }
 0x147   : > { %v3756_v1 = vld [vmem:[#allocation2 + $0x74] sm:$0xf0]  ;;  %v3413_v17 = vld [vmem:[#allocation2 + $0x78] sm:$0xf0] }
 0x148   : > { %564 = vst [vmem:[#allocation2] sm:$0xff] %v560_v13  ;;  %v3412_v22 = vor.u32 %v3756_v1, %v3411_v47  ;;  %v3416_v46 = vor.u32 %v3754_v48, %v3413_v17  ;;  %v461_v13 = vld [vmem:[%s6288_s3 + $0x70] sm:$0xff]  ;;  %v460_v1 = vld [vmem:[%s6288_s3 + $0x68] sm:$0xff]  ;;  %v510_v49 = vld [vmem:[%s6288_s3 + $0x1f8] sm:$0xff] }
 0x149   : > { %565 = vst [vmem:[#allocation2 + $0x8] sm:$0xff] %v561_v21  ;;  %v629_v52 = vpop.permute.xlu1 %628 }
 0x14a   : > { %v637_v8 = vsel %vm636_vm5, %v629_v52, %v4599_v41  ;;  %v639_v14 = vsel %vm636_vm5, %v4522_v19, %v629_v52  ;;  %1239 = vmatpush.bf16.msrb.mxu1 %v3412_v22  ;;  %1267 = vmatpush.bf16.msra.mxu3 %v3416_v46  ;;  %v530_v11 = vpop.permute.xlu0 %529  ;;  %v598_v19 = vperm.slane %v4645_v25, 2 }
 0x14b   : > { %v658_v15 = vmul.f32 %v650_v53, %v639_v14  ;;  %v659_v0 = vmul.f32 %v651_v24, %v637_v8  ;;  %v541_v3 = vsel %vm6302_vm8, %v530_v11, %v4624_v35 }
 0x14c   : > { %v556_v57 = vmul.f32 %v544_v39, %v541_v3  ;;  %v3740_v39 = vld [vmem:[%s4143_s19 + $0x4] sm:$0xf0]  ;;  %v458_v3 = vld [vmem:[%s6288_s3 + $0x58] sm:$0xff] }
 0x14d   : > { %v665_v41 = vpack.c.bf16 %v659_v0, %v658_v15  ;;  %v478_v0 = vld [vmem:[%s6288_s3 + $0xf8] sm:$0xff] }
 0x14e   : > { %v562_v32 = vpack.c.bf16 %v557_v56, %v556_v57  ;;  %v477_v56 = vld [vmem:[%s6288_s3 + $0xf0] sm:$0xff] }
 0x14f   : > { %669 = vst [vmem:[#allocation2 + $0x48] sm:$0xff] %v665_v41  ;;  %v3355_v4 = vld [vmem:[#allocation2] sm:$0xf]  ;;  %v3741_v28 = vld [vmem:[#allocation2 + $0x4] sm:$0xf]  ;;  %v457_v57 = vld [vmem:[%s6288_s3 + $0x50] sm:$0xff] }
 0x150   : > { %566 = vst [vmem:[#allocation2 + $0x10] sm:$0xff] %v562_v32  ;;  %v3742_v8 = vld [vmem:[#allocation2 + $0xc] sm:$0xf]  ;;  %v475_v32 = vld [vmem:[%s6288_s3 + $0xe0] sm:$0xff] }
 0x151   : > { %v579_v55 = vpop.permute.xlu1 %578  ;;  %v476_v41 = vld [vmem:[%s6288_s3 + $0xe8] sm:$0xff] }
 0x152   : > { %v586_v35 = vsel %vm6303_vm7, %v579_v55, %v4659_v10  ;;  %v588_v53 = vsel %vm6303_vm7, %v4573_v54, %v579_v55  ;;  %v577_v24 = vpop.permute.xlu0 %576  ;;  %v3347_v10 = vld [vmem:[%s4143_s19] sm:$0xf]  ;;  %v3397_v54 = vld [vmem:[#allocation2 + $0x58] sm:$0xf0] }
 0x153   : > { %v610_v40 = vmul.f32 %v598_v19, %v588_v53  ;;  %v611_v60 = vmul.f32 %v599_v59, %v586_v35  ;;  %v585_v25 = vsel %vm6303_vm7, %v577_v24, %v4670_v42  ;;  %v587_v61 = vsel %vm6303_vm7, %v4640_v16, %v577_v24  ;;  %v454_v55 = vld [vmem:[%s6288_s3 + $0x38] sm:$0xff]  ;;  %v473_v35 = vld [vmem:[%s6288_s3 + $0xd0] sm:$0xff] }
 0x154   : > { %v606_v37 = vmul.f32 %v598_v19, %v587_v61  ;;  %v607_v51 = vmul.f32 %v599_v59, %v585_v25  ;;  %v3348_v12 = vor.u32 %v3740_v39, %v3347_v10  ;;  %v455_v19 = vld [vmem:[%s6288_s3 + $0x40] sm:$0xff]  ;;  %v474_v59 = vld [vmem:[%s6288_s3 + $0xd8] sm:$0xff]  ;;  %v453_v24 = vld [vmem:[%s6288_s3 + $0x30] sm:$0xff] }
 0x155   : > { %v615_v27 = vpack.c.bf16 %v611_v60, %v610_v40  ;;  %v494_v53 = vld [vmem:[%s6288_s3 + $0x178] sm:$0xff]  ;;  %v472_v40 = vld [vmem:[%s6288_s3 + $0xc8] sm:$0xff]  ;;  %v493_v60 = vld [vmem:[%s6288_s3 + $0x170] sm:$0xff] }
 0x156   : > { %v613_v62 = vpack.c.bf16 %v607_v51, %v606_v37  ;;  %v3395_v5 = vld [vmem:[#allocation2 + $0x48] sm:$0xf]  ;;  %v3750_v26 = vld [vmem:[#allocation2 + $0x4c] sm:$0xf]  ;;  %v471_v61 = vld [vmem:[%s6288_s3 + $0xc0] sm:$0xff] }
 0x157   : > { %619 = vst [vmem:[#allocation2 + $0x38] sm:$0xff] %v615_v27  ;;  %v3396_v42 = vor.u32 %v3752_v23, %v3395_v5  ;;  %v3400_v30 = vor.u32 %v3750_v26, %v3397_v54  ;;  %v3743_v31 = vld [vmem:[#allocation2 + $0xc] sm:$0xf0]  ;;  %v3357_v36 = vld [vmem:[#allocation2 + $0x10] sm:$0xf0]  ;;  %v452_v25 = vld [vmem:[%s6288_s3 + $0x28] sm:$0xff] }
 0x158   : > { %617 = vst [vmem:[#allocation2 + $0x28] sm:$0xff] %v613_v62  ;;  %v3356_v16 = vor.u32 %v3743_v31, %v3355_v4  ;;  %v3360_v7 = vor.u32 %v3741_v28, %v3357_v36  ;;  %v492_v37 = vld [vmem:[%s6288_s3 + $0x168] sm:$0xff]  ;;  %v451_v51 = vld [vmem:[%s6288_s3 + $0x20] sm:$0xff]  ;;  %v450_v39 = vld [vmem:[%s6288_s3 + $0x18] sm:$0xff] }
 0x159   : > { %1240 = vmatpush.bf16.msrb.mxu1 %v3396_v42  ;;  %1268 = vmatpush.bf16.msra.mxu3 %v3400_v30  ;;  %v491_v10 = vld [vmem:[%s6288_s3 + $0x160] sm:$0xff]  ;;  %v469_v27 = vld [vmem:[%s6288_s3 + $0xb0] sm:$0xff]  ;;  %v490_v23 = vld [vmem:[%s6288_s3 + $0x158] sm:$0xff] }
 0x15a   : > { %v526_v6 = vpop.permute.xlu0 %525  ;;  %1186 = vmatpush.bf16.msra.mxu0 %v3356_v16  ;;  %1214 = vmatpush.bf16.msra.mxu2 %v3360_v7  ;;  %v509_v54 = vld [vmem:[%s6288_s3 + $0x1f0] sm:$0xff]  ;;  %v468_v62 = vld [vmem:[%s6288_s3 + $0xa8] sm:$0xff]  ;;  %v467_v42 = vld [vmem:[%s6288_s3 + $0xa0] sm:$0xff] }
 0x15b   : > { %v535_v63 = vsel %vm6302_vm8, %v526_v6, %v530_v11  ;;  %v537_v45 = vsel %vm6302_vm8, %v4708_v29, %v526_v6  ;;  %v449_v4 = vld [vmem:[%s6288_s3 + $0x10] sm:$0xff]  ;;  %v508_v26 = vld [vmem:[%s6288_s3 + $0x1e8] sm:$0xff]  ;;  %v507_v31 = vld [vmem:[%s6288_s3 + $0x1e0] sm:$0xff] }
 0x15c   : > { %v558_v21 = vmul.f32 %v546_v34, %v537_v45  ;;  %v559_v47 = vmul.f32 %v547_v18, %v535_v63  ;;  %v3363_v18 = vld [vmem:[#allocation2 + $0x8] sm:$0xf]  ;;  %v489_v5 = vld [vmem:[%s6288_s3 + $0x150] sm:$0xff]  ;;  %v447_v36 = vld [vmem:[%s6288_s3] sm:$0xff] }
 0x15d   : > { %1187 = vmatmul.bf16.vlgmr.msra.gmra.mxu0 %v3348_v12  ;;  %1215 = vmatmul.bf16.vlgmr.msra.gmra.mxu2 %v3348_v12  ;;  %v448_v28 = vld [vmem:[%s6288_s3 + $0x8] sm:$0xff]  ;;  %v466_v16 = vld [vmem:[%s6288_s3 + $0x98] sm:$0xff]  ;;  %v487_v7 = vld [vmem:[%s6288_s3 + $0x140] sm:$0xff] }
 0x15e   : > { %1284 = vmatpush.bf16.msrb.mxu0 %v3496_v9  ;;  %1301 = vmatpush.msrb.mxu2 %v462_v44  ;;  %v563_v48 = vpack.c.bf16 %v559_v47, %v558_v21  ;;  %v3748_v29 = vld [vmem:[#allocation2 + $0x34] sm:$0xf0]  ;;  %v3381_v17 = vld [vmem:[#allocation2 + $0x38] sm:$0xf0]  ;;  %v488_v30 = vld [vmem:[%s6288_s3 + $0x148] sm:$0xff] }
 0x15f   : > { %v3379_v22 = vld [vmem:[#allocation2 + $0x28] sm:$0xf]  ;;  %v3746_v46 = vld [vmem:[#allocation2 + $0x2c] sm:$0xf]  ;;  %v506_v44 = vld [vmem:[%s6288_s3 + $0x1d8] sm:$0xff] }
 0x160   : > { %1302 = vmatpush.msrb.mxu2 %v461_v13  ;;  %567 = vst [vmem:[#allocation2 + $0x18] sm:$0xff] %v563_v48  ;;  %v3380_v50 = vor.u32 %v3748_v29, %v3379_v22  ;;  %v3384_v52 = vor.u32 %v3746_v46, %v3381_v17  ;;  %v465_v9 = vld [vmem:[%s6288_s3 + $0x90] sm:$0xff]  ;;  %v464_v63 = vld [vmem:[%s6288_s3 + $0x88] sm:$0xff]  ;;  %v463_v21 = vld [vmem:[%s6288_s3 + $0x80] sm:$0xff] }
 0x161   : > { %v505_v6 = vld [vmem:[%s6288_s3 + $0x1d0] sm:$0xff]  ;;  %v504_v13 = vld [vmem:[%s6288_s3 + $0x1c8] sm:$0xff]  ;;  %v483_v48 = vld [vmem:[%s6288_s3 + $0x120] sm:$0xff] }
 0x162   : > { %1303 = vmatpush.msrb.mxu2 %v460_v1  ;;  %1241 = vmatpush.bf16.msrb.mxu1 %v3380_v50  ;;  %v485_v45 = vld [vmem:[%s6288_s3 + $0x130] sm:$0xff]  ;;  %v484_v47 = vld [vmem:[%s6288_s3 + $0x128] sm:$0xff]  ;;  %v503_v1 = vld [vmem:[%s6288_s3 + $0x1c0] sm:$0xff] }
 0x163   : > { %1269 = vmatpush.bf16.msra.mxu3 %v3384_v52  ;;  %1359 = vmatpush.msra.mxu0 %v494_v53  ;;  %v502_v29 = vld [vmem:[%s6288_s3 + $0x1b8] sm:$0xff]  ;;  %v501_v22 = vld [vmem:[%s6288_s3 + $0x1b0] sm:$0xff]  ;;  %v500_v52 = vld [vmem:[%s6288_s3 + $0x1a8] sm:$0xff] }
 0x164   : > { %1304 = vmatpush.msrb.mxu2 %v459_v2  ;;  %v482_v17 = vld [vmem:[%s6288_s3 + $0x118] sm:$0xff]  ;;  %v481_v50 = vld [vmem:[%s6288_s3 + $0x110] sm:$0xff]  ;;  %v480_v2 = vld [vmem:[%s6288_s3 + $0x108] sm:$0xff] }
 0x165   : > { %1360 = vmatpush.msra.mxu0 %v493_v60 }
 0x166   : > { %1305 = vmatpush.msrb.mxu2 %v458_v3 }
 0x167   : > { %v3744_v34 = vld [vmem:[#allocation2 + $0x14] sm:$0xf0]  ;;  %v3365_v14 = vld [vmem:[#allocation2 + $0x18] sm:$0xf0]  ;;  %1361 = vmatpush.msra.mxu0 %v492_v37 }
 0x168   : > { %v3364_v11 = vor.u32 %v3744_v34, %v3363_v18  ;;  %v3368_v15 = vor.u32 %v3742_v8, %v3365_v14  ;;  %1306 = vmatpush.msrb.mxu2 %v457_v57  ;;  %v499_v18 = vld [vmem:[%s6288_s3 + $0x1a0] sm:$0xff]  ;;  %v498_v8 = vld [vmem:[%s6288_s3 + $0x198] sm:$0xff]  ;;  %v497_v14 = vld [vmem:[%s6288_s3 + $0x190] sm:$0xff] }
 0x169   : > { %1362 = vmatpush.msra.mxu0 %v491_v10  ;;  %v479_v34 = vld [vmem:[%s6288_s3 + $0x100] sm:$0xff] }
 0x16a   : > { %1242 = vmatpush.bf16.msrb.mxu1 %v3364_v11  ;;  %1270 = vmatpush.bf16.msra.mxu3 %v3368_v15  ;;  %v496_v11 = vld [vmem:[%s6288_s3 + $0x188] sm:$0xff] }
 0x16b   : > { %1363 = vmatpush.msra.mxu0 %v490_v23 }
 0x16d   : > { %1243 = vmatmul.bf16.vlgmr.msrb.gmra.mxu1 %v3348_v12  ;;  %1271 = vmatmul.bf16.vlgmr.msra.gmra.mxu3 %v3348_v12  ;;  %v486_v12 = vld [vmem:[%s6288_s3 + $0x138] sm:$0xff] }
 0x16e   : > { %1330 = vmatpush.msra.mxu1 %v478_v0  ;;  %3500 = vmatmul.msk.bf16.vlgmr.msrb.gmra.mxu0 %vm6300_vm6, %v4582_v38  ;;  %v456_v38 = vld [vmem:[%s6288_s3 + $0x48] sm:$0xff]  ;;  %v495_v0 = vld [vmem:[%s6288_s3 + $0x180] sm:$0xff] }
 0x16f   : > { %1307 = vmatpush.msrb.mxu2 %v456_v38  ;;  %1388 = vmatpush.msrb.mxu3 %v510_v49 }
 0x170   : > { %1331 = vmatpush.msra.mxu1 %v477_v56  ;;  %1364 = vmatpush.msra.mxu0 %v489_v5 }
 0x171   : > { %1308 = vmatpush.msrb.mxu2 %v455_v19  ;;  %1389 = vmatpush.msrb.mxu3 %v509_v54 }
 0x172   : > { %1332 = vmatpush.msra.mxu1 %v476_v41  ;;  %1365 = vmatpush.msra.mxu0 %v488_v30 }
 0x173   : > { %1309 = vmatpush.msrb.mxu2 %v454_v55  ;;  %1390 = vmatpush.msrb.mxu3 %v508_v26 }
 0x174   : > { %1333 = vmatpush.msra.mxu1 %v475_v32  ;;  %1366 = vmatpush.msra.mxu0 %v487_v7 }
 0x175   : > { %1310 = vmatpush.msrb.mxu2 %v453_v24  ;;  %1391 = vmatpush.msrb.mxu3 %v507_v31 }
 0x176   : > { %1334 = vmatpush.msra.mxu1 %v474_v59  ;;  %1367 = vmatpush.msra.mxu0 %v486_v12 }
 0x177   : > { %1311 = vmatpush.msrb.mxu2 %v452_v25  ;;  %1392 = vmatpush.msrb.mxu3 %v506_v44 }
 0x178   : > { %1335 = vmatpush.msra.mxu1 %v473_v35  ;;  %1368 = vmatpush.msra.mxu0 %v485_v45 }
 0x179   : > { %1312 = vmatpush.msrb.mxu2 %v451_v51  ;;  %1393 = vmatpush.msrb.mxu3 %v505_v6 }
 0x17a   : > { %1336 = vmatpush.msra.mxu1 %v472_v40  ;;  %1369 = vmatpush.msra.mxu0 %v484_v47 }
 0x17b   : > { %1313 = vmatpush.msrb.mxu2 %v450_v39  ;;  %1394 = vmatpush.msrb.mxu3 %v504_v13 }
 0x17c   : > { %1337 = vmatpush.msra.mxu1 %v471_v61  ;;  %1370 = vmatpush.msra.mxu0 %v483_v48 }
 0x17d   : > { %1314 = vmatpush.msrb.mxu2 %v449_v4  ;;  %1395 = vmatpush.msrb.mxu3 %v503_v1 }
 0x17e   : > { %1338 = vmatpush.msra.mxu1 %v470_v33  ;;  %1371 = vmatpush.msra.mxu0 %v482_v17 }
 0x17f   : > { %1315 = vmatpush.msrb.mxu2 %v448_v28  ;;  %1396 = vmatpush.msrb.mxu3 %v502_v29 }
 0x180   : > { %1339 = vmatpush.msra.mxu1 %v469_v27  ;;  %1372 = vmatpush.msra.mxu0 %v481_v50 }
 0x181   : > { %1316 = vmatpush.msrb.mxu2 %v447_v36  ;;  %1397 = vmatpush.msrb.mxu3 %v501_v22 }
 0x182   : > { %1340 = vmatpush.msra.mxu1 %v468_v62  ;;  %1373 = vmatpush.msra.mxu0 %v480_v2 }
 0x183   : > { %1398 = vmatpush.msrb.mxu3 %v500_v52 }
 0x184   : > { %1341 = vmatpush.msra.mxu1 %v467_v42  ;;  %1374 = vmatpush.msra.mxu0 %v479_v34 }
 0x185   : > { %1399 = vmatpush.msrb.mxu3 %v499_v18 }
 0x186   : > { %1342 = vmatpush.msra.mxu1 %v466_v16 }
 0x187   : > { %1400 = vmatpush.msrb.mxu3 %v498_v8 }
 0x188   : > { %1343 = vmatpush.msra.mxu1 %v465_v9 }
 0x189   : > { %1401 = vmatpush.msrb.mxu3 %v497_v14 }
 0x18a   : > { %1344 = vmatpush.msra.mxu1 %v464_v63  ;;  %v1202_v3 = vpop.f32.mrf.mxu1 }
 0x18b   : > { %1402 = vmatpush.msrb.mxu3 %v496_v11 }
 0x18c   : > { %1345 = vmatpush.msra.mxu1 %v463_v21 }
 0x18d   : > { %1403 = vmatpush.msrb.mxu3 %v495_v0 }
 0x190   : > { %v1230_v46 = vpop.f32.mrf.mxu3 }
 0x192   : > { %v1204_v55 = vpop.f32.mrf.mxu1 }
 0x198   : > { %v1232_v15 = vpop.f32.mrf.mxu3 }
 0x199   : > { %v984_v19 = vpop.permute.xlu2 %983 }
 0x1a9   : > { %v979_v56 = vpop.permute.xlu1 %978 }
 0x1b8   : > { %v1258_v32 = vpop.f32.mrf.mxu3 }
 0x1c0   : > { %v1260_v25 = vpop.f32.mrf.mxu3 }
 0x1da   : > { %v1188_v57 = vpop.f32.mrf.mxu0 }
 0x1db   : > { %v1189_v41 = vadd.f32 %v1188_v57, %v979_v56 }
 0x1dd   : > { %v4962_v38 = vadd.f32 %v1202_v3, %v1189_v41 }
 0x1df   : > { %1317 = vmatmul.f32.vlgmr.msrb.gmra.mxu2 %v4962_v38  ;;  %v1293_v39 = vmul.f32 %v4962_v38, %v4962_v38 }
 0x1e0   : > { %v1216_v59 = vpop.f32.mrf.mxu2 }
 0x1e1   : > { %v1217_v35 = vadd.f32 %v1216_v59, %v979_v56 }
 0x1e2   : > { %v1190_v53 = vpop.f32.mrf.mxu0 }
 0x1e3   : > { %v4965_v24 = vadd.f32 %v1230_v46, %v1217_v35  ;;  %v1191_v40 = vadd.f32 %v1190_v53, %v984_v19 }
 0x1e5   : > { %v4967_v60 = vadd.f32 %v1204_v55, %v1191_v40  ;;  %1346 = vmatmul.f32.vlgmr.msra.gmra.mxu1 %v4965_v24  ;;  %v1294_v26 = vmul.f32 %v4965_v24, %v4965_v24 }
 0x1e7   : > { %1320 = vmatmul.f32.gmra.mxu2 %v4967_v60  ;;  %v1297_v42 = vmul.f32 %v4967_v60, %v4967_v60 }
 0x1e8   : > { %v1218_v61 = vpop.f32.mrf.mxu2 }
 0x1e9   : > { %v1219_v37 = vadd.f32 %v1218_v61, %v984_v19  ;;  %v511_v61 = vld [vmem:[%s6292_s7] sm:$0xff] }
 0x1ea   : > { %v1244_v51 = vpop.f32.mrf.mxu1 }
 0x1eb   : > { %v4971_v33 = vadd.f32 %v1232_v15, %v1219_v37  ;;  %v1245_v49 = vadd.f32 %v1244_v51, %v979_v56  ;;  %v1286_v27 = vpop.f32.mrf.mxu0  ;;  %v512_v37 = vld [vmem:[%s6292_s7 + $0x8] sm:$0xff] }
 0x1ed   : > { %v4973_v10 = vadd.f32 %v1258_v32, %v1245_v49  ;;  %1349 = vmatmul.f32.gmra.mxu1 %v4971_v33  ;;  %v1298_v7 = vmul.f32 %v4971_v33, %v4971_v33  ;;  %v4061_v49 = vmov 1  }
 0x1ee   : > { %3865 = vset.pattern.permute.xlu1 %v4061_v49  ;;  %3864 = vset.pattern.permute.xlu0 %v4061_v49 }
 0x1ef   : > { %1323 = vmatmul.f32.gmra.mxu2 %v1293_v39  ;;  %1375 = vmatmul.f32.vlgmr.msra.gmra.mxu0 %v4973_v10  ;;  %v1295_v44 = vmul.f32 %v4973_v10, %v4973_v10 }
 0x1f0   : > { %v1272_v23 = vpop.f32.mrf.mxu3 }
 0x1f1   : > { %v1273_v54 = vadd.f32 %v1272_v23, %v979_v56 }
 0x1f2   : > { %v1246_v4 = vpop.f32.mrf.mxu1 }
 0x1f3   : > { %v4979_v62 = vadd.f32 %v1286_v27, %v1273_v54  ;;  %v1247_v5 = vadd.f32 %v1246_v4, %v984_v19  ;;  %v1288_v36 = vpop.f32.mrf.mxu0 }
 0x1f5   : > { %v4983_v28 = vadd.f32 %v1260_v25, %v1247_v5  ;;  %1352 = vmatmul.f32.gmra.mxu1 %v1294_v26  ;;  %1404 = vmatmul.f32.vlgmr.msrb.gmra.mxu3 %v4979_v62  ;;  %v1296_v9 = vmul.f32 %v4979_v62, %v4979_v62  ;;  %v4062_v26 = vmov 2  }
 0x1f7   : > { %1326 = vmatmul.f32.gmra.mxu2 %v1297_v42  ;;  %1378 = vmatmul.f32.gmra.mxu0 %v4983_v28  ;;  %v1299_v12 = vmul.f32 %v4983_v28, %v4983_v28 }
 0x1f8   : > { %v1274_v30 = vpop.f32.mrf.mxu3 }
 0x1f9   : > { %v1275_v31 = vadd.f32 %v1274_v30, %v984_v19 }
 0x1fb   : > { %v4989_v16 = vadd.f32 %v1288_v36, %v1275_v31 }
 0x1fd   : > { %1355 = vmatmul.f32.gmra.mxu1 %v1298_v7  ;;  %1407 = vmatmul.f32.gmra.mxu3 %v4989_v16  ;;  %v1300_v6 = vmul.f32 %v4989_v16, %v4989_v16 }
 0x1ff   : > { %1381 = vmatmul.f32.gmra.mxu0 %v1295_v44  ;;  %v5032_v44 = vld [vmem:[%s6287_s2 + $0x20] sm:$0x6] }
 0x205   : > { %1410 = vmatmul.f32.gmra.mxu3 %v1296_v9 }
 0x207   : > { %1384 = vmatmul.f32.gmra.mxu0 %v1299_v12  ;;  %v5044_v12 = vld [vmem:[%s6287_s2 + $0x30] sm:$0x6] }
 0x20d   : > { %1413 = vmatmul.f32.gmra.mxu3 %v1300_v6  ;;  %v5049_v6 = vld [vmem:[%s6287_s2 + $0x38] sm:$0x6] }
 0x262   : > { %v1318_v63 = vpop.f32.mrf.mxu2  ;;  %v1347_v45 = vpop.f32.mrf.mxu1 }
 0x263   : > { %v1348_v13 = vadd.f32 %v1347_v45, %v1318_v63  ;;  %v6304_v45 = vrot.slane %v5044_v12, 1 }
 0x26a   : > { %v1321_v21 = vpop.f32.mrf.mxu2  ;;  %v1350_v47 = vpop.f32.mrf.mxu1 }
 0x26b   : > { %v1351_v1 = vadd.f32 %v1350_v47, %v1321_v21 }
 0x26c   : > { %v1376_v48 = vpop.f32.mrf.mxu0 }
 0x26d   : > { %v1377_v29 = vadd.f32 %v1376_v48, %v1348_v13  ;;  %v6307_v13 = vrot.slane %v5049_v6, 1 }
 0x26f   : > { %3524 = vmatpush.msk.msra.mxu3 %vm6298_vm10, %v6307_v13 }
 0x272   : > { %v1324_v52 = vpop.f32.mrf.mxu2  ;;  %v1353_v2 = vpop.f32.mrf.mxu1 }
 0x273   : > { %v1354_v3 = vadd.f32 %v1353_v2, %v1324_v52 }
 0x274   : > { %v1379_v17 = vpop.f32.mrf.mxu0 }
 0x275   : > { %v1380_v22 = vadd.f32 %v1379_v17, %v1351_v1 }
 0x278   : > { %v1405_v46 = vpop.f32.mrf.mxu3 }
 0x279   : > { %v1406_v50 = vadd.f32 %v1405_v46, %v1377_v29 }
 0x27a   : > { %v1327_v11 = vpop.f32.mrf.mxu2  ;;  %v1356_v15 = vpop.f32.mrf.mxu1 }
 0x27b   : > { %v1357_v56 = vadd.f32 %v1356_v15, %v1327_v11 }
 0x27c   : > { %v1382_v8 = vpop.f32.mrf.mxu0 }
 0x27d   : > { %v1383_v57 = vadd.f32 %v1382_v8, %v1354_v3  ;;  %v1292_v3 = vld [vmem:[%s4133_s13 + $0x8] sm:$0xff] }
 0x280   : > { %v1408_v18 = vpop.f32.mrf.mxu3 }
 0x281   : > { %v1409_v34 = vadd.f32 %v1408_v18, %v1380_v22 }
 0x284   : > { %v1385_v0 = vpop.f32.mrf.mxu0 }
 0x285   : > { %v1386_v41 = vadd.f32 %v1385_v0, %v1357_v56 }
 0x288   : > { %v1411_v14 = vpop.f32.mrf.mxu3 }
 0x289   : > { %v1412_v19 = vadd.f32 %v1411_v14, %v1383_v57 }
 0x290   : > { %v1414_v32 = vpop.f32.mrf.mxu3 }
 0x291   : > { %v1415_v59 = vadd.f32 %v1414_v32, %v1386_v41 }
 0x293   : > { %v3859_v55 = vpack.i.bf16 %v1412_v19, %v1415_v59 }
 0x295   : > { %3860 = vrot.lane.b32.xlu0 %v3859_v55, %s4060_s20 }
 0x29d   : > { %1494 = vperm.xlu0 %3864, %v4713_v43  }
 0x2a5   : > { %3867 = vset.pattern.permute.xlu0 %v4062_v26 }
 0x2a6   : > { %1518 = vperm.xlu0 %3867, %v4740_v58  }
 0x2ae   : > { %1533 = vrot.lane.b32.xlu0 %v1292_v3, %s4060_s20 }
 0x307   : > { %v3861_v35 = vpop.permute.xlu0 %3860 }
 0x308   : > { %v3863_v53 = vunpack.i.h.bf16 %v3861_v35  ;;  %v3862_v40 = vunpack.i.l.bf16 %v3861_v35  ;;  %v1291_v35 = vld [vmem:[%s4133_s13] sm:$0xff]  ;;  %s6324_s13 = smov 15  }
 0x30a   : > { %v1427_v25 = vsel %vm6299_vm9, %v1409_v34, %v3862_v40  ;;  %v1426_v51 = vsel %vm6299_vm9, %v1406_v50, %v3863_v53 }
 0x30b   : > { %1448 = vmatpush.msrb.mxu0 %v1427_v25  ;;  %3815 = vmatpush.msra.mxu2 %v1427_v25 }
 0x30d   : > { %1449 = vmatpush.msrb.mxu0 %v1426_v51  ;;  %3816 = vmatpush.msra.mxu2 %v1426_v51 }
 0x30e   : > { %3501 = vmatmul.msk.f32.vlgmr.msrb.gmra.mxu0 %vm6300_vm6, %v511_v61  ;;  %3502 = vmatmul.msk.f32.vlgmr.msra.gmra.mxu2 %vm6300_vm6, %v512_v37 }
 0x30f   : > { %3517 = vmatpush.msk.msrb.mxu2 %vm6298_vm10, %v6304_v45  ;;  %v1495_v52 = vpop.permute.xlu0 %1494 }
 0x318   : > { %v1519_v59 = vpop.permute.xlu0 %1518 }
 0x320   : > { %v1534_v25 = vpop.permute.xlu0 %1533 }
 0x321   : > { %1541 = vrot.lane.b32.xlu0 %v1534_v25, %s4063_s11 }
 0x38b   : > { %v1451_v39 = vpop.f32.mrf.mxu0 }
 0x38c   : > { %v5014_v27 = vmul.f32 0.001953125, %v1451_v39 }
 0x38e   : > { %v1459_v23 = vmul.f32 %v5014_v27, %v5014_v27 }
 0x390   : > { %1463 = vrot.lane.b32.xlu1 %v1459_v23, %s4060_s20 }
 0x391   : > { %v1454_v54 = vpop.f32.mrf.mxu2 }
 0x392   : > { %v5019_v4 = vmul.f32 0.001953125, %v1454_v54 }
 0x394   : > { %v1460_v5 = vmul.f32 %v5019_v4, %v5019_v4 }
 0x396   : > { %1465 = vrot.lane.b32.xlu2 %v1460_v5, %s4060_s20 }
 0x398   : > { %1498 = vperm.xlu1 %3865, %v4740_v58   ;;  %v6306_v58 = vrot.slane %v5032_v44, 1 }
 0x39a   : > { %3503 = vmatpush.msk.msrb.mxu1 %vm6298_vm10, %v6306_v58 }
 0x3a0   : > { %3866 = vset.pattern.permute.xlu1 %v4062_v26 }
 0x3a1   : > { %1514 = vperm.xlu1 %3866, %v4713_v43   ;;  %v5037_v43 = vld [vmem:[%s6287_s2 + $0x28] sm:$0x6] }
 0x3a2   : > { %v6305_v9 = vrot.slane %v5037_v43, 1 }
 0x3a4   : > { %3510 = vmatpush.msk.msra.mxu0 %vm6298_vm10, %v6305_v9 }
 0x3f0   : > { %v1466_v42 = vpop.permute.xlu2 %1465 }
 0x3f1   : > { %v1470_v30 = vsub.f32 %v5019_v4, %v1466_v42 }
 0x3f3   : > { %v1472_v31 = vadd.f32 1e-05, %v1470_v30 }
 0x3f5   : > { %3879 = vrsqrt.f32 %v1472_v31  ;;  %vm1489_vm15 = vweird.f32 %v1472_v31 }
 0x3fb   : > { %v3880_v21 = vpop.eup %3879 }
 0x3fc   : > { %v1484_v47 = vmul.f32 %v3880_v21, %v1472_v31  ;;  %vm1490_vm14 = vweird.f32 %v3880_v21 }
 0x3fd   : > { %vm1491_vm10 = vmor %vm1489_vm15, %vm1490_vm14 }
 0x3fe   : > { %v1485_v29 = vmul.f32 %v3880_v21, %v1484_v47 }
 0x400   : > { %v1486_v46 = vmul.f32 0.5, %v1485_v29 }
 0x402   : > { %v1464_v36 = vpop.permute.xlu1 %1463  ;;  %v1487_v18 = vsub.f32 1.5, %v1486_v46 }
 0x403   : > { %v1469_v7 = vsub.f32 %v5014_v27, %v1464_v36 }
 0x404   : > { %v1488_v14 = vmul.f32 %v3880_v21, %v1487_v18 }
 0x405   : > { %v1471_v63 = vadd.f32 1e-05, %v1469_v7 }
 0x406   : > { %v1492_v15 = vsel %vm1491_vm10, %v3880_v21, %v1488_v14 }
 0x407   : > { %3881 = vrsqrt.f32 %v1471_v63  ;;  %vm1479_vm12 = vweird.f32 %v1471_v63 }
 0x40a   : > { %v1499_v11 = vpop.permute.xlu1 %1498 }
 0x40b   : > { %v1502_v0 = vmul.f32 %v1499_v11, %v1492_v15 }
 0x40d   : > { %v3882_v1 = vpop.eup %3881 }
 0x40e   : > { %v1474_v48 = vmul.f32 %v3882_v1, %v1471_v63  ;;  %vm1480_vm11 = vweird.f32 %v3882_v1 }
 0x40f   : > { %vm1481_vm13 = vmor %vm1479_vm12, %vm1480_vm11 }
 0x410   : > { %v1475_v17 = vmul.f32 %v3882_v1, %v1474_v48 }
 0x412   : > { %v1476_v22 = vmul.f32 0.5, %v1475_v17 }
 0x413   : > { %v1515_v57 = vpop.permute.xlu1 %1514 }
 0x414   : > { %v1477_v50 = vsub.f32 1.5, %v1476_v22 }
 0x416   : > { %v1478_v2 = vmul.f32 %v3882_v1, %v1477_v50 }
 0x418   : > { %v1482_v34 = vsel %vm1481_vm13, %v3882_v1, %v1478_v2 }
 0x419   : > { %v1501_v8 = vmul.f32 %v1495_v52, %v1482_v34 }
 0x41b   : > { %1505 = vrot.lane.b32.xlu2 %v1501_v8, %s4063_s11 }
 0x423   : > { %1507 = vrot.lane.b32.xlu2 %v1502_v0, %s4063_s11 }
 0x475   : > { %v1506_v56 = vpop.permute.xlu2 %1505 }
 0x476   : > { %3504 = vmatmul.msk.f32.vlgmr.msrb.gmra.mxu1 %vm6299_vm9, %v1506_v56  ;;  %3511 = vmatmul.msk.f32.vlgmr.msra.gmra.mxu0 %vm6299_vm9, %v1506_v56  ;;  %v1511_v41 = vmul.f32 %v1506_v56, %v5014_v27  ;;  %v1542_v27 = vpop.permute.xlu0 %1541 }
 0x477   : > { %3518 = vmatmul.msk.f32.vlgmr.msrb.gmra.mxu2 %vm6299_vm9, %v1506_v56  ;;  %3525 = vmatmul.msk.f32.vlgmr.msra.gmra.mxu3 %vm6299_vm9, %v1506_v56 }
 0x478   : > { %v1521_v32 = vsub.f32 %v1515_v57, %v1511_v41 }
 0x47a   : > { %1525 = vrot.lane.b32.xlu1 %v1521_v32, %s4060_s20 }
 0x47d   : > { %v1508_v19 = vpop.permute.xlu2 %1507 }
 0x47e   : > { %3505 = vmatmul.msk.f32.gmra.mxu1 %vm6299_vm9, %v1508_v19  ;;  %3512 = vmatmul.msk.f32.gmra.mxu0 %vm6299_vm9, %v1508_v19  ;;  %v1512_v55 = vmul.f32 %v1508_v19, %v5019_v4 }
 0x47f   : > { %3519 = vmatmul.msk.f32.gmra.mxu2 %vm6299_vm9, %v1508_v19  ;;  %3526 = vmatmul.msk.f32.gmra.mxu3 %vm6299_vm9, %v1508_v19 }
 0x480   : > { %v1522_v53 = vsub.f32 %v1519_v59, %v1512_v55 }
 0x482   : > { %1527 = vrot.lane.b32.xlu2 %v1522_v53, %s4060_s20  ;;  %1531 = vrot.lane.b32.xlu1 %v1291_v35, %s4060_s20 }
 0x4dc   : > { %v1528_v40 = vpop.permute.xlu2 %1527 }
 0x4dd   : > { %1537 = vrot.lane.b32.xlu1 %v1528_v40, %s4063_s11 }
 0x4ec   : > { %v1526_v61 = vpop.permute.xlu1 %1525 }
 0x4ed   : > { %1535 = vrot.lane.b32.xlu2 %v1526_v61, %s4063_s11 }
 0x4f3   : > { %v1589_v23 = vpop.f32.mrf.mxu1  ;;  %v1624_v54 = vpop.f32.mrf.mxu0 }
 0x4f4   : > { %v1532_v37 = vpop.permute.xlu1 %1531  ;;  %v1712_v30 = vmul.f32 %v1589_v23, %v4962_v38  ;;  %v1713_v31 = vmul.f32 %v1624_v54, %v4965_v24 }
 0x4f5   : > { %1539 = vrot.lane.b32.xlu2 %v1532_v37, %s4063_s11 }
 0x4fa   : > { %v1659_v4 = vpop.f32.mrf.mxu2  ;;  %v1694_v5 = vpop.f32.mrf.mxu3 }
 0x4fb   : > { %v1592_v26 = vpop.f32.mrf.mxu1  ;;  %v1627_v42 = vpop.f32.mrf.mxu0  ;;  %v1714_v17 = vmul.f32 %v1659_v4, %v4973_v10  ;;  %v1715_v22 = vmul.f32 %v1694_v5, %v4979_v62 }
 0x4fc   : > { %v1716_v38 = vmul.f32 %v1592_v26, %v4967_v60  ;;  %v1717_v24 = vmul.f32 %v1627_v42, %v4971_v33 }
 0x502   : > { %v1662_v36 = vpop.f32.mrf.mxu2  ;;  %v1697_v7 = vpop.f32.mrf.mxu3 }
 0x503   : > { %v1718_v56 = vmul.f32 %v1662_v36, %v4983_v28  ;;  %v1719_v57 = vmul.f32 %v1697_v7, %v4989_v16 }
 0x547   : > { %v1536_v51 = vpop.permute.xlu2 %1535 }
 0x548   : > { %3506 = vmatmul.msk.f32.gmra.mxu1 %vm6299_vm9, %v1536_v51  ;;  %3513 = vmatmul.msk.f32.gmra.mxu0 %vm6299_vm9, %v1536_v51 }
 0x549   : > { %3520 = vmatmul.msk.f32.gmra.mxu2 %vm6299_vm9, %v1536_v51  ;;  %3527 = vmatmul.msk.f32.gmra.mxu3 %vm6299_vm9, %v1536_v51 }
 0x54f   : > { %v1538_v49 = vpop.permute.xlu1 %1537  ;;  %v1540_v39 = vpop.permute.xlu2 %1539 }
 0x550   : > { %3507 = vmatmul.msk.f32.gmra.mxu1 %vm6299_vm9, %v1538_v49  ;;  %3514 = vmatmul.msk.f32.gmra.mxu0 %vm6299_vm9, %v1538_v49 }
 0x551   : > { %3521 = vmatmul.msk.f32.gmra.mxu2 %vm6299_vm9, %v1538_v49  ;;  %3528 = vmatmul.msk.f32.gmra.mxu3 %vm6299_vm9, %v1538_v49 }
 0x558   : > { %3508 = vmatmul.msk.f32.gmra.mxu1 %vm6299_vm9, %v1540_v39  ;;  %3515 = vmatmul.msk.f32.gmra.mxu0 %vm6299_vm9, %v1540_v39 }
 0x559   : > { %3522 = vmatmul.msk.f32.gmra.mxu2 %vm6299_vm9, %v1540_v39  ;;  %3529 = vmatmul.msk.f32.gmra.mxu3 %vm6299_vm9, %v1540_v39 }
 0x560   : > { %3509 = vmatmul.msk.f32.gmra.mxu1 %vm6299_vm9, %v1542_v27  ;;  %3516 = vmatmul.msk.f32.gmra.mxu0 %vm6299_vm9, %v1542_v27 }
 0x561   : > { %3523 = vmatmul.msk.f32.gmra.mxu2 %vm6299_vm9, %v1542_v27  ;;  %3530 = vmatmul.msk.f32.gmra.mxu3 %vm6299_vm9, %v1542_v27 }
 0x5c5   : > { %v1595_v63 = vpop.f32.mrf.mxu1  ;;  %v1630_v21 = vpop.f32.mrf.mxu0 }
 0x5c6   : > { %v5105_v47 = vadd.f32 %v1712_v30, %v1595_v63  ;;  %v5107_v1 = vadd.f32 %v1713_v31, %v1630_v21 }
 0x5c8   : > { %v3531_v48 = vmul.f32 -1.442695, %v5105_v47  ;;  %v3532_v29 = vmul.f32 -1.442695, %v5107_v1 }
 0x5ca   : > { %3883 = vpow2.f32 %v3531_v48 }
 0x5cb   : > { %3885 = vpow2.f32 %v3532_v29 }
 0x5cc   : > { %v1665_v46 = vpop.f32.mrf.mxu2  ;;  %v1700_v50 = vpop.f32.mrf.mxu3 }
 0x5cd   : > { %v5115_v52 = vadd.f32 %v1714_v17, %v1665_v46  ;;  %v5117_v2 = vadd.f32 %v1715_v22, %v1700_v50  ;;  %v1598_v18 = vpop.f32.mrf.mxu1  ;;  %v1633_v34 = vpop.f32.mrf.mxu0 }
 0x5ce   : > { %v5119_v8 = vadd.f32 %v1716_v38, %v1598_v18  ;;  %v5121_v14 = vadd.f32 %v1717_v24, %v1633_v34 }
 0x5cf   : > { %v3533_v10 = vmul.f32 -1.442695, %v5115_v52  ;;  %v3534_v62 = vmul.f32 -1.442695, %v5117_v2 }
 0x5d0   : > { %v3884_v11 = vpop.eup %3883  ;;  %v3535_v33 = vmul.f32 -1.442695, %v5119_v8  ;;  %v3536_v3 = vmul.f32 -1.442695, %v5121_v14 }
 0x5d1   : > { %v3886_v60 = vpop.eup %3885  ;;  %v5125_v15 = vadd.f32 1.0, %v3884_v11  ;;  %3887 = vpow2.f32 %v3533_v10 }
 0x5d2   : > { %v5128_v0 = vadd.f32 1.0, %v3886_v60  ;;  %3889 = vpow2.f32 %v3534_v62 }
 0x5d3   : > { %3891 = vrcp.f32 %v5125_v15  ;;  %v1769_v55 = vand.u32 2147483647, %v5125_v15  ;;  %v1771_v28 = vand.u32 2147483648, %v5125_v15  ;;  %vm1765_vm10 = vweird.f32 %v5125_v15 }
 0x5d4   : > { %3893 = vrcp.f32 %v5128_v0  ;;  %v1668_v41 = vpop.f32.mrf.mxu2  ;;  %v1703_v32 = vpop.f32.mrf.mxu3  ;;  %v1784_v16 = vand.u32 2147483647, %v5128_v0  ;;  %v1786_v49 = vand.u32 2147483648, %v5128_v0  ;;  %vm1780_vm12 = vweird.f32 %v5128_v0 }
 0x5d5   : > { %3895 = vpow2.f32 %v3535_v33  ;;  %v5135_v19 = vadd.f32 %v1718_v56, %v1668_v41  ;;  %v5137_v59 = vadd.f32 %v1719_v57, %v1703_v32  ;;  %vm5152_vm11 = vcmp.eq.f32.partialorder %v1769_v55, 8.507059e+37 }
 0x5d6   : > { %3897 = vpow2.f32 %v3536_v3  ;;  %v1772_v4 = vor.u32 1.1754944e-38, %v1771_v28  ;;  %vm5159_vm13 = vcmp.eq.f32.partialorder %v1784_v16, 8.507059e+37  ;;  %v1787_v21 = vor.u32 1.1754944e-38, %v1786_v49 }
 0x5d7   : > { %v3888_v35 = vpop.eup %3887  ;;  %v3537_v53 = vmul.f32 -1.442695, %v5135_v19  ;;  %v3538_v61 = vmul.f32 -1.442695, %v5137_v59 }
 0x5d8   : > { %v3890_v40 = vpop.eup %3889  ;;  %v5143_v25 = vadd.f32 1.0, %v3888_v35  ;;  %v1601_v35 = vpop.f32.mrf.mxu1 }
 0x5d9   : > { %v3892_v37 = vpop.eup %3891  ;;  %v5146_v51 = vadd.f32 1.0, %v3890_v40  ;;  %3899 = vpow2.f32 %v3537_v53 }
 0x5da   : > { %v3894_v39 = vpop.eup %3893  ;;  %3901 = vrcp.f32 %v5143_v25  ;;  %v1761_v27 = vmul.f32 %v3892_v37, %v5125_v15  ;;  %v1801_v36 = vand.u32 2147483648, %v5143_v25  ;;  %v1799_v48 = vand.u32 2147483647, %v5143_v25 }
 0x5db   : > { %v3896_v54 = vpop.eup %3895  ;;  %3903 = vrcp.f32 %v5146_v51  ;;  %v1776_v5 = vmul.f32 %v3894_v39, %v5128_v0  ;;  %vm1766_vm14 = vweird.f32 %v3892_v37  ;;  %v1814_v17 = vand.u32 2147483647, %v5146_v51 }
 0x5dc   : > { %v3898_v42 = vpop.eup %3897  ;;  %v5163_v30 = vadd.f32 1.0, %v3896_v54  ;;  %3905 = vpow2.f32 %v3538_v61  ;;  %v1762_v31 = vsub.f32 1.0, %v1761_v27  ;;  %vm1781_vm15 = vweird.f32 %v3894_v39  ;;  %vm5181_vm2 = vmor %vm1765_vm10, %vm1766_vm14  ;;  %v1636_v61 = vpop.f32.mrf.mxu0 }
 0x5dd   : > { %v5166_v7 = vadd.f32 1.0, %v3898_v42  ;;  %v1777_v63 = vsub.f32 1.0, %v1776_v5  ;;  %vm1795_vm9 = vweird.f32 %v5143_v25  ;;  %v1816_v24 = vand.u32 2147483648, %v5146_v51  ;;  %vm1782_vm10 = vmor %vm1780_vm12, %vm1781_vm15 }
 0x5de   : > { %3907 = vrcp.f32 %v5163_v30  ;;  %v1763_v29 = vmul.f32 %v3892_v37, %v1762_v31  ;;  %v1802_v34 = vor.u32 1.1754944e-38, %v1801_v36  ;;  %vm1810_vm6 = vweird.f32 %v5146_v51 }
 0x5df   : > { %v3900_v22 = vpop.eup %3899  ;;  %3909 = vrcp.f32 %v5166_v7  ;;  %v1778_v38 = vmul.f32 %v3894_v39, %v1777_v63  ;;  %vm5186_vm7 = vcmp.eq.f32.partialorder %v1799_v48, 8.507059e+37  ;;  %v1829_v3 = vand.u32 2147483647, %v5163_v30 }
 0x5e0   : > { %v3902_v46 = vpop.eup %3901  ;;  %v5174_v50 = vadd.f32 1.0, %v3900_v22  ;;  %v1764_v18 = vadd.f32 %v3892_v37, %v1763_v29  ;;  %vm5199_vm14 = vcmp.eq.f32.partialorder %v1814_v17, 8.507059e+37  ;;  %v1817_v32 = vor.u32 1.1754944e-38, %v1816_v24 }
 0x5e1   : > { %v5177_v10 = vpop.eup %3903  ;;  %v1779_v11 = vadd.f32 %v3894_v39, %v1778_v38  ;;  %v1791_v60 = vmul.f32 %v3902_v46, %v5143_v25  ;;  %vm1796_vm8 = vweird.f32 %v3902_v46  ;;  %v1831_v26 = vand.u32 2147483648, %v5163_v30  ;;  %v1671_v38 = vpop.f32.mrf.mxu2 }
 0x5e2   : > { %v3906_v56 = vpop.eup %3905  ;;  %3911 = vrcp.f32 %v5174_v50  ;;  %v1768_v15 = vsel %vm5181_vm2, %v3892_v37, %v1764_v18  ;;  %v1806_v57 = vmul.f32 %v5177_v10, %v5146_v51  ;;  %vm1825_vm2 = vweird.f32 %v5163_v30 }
 0x5e3   : > { %v5203_v55 = vadd.f32 1.0, %v3906_v56  ;;  %v1773_v53 = vsel %vm5152_vm11, %v1772_v4, %v1768_v15  ;;  %v1783_v28 = vsel %vm1782_vm10, %v3894_v39, %v1779_v11  ;;  %v1792_v16 = vsub.f32 1.0, %v1791_v60  ;;  %v1706_v60 = vpop.f32.mrf.mxu3 }
 0x5e4   : > { %v3908_v0 = vpop.eup %3907  ;;  %v1880_v40 = vmul.f32 %v1773_v53, %v5105_v47  ;;  %v1788_v37 = vsel %vm5159_vm13, %v1787_v21, %v1783_v28  ;;  %v1807_v49 = vsub.f32 1.0, %v1806_v57  ;;  %vm1811_vm12 = vweird.f32 %v5177_v10  ;;  %vm1797_vm13 = vmor %vm1795_vm9, %vm1796_vm8 }
 0x5e5   : > { %v3910_v27 = vpop.eup %3909  ;;  %v1881_v54 = vmul.f32 %v1788_v37, %v5107_v1  ;;  %v1793_v5 = vmul.f32 %v3902_v46, %v1792_v16  ;;  %v1821_v23 = vmul.f32 %v3908_v0, %v5163_v30  ;;  %vm5214_vm11 = vcmp.eq.f32.partialorder %v1829_v3, 8.507059e+37  ;;  %vm1812_vm8 = vmor %vm1810_vm6, %vm1811_vm12 }
 0x5e6   : > { %3913 = vrcp.f32 %v5203_v55  ;;  %v5219_v47 = vadd.f32 %v1880_v40, %v1601_v35  ;;  %v1808_v4 = vmul.f32 %v5177_v10, %v1807_v49  ;;  %v1836_v1 = vmul.f32 %v3910_v27, %v5166_v7 }
 0x5e7   : > { %v5223_v42 = vadd.f32 %v1881_v54, %v1636_v61  ;;  %v1794_v31 = vadd.f32 %v3902_v46, %v1793_v5  ;;  %v1822_v36 = vsub.f32 1.0, %v1821_v23  ;;  %vm1826_vm15 = vweird.f32 %v3908_v0  ;;  %v1639_v61 = vpop.f32.mrf.mxu0 }
 0x5e8   : > { %v5226_v63 = vpop.eup %3911  ;;  %2206 = vrot.lane.b32.xlu1 %v5219_v47, %s4051_s10  ;;  %v1809_v21 = vadd.f32 %v5177_v10, %v1808_v4  ;;  %v1832_v48 = vor.u32 1.1754944e-38, %v1831_v26  ;;  %vm1841_vm10 = vweird.f32 %v3910_v27  ;;  %v1837_v22 = vsub.f32 1.0, %v1836_v1  ;;  %vm1827_vm6 = vmor %vm1825_vm2, %vm1826_vm15 }
 0x5e9   : > { %v2098_v29 = vpack.c.bf16 %v5223_v42, %v5219_v47  ;;  %1902 = vrot.lane.b32.xlu2 %v5223_v42, %s4058_s26  ;;  %2210 = vrot.lane.b32.xlu0 %v5223_v42, %s4051_s10  ;;  %v1798_v17 = vsel %vm1797_vm13, %v3902_v46, %v1794_v31  ;;  %v1823_v25 = vmul.f32 %v3908_v0, %v1822_v36  ;;  %v1844_v62 = vand.u32 2147483647, %v5166_v7 }
 0x5ea   : > { %v1803_v24 = vsel %vm5186_vm7, %v1802_v34, %v1798_v17  ;;  %v1813_v18 = vsel %vm1812_vm8, %v5177_v10, %v1809_v21  ;;  %v1846_v11 = vand.u32 2147483648, %v5166_v7  ;;  %v1838_v56 = vmul.f32 %v3910_v27, %v1837_v22  ;;  %v5417_v34 = vld [vmem:[%s6287_s2 + $0x6] ss:$8 sm:$0xf] }
 0x5eb   : > { %2102 = vst [vmem:[#allocation2 + $0x80] sm:$0xff] %v2098_v29  ;;  %v1882_v46 = vmul.f32 %v1803_v24, %v5115_v52  ;;  %v1818_v51 = vsel %vm5199_vm14, %v1817_v32, %v1813_v18  ;;  %v1824_v3 = vadd.f32 %v3908_v0, %v1823_v25  ;;  %vm1840_vm7 = vweird.f32 %v5166_v7  ;;  %v1674_v29 = vpop.f32.mrf.mxu2  ;;  %v5390_v18 = vld [vmem:[%s6287_s2 + $0x7] ss:$8 sm:$0xf] }
 0x5ec   : > { %v3914_v15 = vpop.eup %3913  ;;  %v1883_v57 = vmul.f32 %v1818_v51, %v5117_v2  ;;  %vm5257_vm9 = vcmp.eq.f32.partialorder %v1844_v62, 8.507059e+37  ;;  %v1851_v52 = vmul.f32 %v5226_v63, %v5174_v50  ;;  %v1839_v41 = vadd.f32 %v3910_v27, %v1838_v56  ;;  %v1604_v2 = vpop.f32.mrf.mxu1  ;;  %vm1842_vm14 = vmor %vm1840_vm7, %vm1841_vm10 }
 0x5ed   : > { %v5263_v10 = vadd.f32 %v1882_v46, %v1671_v38  ;;  %v1828_v33 = vsel %vm1827_vm6, %v3908_v0, %v1824_v3  ;;  %v1847_v32 = vor.u32 1.1754944e-38, %v1846_v11  ;;  %vm1856_vm2 = vweird.f32 %v5226_v63 }
 0x5ee   : > { %v5265_v35 = vadd.f32 %v1883_v57, %v1706_v60  ;;  %v1833_v30 = vsel %vm5214_vm11, %v1832_v48, %v1828_v33  ;;  %v1852_v7 = vsub.f32 1.0, %v1851_v52  ;;  %v1843_v28 = vsel %vm1842_vm14, %v3910_v27, %v1839_v41 }
 0x5ef   : > { %v1884_v53 = vmul.f32 %v1833_v30, %v5119_v8  ;;  %v1859_v16 = vand.u32 2147483647, %v5174_v50  ;;  %v1861_v0 = vand.u32 2147483648, %v5174_v50  ;;  %v1848_v37 = vsel %vm5257_vm9, %v1847_v32, %v1843_v28 }
 0x5f0   : > { %v2099_v40 = vpack.c.bf16 %v5265_v35, %v5263_v10  ;;  %2156 = vrot.lane.b32.xlu1 %v5219_v47, %s4052_s23  ;;  %v1853_v49 = vmul.f32 %v5226_v63, %v1852_v7  ;;  %v1866_v54 = vmul.f32 %v3914_v15, %v5203_v55  ;;  %v1885_v27 = vmul.f32 %v1848_v37, %v5121_v14 }
 0x5f1   : > { %v5282_v8 = vadd.f32 %v1884_v53, %v1604_v2  ;;  %2160 = vrot.lane.b32.xlu0 %v5223_v42, %s4052_s23  ;;  %2256 = vrot.lane.b32.xlu2 %v5219_v47, %s4053_s24  ;;  %vm1855_vm12 = vweird.f32 %v5174_v50  ;;  %vm1860_vm13 = vcmp.eq.f32.partialorder %v1859_v16, 8.507059e+37  ;;  %v1862_v4 = vor.u32 1.1754944e-38, %v1861_v0  ;;  %v5444_v0 = vld [vmem:[%s6287_s2 + $0x5] ss:$8 sm:$0xf] }
 0x5f2   : > { %2103 = vst [vmem:[#allocation2 + $0x88] sm:$0xff] %v2099_v40  ;;  %v1854_v5 = vadd.f32 %v5226_v63, %v1853_v49  ;;  %v1867_v23 = vsub.f32 1.0, %v1866_v54  ;;  %v5291_v39 = vadd.f32 %v1885_v27, %v1639_v61  ;;  %vm1857_vm11 = vmor %vm1855_vm12, %vm1856_vm2  ;;  %v1876_v14 = vand.u32 2147483648, %v5203_v55 }
 0x5f3   : > { %vm1871_vm15 = vweird.f32 %v3914_v15  ;;  %v1874_v36 = vand.u32 2147483647, %v5203_v55  ;;  %vm1870_vm10 = vweird.f32 %v5203_v55  ;;  %v2233_v62 = vperm.slane %v5390_v18, 1 }
 0x5f4   : > { %v1858_v26 = vsel %vm1857_vm11, %v5226_v63, %v1854_v5  ;;  %v1868_v31 = vmul.f32 %v3914_v15, %v1867_v23  ;;  %v2100_v1 = vpack.c.bf16 %v5291_v39, %v5282_v8  ;;  %vm1872_vm8 = vmor %vm1870_vm10, %vm1871_vm15  ;;  %v1877_v17 = vor.u32 1.1754944e-38, %v1876_v14  ;;  %v1709_v63 = vpop.f32.mrf.mxu3 }
 0x5f5   : > { %v1863_v50 = vsel %vm1860_vm13, %v1862_v4, %v1858_v26  ;;  %vm1875_vm6 = vcmp.eq.f32.partialorder %v1874_v36, 8.507059e+37  ;;  %v2232_v11 = vperm.slane %v5390_v18, 0  ;;  %v2183_v33 = vperm.slane %v5417_v34, 1  ;;  %v5468_v4 = vld [vmem:[%s6287_s2 + $0x3] ss:$8 sm:$0xf] }
 0x5f6   : > { %v1886_v21 = vmul.f32 %v1863_v50, %v5135_v19  ;;  %v1869_v48 = vadd.f32 %v3914_v15, %v1868_v31  ;;  %2104 = vst [vmem:[#allocation2 + $0x90] sm:$0xff] %v2100_v1  ;;  %v2182_v41 = vperm.slane %v5417_v34, 0  ;;  %v2133_v61 = vperm.slane %v5444_v0, 1 }
 0x5f7   : > { %v2132_v37 = vperm.slane %v5444_v0, 0  ;;  %v2074_v26 = vperm.slane %v5468_v4, 0  ;;  %v2075_v31 = vperm.slane %v5468_v4, 1  ;;  %vm6326_vm7 = vcmp.lt.s32.totalorder %v4326_v20, 16 }
 0x5f8   : > { %v1873_v25 = vsel %vm1872_vm8, %v3914_v15, %v1869_v48  ;;  %2106 = vrot.lane.b32.xlu1 %v5219_v47, %s4054_s25  ;;  %v5308_v19 = vadd.f32 %v1886_v21, %v1674_v29  ;;  %vm6327_vm9 = vmmov %vm6326_vm7  ;;  %vm6328_vm14 = vcmp.lt.s32.totalorder %v4326_v20, 17 }
 0x5f9   : > { %v1878_v22 = vsel %vm1875_vm6, %v1877_v17, %v1873_v25  ;;  %2110 = vrot.lane.b32.xlu0 %v5223_v42, %s4054_s25  ;;  %2214 = vrot.lane.b32.xlu2 %v5263_v10, %s4051_s10  ;;  %v5495_v25 = vld [vmem:[%s6287_s2 + $0x2] ss:$8 sm:$0xf]  ;;  %vm6329_vm2 = vmmov %vm6328_vm14 }
 0x5fa   : > { %v1887_v55 = vmul.f32 %v1878_v22, %v5137_v59  ;;  %v2024_v22 = vperm.slane %v5495_v25, 0  ;;  %vm6332_vm12 = vmmov %vm6329_vm2 }
 0x5fc   : > { %v5311_v38 = vadd.f32 %v1887_v55, %v1709_v63  ;;  %v2025_v55 = vperm.slane %v5495_v25, 1 }
 0x5fe   : > { %v2101_v24 = vpack.c.bf16 %v5311_v38, %v5308_v19 }
 0x600   : > { %2105 = vst [vmem:[#allocation2 + $0x98] sm:$0xff] %v2101_v24  ;;  %2048 = vrot.lane.b32.xlu1 %v5219_v47, %s4055_s14 }
 0x601   : > { %2052 = vrot.lane.b32.xlu0 %v5223_v42, %s4055_s14  ;;  %2164 = vrot.lane.b32.xlu2 %v5263_v10, %s4052_s23 }
 0x608   : > { %1998 = vrot.lane.b32.xlu1 %v5219_v47, %s6324_s13 }
 0x609   : > { %2002 = vrot.lane.b32.xlu0 %v5223_v42, %s6324_s13  ;;  %2114 = vrot.lane.b32.xlu2 %v5263_v10, %s4054_s25 }
 0x610   : > { %1948 = vrot.lane.b32.xlu1 %v5219_v47, %s6325_s12 }
 0x611   : > { %1952 = vrot.lane.b32.xlu0 %v5223_v42, %s6325_s12  ;;  %2060 = vrot.lane.b32.xlu2 %v5265_v35, %s4055_s14 }
 0x618   : > { %2260 = vrot.lane.b32.xlu1 %v5223_v42, %s4053_s24 }
 0x619   : > { %2010 = vrot.lane.b32.xlu2 %v5265_v35, %s6324_s13  ;;  %1898 = vrot.lane.b32.xlu0 %v5219_v47, %s4058_s26 }
 0x620   : > { %2218 = vrot.lane.b32.xlu1 %v5265_v35, %s4051_s10 }
 0x621   : > { %1960 = vrot.lane.b32.xlu2 %v5265_v35, %s6325_s12  ;;  %2168 = vrot.lane.b32.xlu0 %v5265_v35, %s4052_s23 }
 0x628   : > { %1910 = vrot.lane.b32.xlu1 %v5265_v35, %s4058_s26 }
 0x629   : > { %2118 = vrot.lane.b32.xlu2 %v5265_v35, %s4054_s25  ;;  %2006 = vrot.lane.b32.xlu0 %v5263_v10, %s6324_s13 }
 0x630   : > { %2056 = vrot.lane.b32.xlu1 %v5263_v10, %s4055_s14 }
 0x631   : > { %1904 = vrot.lane.b32.xlu0 %v5291_v39, %s4058_s26  ;;  %2208 = vrot.lane.b32.xlu2 %v5282_v8, %s4051_s10 }
 0x638   : > { %2212 = vrot.lane.b32.xlu1 %v5291_v39, %s4051_s10 }
 0x639   : > { %2258 = vrot.lane.b32.xlu0 %v5282_v8, %s4053_s24  ;;  %2158 = vrot.lane.b32.xlu2 %v5282_v8, %s4052_s23 }
 0x640   : > { %2162 = vrot.lane.b32.xlu1 %v5291_v39, %s4052_s23 }
 0x641   : > { %2216 = vrot.lane.b32.xlu0 %v5308_v19, %s4051_s10  ;;  %2108 = vrot.lane.b32.xlu2 %v5282_v8, %s4054_s25 }
 0x643   : > { %v5369_v59 = vpop.permute.xlu2 %1902 }
 0x648   : > { %2112 = vrot.lane.b32.xlu1 %v5291_v39, %s4054_s25 }
 0x649   : > { %2166 = vrot.lane.b32.xlu0 %v5308_v19, %s4052_s23  ;;  %2050 = vrot.lane.b32.xlu2 %v5282_v8, %s4055_s14 }
 0x64b   : > { %v5377_v47 = vpop.permute.xlu2 %2256 }
 0x650   : > { %2054 = vrot.lane.b32.xlu1 %v5291_v39, %s4055_s14 }
 0x651   : > { %2116 = vrot.lane.b32.xlu0 %v5308_v19, %s4054_s25  ;;  %2000 = vrot.lane.b32.xlu2 %v5282_v8, %s6324_s13 }
 0x653   : > { %v5385_v42 = vpop.permute.xlu2 %2214 }
 0x658   : > { %2004 = vrot.lane.b32.xlu1 %v5291_v39, %s6324_s13 }
 0x659   : > { %2062 = vrot.lane.b32.xlu0 %v5311_v38, %s4055_s14  ;;  %1950 = vrot.lane.b32.xlu2 %v5282_v8, %s6325_s12 }
 0x65a   : > { %v5400_v46 = vpop.permute.xlu1 %2206 }
 0x65b   : > { %v2211_v60 = vpop.permute.xlu0 %2210  ;;  %v5402_v51 = vpop.permute.xlu2 %2164 }
 0x65c   : > { %v2224_v3 = vsel %vm852_vm0, %v2211_v60, %v5385_v42  ;;  %v2226_v56 = vsel %vm852_vm0, %v5400_v46, %v2211_v60 }
 0x65d   : > { %v2241_v15 = vmul.f32 %v2233_v62, %v2224_v3  ;;  %v2240_v57 = vmul.f32 %v2232_v11, %v2226_v56 }
 0x65f   : > { %v2248_v52 = vpack.c.bf16 %v2241_v15, %v2240_v57 }
 0x660   : > { %1954 = vrot.lane.b32.xlu1 %v5291_v39, %s6325_s12 }
 0x661   : > { %2252 = vst [vmem:[#allocation2 + $0xe0] sm:$0xff] %v2248_v52  ;;  %2012 = vrot.lane.b32.xlu0 %v5311_v38, %s6324_s13  ;;  %2262 = vrot.lane.b32.xlu2 %v5291_v39, %s4053_s24 }
 0x662   : > { %v5427_v32 = vpop.permute.xlu1 %2156 }
 0x663   : > { %v2161_v2 = vpop.permute.xlu0 %2160  ;;  %v5429_v30 = vpop.permute.xlu2 %2114 }
 0x664   : > { %v2174_v7 = vsel %vm800_vm1, %v2161_v2, %v5402_v51  ;;  %v2176_v53 = vsel %vm800_vm1, %v5427_v32, %v2161_v2  ;;  %v5522_v2 = vld [vmem:[%s6287_s2 + $0x1] ss:$8 sm:$0xf] }
 0x665   : > { %v2191_v28 = vmul.f32 %v2183_v33, %v2174_v7  ;;  %v2190_v16 = vmul.f32 %v2182_v41, %v2176_v53  ;;  %v1974_v53 = vperm.slane %v5522_v2, 0 }
 0x667   : > { %v2198_v40 = vpack.c.bf16 %v2191_v28, %v2190_v16  ;;  %v2134_v28 = vperm.slane %v5444_v0, 2  ;;  %v2135_v16 = vperm.slane %v5444_v0, 3 }
 0x668   : > { %1900 = vrot.lane.b32.xlu1 %v5282_v8, %s4058_s26 }
 0x669   : > { %2202 = vst [vmem:[#allocation2 + $0xc0] sm:$0xff] %v2198_v40  ;;  %1962 = vrot.lane.b32.xlu0 %v5311_v38, %s6325_s12  ;;  %2220 = vrot.lane.b32.xlu2 %v5311_v38, %s4051_s10  ;;  %v1975_v40 = vperm.slane %v5522_v2, 1 }
 0x66a   : > { %v2107_v49 = vpop.permute.xlu1 %2106 }
 0x66b   : > { %v2111_v54 = vpop.permute.xlu0 %2110  ;;  %v5454_v27 = vpop.permute.xlu2 %2060 }
 0x66c   : > { %v2124_v5 = vsel %vm748_vm3, %v2111_v54, %v5429_v30  ;;  %v2126_v8 = vsel %vm748_vm3, %v2107_v49, %v2111_v54 }
 0x66d   : > { %v2141_v23 = vmul.f32 %v2133_v61, %v2124_v5  ;;  %v2140_v39 = vmul.f32 %v2132_v37, %v2126_v8 }
 0x66f   : > { %v2148_v14 = vpack.c.bf16 %v2141_v23, %v2140_v39 }
 0x670   : > { %2170 = vrot.lane.b32.xlu1 %v5311_v38, %s4052_s23 }
 0x671   : > { %2152 = vst [vmem:[#allocation2 + $0xa0] sm:$0xff] %v2148_v14  ;;  %2120 = vrot.lane.b32.xlu0 %v5311_v38, %s4054_s25  ;;  %1912 = vrot.lane.b32.xlu2 %v5311_v38, %s4058_s26 }
 0x672   : > { %v2049_v36 = vpop.permute.xlu1 %2048 }
 0x673   : > { %v5478_v1 = vpop.permute.xlu0 %2052  ;;  %v5480_v50 = vpop.permute.xlu2 %2010  ;;  %v2070_v21 = vsel %vm688_vm4, %v5454_v27, %v2049_v36 }
 0x674   : > { %v2068_v48 = vsel %vm688_vm4, %v2049_v36, %v5478_v1  ;;  %v2082_v29 = vmul.f32 %v2074_v26, %v2070_v21 }
 0x675   : > { %v2083_v17 = vmul.f32 %v2075_v31, %v2068_v48 }
 0x677   : > { %v2090_v63 = vpack.c.bf16 %v2083_v17, %v2082_v29 }
 0x678   : > { %2008 = vrot.lane.b32.xlu1 %v5308_v19, %s6324_s13 }
 0x679   : > { %2094 = vst [vmem:[#allocation2 + $0x60] sm:$0xff] %v2090_v63  ;;  %2264 = vrot.lane.b32.xlu0 %v5263_v10, %s4053_s24  ;;  %2058 = vrot.lane.b32.xlu2 %v5308_v19, %s4055_s14 }
 0x67a   : > { %v1999_v24 = vpop.permute.xlu1 %1998 }
 0x67b   : > { %v5505_v60 = vpop.permute.xlu0 %2002  ;;  %v5507_v3 = vpop.permute.xlu2 %1960  ;;  %v2020_v56 = vsel %vm636_vm5, %v5480_v50, %v1999_v24 }
 0x67c   : > { %v2018_v15 = vsel %vm636_vm5, %v1999_v24, %v5505_v60  ;;  %v2032_v57 = vmul.f32 %v2024_v22, %v2020_v56 }
 0x67d   : > { %v2033_v52 = vmul.f32 %v2025_v55, %v2018_v15  ;;  %v2234_v15 = vperm.slane %v5390_v18, 2 }
 0x67f   : > { %v2040_v7 = vpack.c.bf16 %v2033_v52, %v2032_v57  ;;  %v2184_v57 = vperm.slane %v5417_v34, 2 }
 0x680   : > { %2266 = vrot.lane.b32.xlu1 %v5308_v19, %s4053_s24 }
 0x681   : > { %2044 = vst [vmem:[#allocation2 + $0x40] sm:$0xff] %v2040_v7  ;;  %1958 = vrot.lane.b32.xlu0 %v5308_v19, %s6325_s12  ;;  %1956 = vrot.lane.b32.xlu2 %v5263_v10, %s6325_s12 }
 0x682   : > { %v1949_v54 = vpop.permute.xlu1 %1948 }
 0x683   : > { %v5534_v5 = vpop.permute.xlu0 %1952  ;;  %v2119_v8 = vpop.permute.xlu2 %2118  ;;  %v1970_v23 = vsel %vm6326_vm7, %v5507_v3, %v1949_v54 }
 0x684   : > { %v2122_v39 = vsel %vm748_vm3, %v5429_v30, %v2119_v8  ;;  %v2128_v14 = vsel %vm748_vm3, %v2119_v8, %v2107_v49  ;;  %v1968_v36 = vsel %vm6327_vm9, %v1949_v54, %v5534_v5  ;;  %v1982_v21 = vmul.f32 %v1974_v53, %v1970_v23 }
 0x685   : > { %v2142_v48 = vmul.f32 %v2134_v28, %v2122_v39  ;;  %v2143_v29 = vmul.f32 %v2135_v16, %v2128_v14  ;;  %v1983_v17 = vmul.f32 %v1975_v40, %v1968_v36 }
 0x687   : > { %v2149_v30 = vpack.c.bf16 %v2143_v29, %v2142_v48  ;;  %v1990_v63 = vpack.c.bf16 %v1983_v17, %v1982_v21  ;;  %v6309_v17 = vperm.slane %v5495_v25, 2 }
 0x688   : > { %1906 = vrot.lane.b32.xlu1 %v5263_v10, %s4058_s26  ;;  %v2235_v10 = vperm.slane %v5390_v18, 3 }
 0x689   : > { %2153 = vst [vmem:[#allocation2 + $0xa8] sm:$0xff] %v2149_v30  ;;  %2268 = vrot.lane.b32.xlu0 %v5265_v35, %s4053_s24  ;;  %1908 = vrot.lane.b32.xlu2 %v5308_v19, %s4058_s26  ;;  %v2185_v35 = vperm.slane %v5417_v34, 3  ;;  %v6308_v30 = vperm.slane %v5495_v25, 3 }
 0x68a   : > { %1994 = vst [vmem:[#allocation2 + $0x20] sm:$0xff] %v1990_v63  ;;  %v5561_v49 = vpop.permute.xlu1 %2260 }
 0x68b   : > { %v1899_v24 = vpop.permute.xlu0 %1898  ;;  %v5563_v56 = vpop.permute.xlu2 %2208 }
 0x68c   : > { %v1918_v29 = vsel %vm6328_vm14, %v1899_v24, %v5369_v59 }
 0x690   : > { %2270 = vrot.lane.b32.xlu1 %v5311_v38, %s4053_s24 }
 0x691   : > { %v3572_v0 = vld [vmem:[#allocation2 + $0x20] sm:$0xf] }
 0x692   : > { %v2219_v52 = vpop.permute.xlu1 %2218 }
 0x693   : > { %v2169_v7 = vpop.permute.xlu0 %2168  ;;  %v2222_v19 = vsel %vm852_vm0, %v5385_v42, %v2219_v52  ;;  %v2228_v54 = vsel %vm852_vm0, %v2219_v52, %v5400_v46  ;;  %v5577_v8 = vpop.permute.xlu2 %2158  ;;  %v5592_v46 = vld [vmem:[%s6287_s2] ss:$8 sm:$0xf] }
 0x694   : > { %v2172_v38 = vsel %vm800_vm1, %v5402_v51, %v2169_v7  ;;  %v2178_v23 = vsel %vm800_vm1, %v2169_v7, %v5427_v32  ;;  %v2242_v39 = vmul.f32 %v2234_v15, %v2222_v19  ;;  %v2243_v42 = vmul.f32 %v2235_v10, %v2228_v54 }
 0x695   : > { %v2192_v14 = vmul.f32 %v2184_v57, %v2172_v38  ;;  %v2193_v51 = vmul.f32 %v2185_v35, %v2178_v23  ;;  %v1925_v32 = vperm.slane %v5592_v46, 1  ;;  %v1924_v48 = vperm.slane %v5592_v46, 0 }
 0x696   : > { %v2249_v36 = vpack.c.bf16 %v2243_v42, %v2242_v39 }
 0x697   : > { %v2199_v21 = vpack.c.bf16 %v2193_v51, %v2192_v14  ;;  %v1933_v54 = vmul.f32 %v1925_v32, %v1918_v29 }
 0x698   : > { %2253 = vst [vmem:[#allocation2 + $0xe8] sm:$0xff] %v2249_v36  ;;  %v2076_v36 = vperm.slane %v5468_v4, 2 }
 0x699   : > { %2203 = vst [vmem:[#allocation2 + $0xc8] sm:$0xff] %v2199_v21 }
 0x69a   : > { %v5605_v63 = vpop.permute.xlu1 %1910 }
 0x69b   : > { %v2007_v52 = vpop.permute.xlu0 %2006  ;;  %v1920_v7 = vsel %vm6329_vm2, %v5605_v63, %v1899_v24  ;;  %v5610_v19 = vpop.permute.xlu2 %2108 }
 0x69c   : > { %v2014_v38 = vsel %vm636_vm5, %v2007_v52, %v5480_v50  ;;  %v2016_v23 = vsel %vm636_vm5, %v5505_v60, %v2007_v52  ;;  %v1932_v39 = vmul.f32 %v1924_v48, %v1920_v7  ;;  %v2077_v50 = vperm.slane %v5468_v4, 3 }
 0x69d   : > { %v2034_v42 = vmul.f32 %v6309_v17, %v2016_v23  ;;  %v2035_v24 = vmul.f32 %v6308_v30, %v2014_v38 }
 0x69e   : > { %v1940_v14 = vpack.c.bf16 %v1933_v54, %v1932_v39 }
 0x69f   : > { %v2041_v51 = vpack.c.bf16 %v2035_v24, %v2034_v42 }
 0x6a0   : > { %1944 = vst [vmem:[#allocation2] sm:$0xff] %v1940_v14 }
 0x6a1   : > { %2045 = vst [vmem:[#allocation2 + $0x48] sm:$0xff] %v2041_v51 }
 0x6a2   : > { %v2057_v21 = vpop.permute.xlu1 %2056 }
 0x6a3   : > { %v5628_v29 = vpop.permute.xlu0 %1904  ;;  %v2064_v60 = vsel %vm688_vm4, %v2057_v21, %v5454_v27  ;;  %v2066_v52 = vsel %vm688_vm4, %v5478_v1, %v2057_v21  ;;  %v2051_v7 = vpop.permute.xlu2 %2050 }
 0x6a4   : > { %v2084_v54 = vmul.f32 %v2076_v36, %v2066_v52  ;;  %v2085_v38 = vmul.f32 %v2077_v50, %v2064_v60 }
 0x6a6   : > { %v2091_v23 = vpack.c.bf16 %v2085_v38, %v2084_v54 }
 0x6a8   : > { %2095 = vst [vmem:[#allocation2 + $0x68] sm:$0xff] %v2091_v23 }
 0x6aa   : > { %v2213_v39 = vpop.permute.xlu1 %2212 }
 0x6ab   : > { %v5640_v42 = vpop.permute.xlu0 %2258  ;;  %v5642_v24 = vpop.permute.xlu2 %2000  ;;  %v2227_v27 = vsel %vm852_vm0, %v5563_v56, %v2213_v39 }
 0x6ac   : > { %v2244_v60 = vmul.f32 %v2232_v11, %v2227_v27 }
 0x6b2   : > { %v2163_v14 = vpop.permute.xlu1 %2162 }
 0x6b3   : > { %v2217_v1 = vpop.permute.xlu0 %2216  ;;  %v5647_v51 = vpop.permute.xlu2 %1950  ;;  %v2177_v38 = vsel %vm800_vm1, %v5577_v8, %v2163_v14 }
 0x6b4   : > { %v2225_v21 = vsel %vm852_vm0, %v2213_v39, %v2217_v1  ;;  %v2194_v11 = vmul.f32 %v2182_v41, %v2177_v38 }
 0x6b5   : > { %v2245_v52 = vmul.f32 %v2233_v62, %v2225_v21  ;;  %v3668_v21 = vld [vmem:[#allocation2 + $0xe0] sm:$0xf] }
 0x6b7   : > { %v2250_v54 = vpack.c.bf16 %v2245_v52, %v2244_v60  ;;  %v3807_v52 = vld [vmem:[#allocation2 + $0xe4] sm:$0xf] }
 0x6b9   : > { %2254 = vst [vmem:[#allocation2 + $0xf0] sm:$0xff] %v2250_v54 }
 0x6ba   : > { %v2113_v23 = vpop.permute.xlu1 %2112 }
 0x6bb   : > { %v5658_v45 = vpop.permute.xlu0 %2166  ;;  %v5660_v9 = vpop.permute.xlu2 %2262  ;;  %v2127_v30 = vsel %vm748_vm3, %v5610_v19, %v2113_v23 }
 0x6bc   : > { %v2175_v39 = vsel %vm800_vm1, %v2163_v14, %v5658_v45 }
 0x6bd   : > { %v2195_v62 = vmul.f32 %v2183_v33, %v2175_v39 }
 0x6bf   : > { %v2200_v27 = vpack.c.bf16 %v2195_v62, %v2194_v11  ;;  %v2144_v11 = vmul.f32 %v2132_v37, %v2127_v30 }
 0x6c0   : > { %v3809_v60 = vld [vmem:[#allocation2 + $0xec] sm:$0xf0]  ;;  %v3670_v54 = vld [vmem:[#allocation2 + $0xf0] sm:$0xf0] }
 0x6c1   : > { %2204 = vst [vmem:[#allocation2 + $0xd0] sm:$0xff] %v2200_v27  ;;  %v3669_v58 = vor.u32 %v3809_v60, %v3668_v21  ;;  %v3673_v13 = vor.u32 %v3807_v52, %v3670_v54  ;;  %v3652_v21 = vld [vmem:[#allocation2 + $0xc0] sm:$0xf]  ;;  %v3803_v60 = vld [vmem:[#allocation2 + $0xc4] sm:$0xf] }
 0x6c2   : > { %v2055_v17 = vpop.permute.xlu1 %2054 }
 0x6c3   : > { %v5672_v14 = vpop.permute.xlu0 %2116  ;;  %2542 = vmatpush.bf16.msra.mxu1 %v3669_v58  ;;  %2570 = vmatpush.bf16.msra.mxu2 %v3673_v13  ;;  %v2221_v41 = vpop.permute.xlu2 %2220  ;;  %v2069_v37 = vsel %vm688_vm4, %v2051_v7, %v2055_v17 }
 0x6c4   : > { %v2125_v33 = vsel %vm748_vm3, %v2113_v23, %v5672_v14  ;;  %v2223_v38 = vsel %vm852_vm0, %v2217_v1, %v2221_v41  ;;  %v2229_v39 = vsel %vm852_vm0, %v2221_v41, %v5563_v56  ;;  %vm6330_vm0 = vmmov %vm6326_vm7 }
 0x6c5   : > { %v2145_v62 = vmul.f32 %v2133_v61, %v2125_v33  ;;  %v2246_v58 = vmul.f32 %v2234_v15, %v2223_v38  ;;  %v2247_v13 = vmul.f32 %v2235_v10, %v2229_v39  ;;  %v2087_v10 = vmul.f32 %v2075_v31, %v2069_v37  ;;  %v3636_v38 = vld [vmem:[#allocation2 + $0xa0] sm:$0xf]  ;;  %v3797_v39 = vld [vmem:[#allocation2 + $0x8c] sm:$0xf0]  ;;  %v3795_v37 = vld [vmem:[#allocation2 + $0x84] sm:$0xf] }
 0x6c6   : > { %vm6333_vm11 = vmmov %vm6330_vm0 }
 0x6c7   : > { %v2150_v23 = vpack.c.bf16 %v2145_v62, %v2144_v11  ;;  %v2251_v27 = vpack.c.bf16 %v2247_v13, %v2246_v58  ;;  %v3622_v11 = vld [vmem:[#allocation2 + $0x90] sm:$0xf0]  ;;  %v3799_v58 = vld [vmem:[#allocation2 + $0xa4] sm:$0xf]  ;;  %vm6334_vm13 = vmmov %vm6330_vm0 }
 0x6c8   : > { %v3805_v1 = vld [vmem:[#allocation2 + $0xcc] sm:$0xf0]  ;;  %v3654_v52 = vld [vmem:[#allocation2 + $0xd0] sm:$0xf0]  ;;  %vm6335_vm15 = vmmov %vm6330_vm0 }
 0x6c9   : > { %2154 = vst [vmem:[#allocation2 + $0xb0] sm:$0xff] %v2150_v23  ;;  %v3653_v56 = vor.u32 %v3805_v1, %v3652_v21  ;;  %v3657_v54 = vor.u32 %v3803_v60, %v3654_v52  ;;  %v3676_v21 = vld [vmem:[#allocation2 + $0xe8] sm:$0xf]  ;;  %v3620_v60 = vld [vmem:[#allocation2 + $0x80] sm:$0xf]  ;;  %vm6344_vm7 = vmmov %vm6330_vm0 }
 0x6ca   : > { %2255 = vst [vmem:[#allocation2 + $0xf8] sm:$0xff] %v2251_v27  ;;  %v5692_v61 = vpop.permute.xlu1 %2004  ;;  %vm6345_vm9 = vmmov %vm6330_vm0 }
 0x6cb   : > { %v2063_v30 = vpop.permute.xlu0 %2062  ;;  %2543 = vmatpush.bf16.msra.mxu1 %v3653_v56  ;;  %2571 = vmatpush.bf16.msra.mxu2 %v3657_v54  ;;  %v5694_v18 = vpop.permute.xlu2 %1912  ;;  %v2019_v31 = vsel %vm636_vm5, %v5642_v24, %v5692_v61  ;;  %v3621_v54 = vor.u32 %v3797_v39, %v3620_v60 }
 0x6cc   : > { %v2071_v15 = vsel %vm688_vm4, %v2063_v30, %v2051_v7 }
 0x6cd   : > { %v2086_v41 = vmul.f32 %v2074_v26, %v2071_v15 }
 0x6cf   : > { %v2092_v33 = vpack.c.bf16 %v2087_v10, %v2086_v41 }
 0x6d0   : > { %v3801_v62 = vld [vmem:[#allocation2 + $0xac] sm:$0xf0]  ;;  %v3638_v13 = vld [vmem:[#allocation2 + $0xb0] sm:$0xf0] }
 0x6d1   : > { %2096 = vst [vmem:[#allocation2 + $0x70] sm:$0xff] %v2092_v33  ;;  %v3637_v23 = vor.u32 %v3801_v62, %v3636_v38  ;;  %v3641_v27 = vor.u32 %v3799_v58, %v3638_v13  ;;  %v3810_v1 = vld [vmem:[#allocation2 + $0xf4] sm:$0xf0]  ;;  %v3625_v33 = vor.u32 %v3795_v37, %v3622_v11  ;;  %v2037_v38 = vmul.f32 %v2025_v55, %v2019_v31 }
 0x6d2   : > { %v5706_v7 = vpop.permute.xlu1 %1954  ;;  %v3677_v26 = vor.u32 %v3810_v1, %v3676_v21  ;;  %v1977_v55 = vperm.slane %v5522_v2, 3 }
 0x6d3   : > { %v5708_v52 = vpop.permute.xlu0 %2012  ;;  %2544 = vmatpush.bf16.msra.mxu1 %v3637_v23  ;;  %2572 = vmatpush.bf16.msra.mxu2 %v3641_v27  ;;  %v2059_v56 = vpop.permute.xlu2 %2058 }
 0x6d4   : > { %v2021_v15 = vsel %vm636_vm5, %v5708_v52, %v5642_v24  ;;  %2598 = vmatpush.bf16.msrb.mxu3 %v3677_v26  ;;  %v2065_v10 = vsel %vm688_vm4, %v2059_v56, %v2063_v30  ;;  %v2067_v41 = vsel %vm688_vm4, %v2055_v17, %v2059_v56  ;;  %v3604_v30 = vld [vmem:[#allocation2 + $0x60] sm:$0xf]  ;;  %v3791_v17 = vld [vmem:[#allocation2 + $0x64] sm:$0xf]  ;;  %vm6331_vm4 = vmmov %vm6329_vm2 }
 0x6d5   : > { %v2036_v39 = vmul.f32 %v2024_v22, %v2021_v15  ;;  %v2088_v62 = vmul.f32 %v2076_v36, %v2067_v41  ;;  %v2089_v24 = vmul.f32 %v2077_v50, %v2065_v10  ;;  %v1969_v22 = vsel %vm6330_vm0, %v5647_v51, %v5706_v7 }
 0x6d6   : > { %v1976_v36 = vperm.slane %v5522_v2, 2  ;;  %v1987_v15 = vmul.f32 %v1975_v40, %v1969_v22 }
 0x6d7   : > { %v2042_v58 = vpack.c.bf16 %v2037_v38, %v2036_v39  ;;  %v2093_v13 = vpack.c.bf16 %v2089_v24, %v2088_v62  ;;  %2545 = vmatpush.bf16.msra.mxu1 %v3621_v54  ;;  %2573 = vmatpush.bf16.msra.mxu2 %v3625_v33  ;;  %v3588_v38 = vld [vmem:[#allocation2 + $0x40] sm:$0xf] }
 0x6d8   : > { %v3793_v23 = vld [vmem:[#allocation2 + $0x6c] sm:$0xf0]  ;;  %v3606_v11 = vld [vmem:[#allocation2 + $0x70] sm:$0xf0] }
 0x6d9   : > { %2046 = vst [vmem:[#allocation2 + $0x50] sm:$0xff] %v2042_v58  ;;  %v3605_v27 = vor.u32 %v3793_v23, %v3604_v30  ;;  %v3609_v21 = vor.u32 %v3791_v17, %v3606_v11 }
 0x6da   : > { %2097 = vst [vmem:[#allocation2 + $0x78] sm:$0xff] %v2093_v13  ;;  %v1901_v4 = vpop.permute.xlu1 %1900  ;;  %v1927_v13 = vperm.slane %v5592_v46, 3 }
 0x6db   : > { %v5732_v50 = vpop.permute.xlu0 %1962  ;;  %v1919_v1 = vsel %vm6331_vm4, %v1901_v4, %v5628_v29  ;;  %v1921_v31 = vsel %vm6332_vm12, %v5694_v18, %v1901_v4  ;;  %v1957_v26 = vpop.permute.xlu2 %1956  ;;  %2546 = vmatpush.bf16.msra.mxu1 %v3605_v27  ;;  %2574 = vmatpush.bf16.msra.mxu2 %v3609_v21  ;;  %v5773_v27 = vld [vmem:[%s6287_s2 + $0x20] ss:$8 sm:$0xf] }
 0x6dc   : > { %v1971_v60 = vsel %vm6333_vm11, %v5732_v50, %v5647_v51  ;;  %v1936_v56 = vmul.f32 %v1924_v48, %v1921_v31  ;;  %v1937_v54 = vmul.f32 %v1925_v32, %v1919_v1  ;;  %v1964_v37 = vsel %vm6334_vm13, %v1957_v26, %v5507_v3  ;;  %v3787_v3 = vld [vmem:[#allocation2 + $0x44] sm:$0xf] }
 0x6dd   : > { %v1986_v10 = vmul.f32 %v1974_v53, %v1971_v60  ;;  %v1966_v51 = vsel %vm6335_vm15, %v5534_v5, %v1957_v26  ;;  %v1985_v48 = vmul.f32 %v1977_v55, %v1964_v37  ;;  %v1926_v5 = vperm.slane %v5592_v46, 2 }
 0x6de   : > { %v1942_v41 = vpack.c.bf16 %v1937_v54, %v1936_v56  ;;  %v1984_v32 = vmul.f32 %v1976_v36, %v1966_v51  ;;  %v2283_v56 = vperm.slane %v5773_v27, 1  ;;  %vm6352_vm13 = vcmask 130048  }
 0x6df   : > { %v1992_v33 = vpack.c.bf16 %v1987_v15, %v1986_v10  ;;  %v3678_v15 = vld [vmem:[#allocation2 + $0xf8] sm:$0xf0]  ;;  %vm6353_vm15 = vmmov %vm6352_vm13 }
 0x6e0   : > { %1946 = vst [vmem:[#allocation2 + $0x10] sm:$0xff] %v1942_v41  ;;  %v1991_v39 = vpack.c.bf16 %v1985_v48, %v1984_v32  ;;  %v3789_v40 = vld [vmem:[#allocation2 + $0x4c] sm:$0xf0]  ;;  %v3590_v62 = vld [vmem:[#allocation2 + $0x50] sm:$0xf0] }
 0x6e1   : > { %1996 = vst [vmem:[#allocation2 + $0x30] sm:$0xff] %v1992_v33  ;;  %v3589_v53 = vor.u32 %v3789_v40, %v3588_v38  ;;  %v3593_v24 = vor.u32 %v3787_v3, %v3590_v62  ;;  %v3548_v3 = vld [vmem:[%s4148_s22] sm:$0xf]  ;;  %v6340_v62 = vperm.slane %v5495_v25, 2 }
 0x6e2   : > { %1995 = vst [vmem:[#allocation2 + $0x28] sm:$0xff] %v1991_v39  ;;  %v2171_v58 = vpop.permute.xlu1 %2170  ;;  %v3778_v39 = vld [vmem:[%s4148_s22 + $0x4] sm:$0xf0] }
 0x6e3   : > { %v2121_v30 = vpop.permute.xlu0 %2120  ;;  %v2173_v23 = vsel %vm800_vm1, %v5658_v45, %v2171_v58  ;;  %v2179_v17 = vsel %vm800_vm1, %v2171_v58, %v5577_v8  ;;  %v1909_v11 = vpop.permute.xlu2 %1908  ;;  %2547 = vmatpush.bf16.msra.mxu1 %v3589_v53  ;;  %2575 = vmatpush.bf16.msra.mxu2 %v3593_v24  ;;  %vm6336_vm1 = vmmov %vm6329_vm2  ;;  %v3556_v58 = vld [vmem:[#allocation2] sm:$0xf] }
 0x6e4   : > { %v2123_v21 = vsel %vm748_vm3, %v5672_v14, %v2121_v30  ;;  %v2129_v45 = vsel %vm748_vm3, %v2121_v30, %v5610_v19  ;;  %v2196_v22 = vmul.f32 %v2184_v57, %v2173_v23  ;;  %v2197_v8 = vmul.f32 %v2185_v35, %v2179_v17  ;;  %vm6337_vm10 = vmmov %vm6336_vm1  ;;  %v3779_v30 = vld [vmem:[#allocation2 + $0x4] sm:$0xf] }
 0x6e5   : > { %v2146_v4 = vmul.f32 %v2134_v28, %v2123_v21  ;;  %v2147_v1 = vmul.f32 %v2135_v16, %v2129_v45  ;;  %v1915_v14 = vsel %vm6336_vm1, %v1909_v11, %v5694_v18  ;;  %v1917_v19 = vsel %vm6337_vm10, %v5628_v29, %v1909_v11  ;;  %v3783_v16 = vld [vmem:[#allocation2 + $0x24] sm:$0xf]  ;;  %v3808_v21 = vld [vmem:[#allocation2 + $0xec] sm:$0xf]  ;;  %vm6346_vm14 = vmmov %vm6336_vm1 }
 0x6e6   : > { %v2201_v31 = vpack.c.bf16 %v2197_v8, %v2196_v22  ;;  %v1938_v57 = vmul.f32 %v1926_v5, %v1917_v19  ;;  %v1939_v34 = vmul.f32 %v1927_v13, %v1915_v14  ;;  %v2282_v28 = vperm.slane %v5773_v27, 0  ;;  %v5824_v45 = vld [vmem:[%s4138_s16 + $0x8] sm:$0xff]  ;;  %vm6347_vm2 = vmmov %vm6336_vm1 }
 0x6e7   : > { %v2151_v35 = vpack.c.bf16 %v2147_v1, %v2146_v4  ;;  %vm6338_vm3 = vcmp.lt.s32.totalorder %v4326_v20, 111  ;;  %v3781_v51 = vld [vmem:[#allocation2 + $0xc] sm:$0xf0]  ;;  %v3558_v48 = vld [vmem:[#allocation2 + $0x10] sm:$0xf0]  ;;  %v5831_v4 = vor.u32 %v3778_v39, %v3548_v3  ;;  %vm6354_vm1 = vmmov %vm6352_vm13 }
 0x6e8   : > { %v2276_v18 = vsel %vm6338_vm3, %v5377_v47, %v5561_v49  ;;  %2205 = vst [vmem:[#allocation2 + $0xd8] sm:$0xff] %v2201_v31  ;;  %v1943_v26 = vpack.c.bf16 %v1939_v34, %v1938_v57  ;;  %v3785_v29 = vld [vmem:[#allocation2 + $0x2c] sm:$0xf0]  ;;  %v3574_v60 = vld [vmem:[#allocation2 + $0x30] sm:$0xf0]  ;;  %vm6339_vm8 = vmmov %vm6338_vm3  ;;  %v3557_v17 = vor.u32 %v3781_v51, %v3556_v58  ;;  %v3561_v11 = vor.u32 %v3779_v30, %v3558_v48 }
 0x6e9   : > { %2155 = vst [vmem:[#allocation2 + $0xb8] sm:$0xff] %v2151_v35  ;;  %v3573_v54 = vor.u32 %v3785_v29, %v3572_v0  ;;  %v3577_v37 = vor.u32 %v3783_v16, %v3574_v60  ;;  %v2290_v41 = vmul.f32 %v2282_v28, %v2276_v18  ;;  %v3660_v8 = vld [vmem:[#allocation2 + $0xc8] sm:$0xf]  ;;  %v3804_v19 = vld [vmem:[#allocation2 + $0xcc] sm:$0xf]  ;;  %vm6343_vm6 = vmmov %vm6338_vm3 }
 0x6ea   : > { %1947 = vst [vmem:[#allocation2 + $0x18] sm:$0xff] %v1943_v26  ;;  %v2009_v10 = vpop.permute.xlu1 %2008  ;;  %v3644_v60 = vld [vmem:[#allocation2 + $0xa8] sm:$0xf]  ;;  %v3800_v48 = vld [vmem:[#allocation2 + $0xac] sm:$0xf]  ;;  %vm6348_vm0 = vmmov %vm6338_vm3 }
 0x6eb   : > { %v5805_v32 = vpop.permute.xlu0 %2264  ;;  %v2015_v33 = vsel %vm636_vm5, %v2009_v10, %v5708_v52  ;;  %v2017_v38 = vsel %vm636_vm5, %v5692_v61, %v2009_v10  ;;  %2548 = vmatpush.bf16.msra.mxu1 %v3573_v54  ;;  %2576 = vmatpush.bf16.msra.mxu2 %v3577_v37  ;;  %v6341_v52 = vperm.slane %v5495_v25, 3  ;;  %v4064_v61 = vmov 3   ;;  %vm6342_vm5 = vmmov %vm6338_vm3  ;;  %v3630_v39 = vld [vmem:[#allocation2 + $0x98] sm:$0xf0] }
 0x6ec   : > { %v2274_v40 = vsel %vm6339_vm8, %v5561_v49, %v5805_v32  ;;  %v2038_v53 = vmul.f32 %v6340_v62, %v2017_v38  ;;  %3869 = vset.pattern.permute.xlu0 %v4064_v61  ;;  %3868 = vset.pattern.permute.xlu2 %v4064_v61  ;;  %v5828_v49 = vld [vmem:[%s4138_s16] sm:$0xff]  ;;  %v3681_v25 = vor.u32 %v3808_v21, %v3678_v15  ;;  %v3796_v62 = vld [vmem:[#allocation2 + $0x8c] sm:$0xf]  ;;  %v3614_v61 = vld [vmem:[#allocation2 + $0x78] sm:$0xf0]  ;;  %vm6357_vm3 = vcmask 1041408  }
 0x6ed   : > { %v2039_v24 = vmul.f32 %v6341_v52, %v2015_v33  ;;  %v2291_v23 = vmul.f32 %v2283_v56, %v2274_v40  ;;  %2347 = vperm.xlu0 %3869, %v5824_v45   ;;  %2343 = vperm.xlu2 %3868, %v5828_v49   ;;  %v2277_v57 = vsel %vm6342_vm5, %v5640_v42, %v5660_v9  ;;  %v2284_v40 = vperm.slane %v5773_v27, 2  ;;  %vm6349_vm4 = vmmov %vm6348_vm0 }
 0x6ee   : > { %v2294_v18 = vmul.f32 %v2282_v28, %v2277_v57  ;;  %vm6350_vm12 = vmmov %vm6348_vm0 }
 0x6ef   : > { %v2043_v22 = vpack.c.bf16 %v2039_v24, %v2038_v53  ;;  %v2298_v1 = vpack.c.bf16 %v2291_v23, %v2290_v41  ;;  %2549 = vmatpush.bf16.msra.mxu1 %v3557_v17  ;;  %2577 = vmatpush.bf16.msra.mxu2 %v3561_v11  ;;  %v3806_v14 = vld [vmem:[#allocation2 + $0xd4] sm:$0xf0]  ;;  %v3662_v31 = vld [vmem:[#allocation2 + $0xd8] sm:$0xf0]  ;;  %v3612_v53 = vld [vmem:[#allocation2 + $0x68] sm:$0xf] }
 0x6f0   : > { %v3661_v34 = vor.u32 %v3806_v14, %v3660_v8  ;;  %v3665_v35 = vor.u32 %v3804_v19, %v3662_v31  ;;  %v3802_v0 = vld [vmem:[#allocation2 + $0xb4] sm:$0xf0]  ;;  %v3646_v54 = vld [vmem:[#allocation2 + $0xb8] sm:$0xf0]  ;;  %vm6351_vm11 = vmmov %vm6348_vm0 }
 0x6f1   : > { %2047 = vst [vmem:[#allocation2 + $0x58] sm:$0xff] %v2043_v22  ;;  %v3645_v28 = vor.u32 %v3802_v0, %v3644_v60  ;;  %v3798_v41 = vld [vmem:[#allocation2 + $0x94] sm:$0xf0]  ;;  %v3649_v38 = vor.u32 %v3800_v48, %v3646_v54  ;;  %v3777_v22 = vld [vmem:[%s4148_s22 + $0x4] sm:$0xf]  ;;  %vm6355_vm10 = vmmov %vm6354_vm1 }
 0x6f2   : > { %2302 = vst [vmem:[#allocation2 + $0x100] sm:$0xff] %v2298_v1  ;;  %v5837_v16 = vpop.permute.xlu1 %2266  ;;  %2599 = vmatpush.bf16.msrb.mxu3 %v3661_v34  ;;  %2550 = vmatmul.bf16.vlgmr.msra.gmra.mxu1 %v5831_v4  ;;  %v3788_v0 = vld [vmem:[#allocation2 + $0x4c] sm:$0xf]  ;;  %v3566_v20 = vld [vmem:[#allocation2 + $0x18] sm:$0xf0]  ;;  %vm6359_vm8 = vmmov %vm6357_vm3 }
 0x6f3   : > { %2626 = vmatpush.bf16.msrb.mxu2 %v3681_v25  ;;  %v1959_v26 = vpop.permute.xlu0 %1958  ;;  %v2275_v29 = vsel %vm6343_vm6, %v5660_v9, %v5837_v16  ;;  %v3550_v25 = vld [vmem:[%s4148_s22 + $0x8] sm:$0xf0]  ;;  %vm6361_vm5 = vmmov %vm6357_vm3  ;;  %vm6362_vm6 = vcmask 15360  }
 0x6f4   : > { %2578 = vmatmul.bf16.vlgmr.msra.gmra.mxu2 %v5831_v4  ;;  %v1965_v37 = vsel %vm6344_vm7, %v1959_v26, %v5732_v50  ;;  %v1967_v15 = vsel %vm6345_vm9, %v5706_v7, %v1959_v26  ;;  %v2295_v10 = vmul.f32 %v2283_v56, %v2275_v29  ;;  %v3628_v50 = vld [vmem:[#allocation2 + $0x88] sm:$0xf]  ;;  %v3794_v56 = vld [vmem:[#allocation2 + $0x74] sm:$0xf0]  ;;  %v3784_v48 = vld [vmem:[#allocation2 + $0x2c] sm:$0xf] }
 0x6f5   : > { %v1988_v51 = vmul.f32 %v1976_v36, %v1967_v15  ;;  %v1989_v9 = vmul.f32 %v1977_v55, %v1965_v37  ;;  %v3629_v7 = vor.u32 %v3798_v41, %v3628_v50  ;;  %v2285_v36 = vperm.slane %v5773_v27, 3  ;;  %vm6363_vm7 = vmmov %vm6362_vm6 }
 0x6f6   : > { %v2300_v33 = vpack.c.bf16 %v2295_v10, %v2294_v18  ;;  %2600 = vmatpush.bf16.msrb.mxu3 %v3645_v28  ;;  %v3633_v55 = vor.u32 %v3796_v62, %v3630_v39  ;;  %v3613_v30 = vor.u32 %v3794_v56, %v3612_v53  ;;  %v3553_v18 = vor.u32 %v3777_v22, %v3550_v25  ;;  %v3953_v39 = vld [vmem:[%s6288_s3 + $0x78] sm:$0xff]  ;;  %v3970_v25 = vld [vmem:[%s6288_s3 + $0xe0] sm:$0xff]  ;;  %vm6364_vm9 = vmmov %vm6354_vm1 }
 0x6f7   : > { %2627 = vmatpush.bf16.msrb.mxu2 %v3665_v35  ;;  %v1993_v3 = vpack.c.bf16 %v1989_v9, %v1988_v51  ;;  %v3580_v51 = vld [vmem:[#allocation2 + $0x28] sm:$0xf]  ;;  %v3969_v22 = vld [vmem:[%s6288_s3 + $0x1d8] sm:$0xff] }
 0x6f8   : > { %2304 = vst [vmem:[#allocation2 + $0x110] sm:$0xff] %v2300_v33  ;;  %v3790_v14 = vld [vmem:[#allocation2 + $0x54] sm:$0xf0]  ;;  %v3598_v19 = vld [vmem:[#allocation2 + $0x58] sm:$0xf0] }
 0x6f9   : > { %1997 = vst [vmem:[#allocation2 + $0x38] sm:$0xff] %v1993_v3  ;;  %v3811_v57 = vld [vmem:[#allocation2 + $0x104] sm:$0xf]  ;;  %v3601_v29 = vor.u32 %v3788_v0, %v3598_v19  ;;  %v3984_v0 = vld [vmem:[%s6288_s3 + $0x148] sm:$0xff] }
 0x6fa   : > { %v1907_v2 = vpop.permute.xlu1 %1906  ;;  %2601 = vmatpush.bf16.msrb.mxu3 %v3629_v7  ;;  %v3954_v7 = vld [vmem:[%s6288_s3 + $0x1f8] sm:$0xff]  ;;  %v3975_v19 = vld [vmem:[%s6288_s3 + $0x40] sm:$0xff] }
 0x6fb   : > { %2628 = vmatpush.bf16.msrb.mxu2 %v3649_v38  ;;  %v2269_v52 = vpop.permute.xlu0 %2268  ;;  %v1914_v24 = vsel %vm6346_vm14, %v1907_v2, %v5605_v63  ;;  %v1916_v58 = vsel %vm6347_vm2, %v5369_v59, %v1907_v2  ;;  %v3792_v59 = vld [vmem:[#allocation2 + $0x6c] sm:$0xf]  ;;  %v3782_v38 = vld [vmem:[#allocation2 + $0x14] sm:$0xf0]  ;;  %v3955_v2 = vld [vmem:[%s6288_s3 + $0x70] sm:$0xff] }
 0x6fc   : > { %v2272_v27 = vsel %vm6348_vm0, %v5805_v32, %v2269_v52  ;;  %v2278_v23 = vsel %vm6349_vm4, %v2269_v52, %v5377_v47  ;;  %v1934_v17 = vmul.f32 %v1926_v5, %v1916_v58  ;;  %v1935_v63 = vmul.f32 %v1927_v13, %v1914_v24  ;;  %v3684_v32 = vld [vmem:[#allocation2 + $0x100] sm:$0xf]  ;;  %v3596_v13 = vld [vmem:[#allocation2 + $0x48] sm:$0xf]  ;;  %v3956_v52 = vld [vmem:[%s6288_s3 + $0x1f0] sm:$0xff] }
 0x6fd   : > { %v2292_v11 = vmul.f32 %v2284_v40, %v2272_v27  ;;  %v2293_v21 = vmul.f32 %v2285_v36, %v2278_v23  ;;  %v3617_v1 = vor.u32 %v3792_v59, %v3614_v61  ;;  %v3597_v35 = vor.u32 %v3790_v14, %v3596_v13  ;;  %v3957_v24 = vld [vmem:[%s6288_s3 + $0x68] sm:$0xff]  ;;  %v3959_v58 = vld [vmem:[%s6288_s3 + $0x60] sm:$0xff]  ;;  %v3962_v27 = vld [vmem:[%s6288_s3 + $0xf0] sm:$0xff] }
 0x6fe   : > { %v1941_v8 = vpack.c.bf16 %v1935_v63, %v1934_v17  ;;  %2602 = vmatpush.bf16.msrb.mxu3 %v3613_v30  ;;  %v3960_v30 = vld [vmem:[%s6288_s3 + $0x178] sm:$0xff]  ;;  %v3961_v61 = vld [vmem:[%s6288_s3 + $0x1e8] sm:$0xff]  ;;  %v3964_v17 = vld [vmem:[%s6288_s3 + $0x170] sm:$0xff] }
 0x6ff   : > { %2629 = vmatpush.bf16.msrb.mxu2 %v3633_v55  ;;  %v2299_v31 = vpack.c.bf16 %v2293_v21, %v2292_v11  ;;  %v3813_v47 = vld [vmem:[#allocation2 + $0x10c] sm:$0xf0]  ;;  %v3686_v34 = vld [vmem:[#allocation2 + $0x110] sm:$0xf0]  ;;  %v3963_v23 = vld [vmem:[%s6288_s3 + $0x58] sm:$0xff] }
 0x700   : > { %1945 = vst [vmem:[#allocation2 + $0x8] sm:$0xff] %v1941_v8  ;;  %v3685_v46 = vor.u32 %v3813_v47, %v3684_v32  ;;  %v3689_v5 = vor.u32 %v3811_v57, %v3686_v34  ;;  %v3786_v60 = vld [vmem:[#allocation2 + $0x34] sm:$0xf0]  ;;  %v3582_v15 = vld [vmem:[#allocation2 + $0x38] sm:$0xf0]  ;;  %v3965_v63 = vld [vmem:[%s6288_s3 + $0x1e0] sm:$0xff] }
 0x701   : > { %2303 = vst [vmem:[#allocation2 + $0x108] sm:$0xff] %v2299_v31  ;;  %v3581_v9 = vor.u32 %v3786_v60, %v3580_v51  ;;  %v3585_v33 = vor.u32 %v3784_v48, %v3582_v15  ;;  %v3966_v11 = vld [vmem:[%s6288_s3 + $0xe8] sm:$0xff]  ;;  %v3967_v21 = vld [vmem:[%s6288_s3 + $0x50] sm:$0xff]  ;;  %v3974_v14 = vld [vmem:[%s6288_s3 + $0xd8] sm:$0xff] }
 0x702   : > { %v2271_v26 = vpop.permute.xlu1 %2270  ;;  %2563 = vmatpush.bf16.msrb.mxu0 %v3685_v46  ;;  %2591 = vmatpush.bf16.msrb.mxu1 %v3689_v5  ;;  %v3968_v59 = vld [vmem:[%s6288_s3 + $0x168] sm:$0xff]  ;;  %v3973_v32 = vld [vmem:[%s6288_s3 + $0x1d0] sm:$0xff]  ;;  %v3976_v31 = vld [vmem:[%s6288_s3 + $0x158] sm:$0xff] }
 0x703   : > { %2630 = vmatpush.bf16.msrb.mxu2 %v3617_v1  ;;  %v2273_v54 = vsel %vm6350_vm12, %v5837_v16, %v2271_v26  ;;  %v2279_v37 = vsel %vm6351_vm11, %v2271_v26, %v5640_v42  ;;  %2603 = vmatpush.bf16.msrb.mxu3 %v3597_v35  ;;  %v3971_v8 = vld [vmem:[%s6288_s3 + $0x48] sm:$0xff]  ;;  %v3972_v1 = vld [vmem:[%s6288_s3 + $0x160] sm:$0xff]  ;;  %v3978_v57 = vld [vmem:[%s6288_s3 + $0xd0] sm:$0xff] }
 0x704   : > { %v2296_v10 = vmul.f32 %v2284_v40, %v2273_v54  ;;  %v2297_v28 = vmul.f32 %v2285_v36, %v2279_v37  ;;  %v3977_v47 = vld [vmem:[%s6288_s3 + $0x1c8] sm:$0xff]  ;;  %v3979_v34 = vld [vmem:[%s6288_s3 + $0x38] sm:$0xff]  ;;  %v3980_v46 = vld [vmem:[%s6288_s3 + $0x150] sm:$0xff] }
 0x705   : > { %3698 = vmatmul.msk.bf16.vlgmr.msrb.gmra.mxu0 %vm6352_vm13, %v3553_v18  ;;  %3699 = vmatmul.msk.bf16.vlgmr.msrb.gmra.mxu1 %vm6353_vm15, %v3553_v18  ;;  %v3981_v5 = vld [vmem:[%s6288_s3 + $0x1c0] sm:$0xff]  ;;  %v3982_v13 = vld [vmem:[%s6288_s3 + $0xc8] sm:$0xff]  ;;  %v3983_v35 = vld [vmem:[%s6288_s3 + $0x30] sm:$0xff] }
 0x706   : > { %v2301_v41 = vpack.c.bf16 %v2297_v28, %v2296_v10  ;;  %v3986_v26 = vld [vmem:[%s6288_s3 + $0xc0] sm:$0xff]  ;;  %v3989_v54 = vld [vmem:[%s6288_s3 + $0x1b0] sm:$0xff]  ;;  %v3990_v37 = vld [vmem:[%s6288_s3 + $0xb8] sm:$0xff] }
 0x707   : > { %2631 = vmatpush.bf16.msrb.mxu2 %v3601_v29  ;;  %2604 = vmatpush.bf16.msrb.mxu3 %v3581_v9  ;;  %v3564_v16 = vld [vmem:[#allocation2 + $0x8] sm:$0xf]  ;;  %v3780_v3 = vld [vmem:[#allocation2 + $0xc] sm:$0xf]  ;;  %v3988_v60 = vld [vmem:[%s6288_s3 + $0x140] sm:$0xff] }
 0x708   : > { %2305 = vst [vmem:[#allocation2 + $0x118] sm:$0xff] %v2301_v41  ;;  %v3565_v42 = vor.u32 %v3782_v38, %v3564_v16  ;;  %v3569_v50 = vor.u32 %v3780_v3, %v3566_v20  ;;  %v3692_v56 = vld [vmem:[#allocation2 + $0x108] sm:$0xf]  ;;  %v3812_v36 = vld [vmem:[#allocation2 + $0x10c] sm:$0xf]  ;;  %v3991_v15 = vld [vmem:[%s6288_s3 + $0x20] sm:$0xff] }
 0x709   : > { %v3987_v29 = vld [vmem:[%s6288_s3 + $0x28] sm:$0xff]  ;;  %v3992_v10 = vld [vmem:[%s6288_s3 + $0x138] sm:$0xff]  ;;  %v3994_v51 = vld [vmem:[%s6288_s3 + $0xb0] sm:$0xff] }
 0x70a   : > { %v3993_v28 = vld [vmem:[%s6288_s3 + $0x1a8] sm:$0xff]  ;;  %v3995_v9 = vld [vmem:[%s6288_s3 + $0x18] sm:$0xff]  ;;  %v3996_v48 = vld [vmem:[%s6288_s3 + $0x130] sm:$0xff] }
 0x70b   : > { %2632 = vmatpush.bf16.msrb.mxu2 %v3585_v33  ;;  %2605 = vmatpush.bf16.msrb.mxu3 %v3565_v42  ;;  %v3997_v41 = vld [vmem:[%s6288_s3 + $0x1a0] sm:$0xff]  ;;  %v3998_v33 = vld [vmem:[%s6288_s3 + $0xa8] sm:$0xff]  ;;  %v3999_v38 = vld [vmem:[%s6288_s3 + $0x10] sm:$0xff] }
 0x70c   : > { %v4000_v16 = vld [vmem:[%s6288_s3 + $0x128] sm:$0xff]  ;;  %v4001_v3 = vld [vmem:[%s6288_s3 + $0x198] sm:$0xff]  ;;  %v4002_v20 = vld [vmem:[%s6288_s3 + $0xa0] sm:$0xff] }
 0x70d   : > { %v4003_v42 = vld [vmem:[%s6288_s3 + $0x8] sm:$0xff]  ;;  %vm6366_vm14 = vmmov %vm6357_vm3 }
 0x70e   : > { %2606 = vmatmul.bf16.vlgmr.msrb.gmra.mxu3 %v5831_v4  ;;  %vm6367_vm2 = vmmov %vm6354_vm1 }
 0x70f   : > { %2633 = vmatpush.bf16.msrb.mxu2 %v3569_v50  ;;  %2662 = vmatpush.msra.mxu3 %v3953_v39  ;;  %v3814_v40 = vld [vmem:[#allocation2 + $0x114] sm:$0xf0]  ;;  %v3694_v62 = vld [vmem:[#allocation2 + $0x118] sm:$0xf0]  ;;  %v4004_v50 = vld [vmem:[%s6288_s3 + $0x120] sm:$0xff] }
 0x710   : > { %v3693_v55 = vor.u32 %v3814_v40, %v3692_v56  ;;  %v3697_v53 = vor.u32 %v3812_v36, %v3694_v62  ;;  %v4005_v39 = vld [vmem:[%s6288_s3 + $0x190] sm:$0xff]  ;;  %v4007_v56 = vld [vmem:[%s6288_s3] sm:$0xff]  ;;  %v4008_v40 = vld [vmem:[%s6288_s3 + $0x118] sm:$0xff] }
 0x711   : > { %2663 = vmatpush.msra.mxu3 %v3955_v2  ;;  %v4009_v36 = vld [vmem:[%s6288_s3 + $0x188] sm:$0xff]  ;;  %v4010_v62 = vld [vmem:[%s6288_s3 + $0x90] sm:$0xff] }
 0x712   : > { %2634 = vmatmul.bf16.vlgmr.msrb.gmra.mxu2 %v5831_v4  ;;  %2619 = vmatpush.bf16.msra.mxu0 %v3693_v55  ;;  %v3958_v4 = vld [vmem:[%s6288_s3 + $0xf8] sm:$0xff]  ;;  %v4011_v2 = vld [vmem:[%s6288_s3 + $0x110] sm:$0xff]  ;;  %v4012_v55 = vld [vmem:[%s6288_s3 + $0x180] sm:$0xff] }
 0x713   : > { %2749 = vmatpush.msra.mxu2 %v3954_v7  ;;  %2664 = vmatpush.msra.mxu3 %v3957_v24  ;;  %v4006_v7 = vld [vmem:[%s6288_s3 + $0x98] sm:$0xff]  ;;  %v4014_v24 = vld [vmem:[%s6288_s3 + $0x108] sm:$0xff] }
 0x714   : > { %2647 = vmatpush.bf16.msra.mxu1 %v3697_v53  ;;  %v4013_v53 = vld [vmem:[%s6288_s3 + $0x88] sm:$0xff] }
 0x715   : > { %2750 = vmatpush.msra.mxu2 %v3956_v52  ;;  %2665 = vmatpush.msra.mxu3 %v3959_v58  ;;  %v6356_v52 = vrot.slane %v5049_v6, 1  ;;  %v4016_v58 = vld [vmem:[%s6288_s3 + $0x100] sm:$0xff]  ;;  %v6360_v6 = vrot.slane %v5037_v43, 1 }
 0x716   : > { %2691 = vmatpush.msrb.mxu0 %v3958_v4  ;;  %v4015_v4 = vld [vmem:[%s6288_s3 + $0x80] sm:$0xff] }
 0x717   : > { %2751 = vmatpush.msra.mxu2 %v3961_v61  ;;  %3700 = vmatmul.msk.bf16.vlgmr.msra.gmra.mxu0 %vm6354_vm1, %v3553_v18  ;;  %vm6368_vm1 = vmmov %vm6362_vm6 }
 0x718   : > { %2720 = vmatpush.msrb.mxu1 %v3960_v30  ;;  %2692 = vmatpush.msrb.mxu0 %v3962_v27  ;;  %v6358_v30 = vrot.slane %v5032_v44, 1 }
 0x719   : > { %3701 = vmatmul.msk.bf16.vlgmr.msra.gmra.mxu1 %vm6355_vm10, %v3553_v18  ;;  %2666 = vmatpush.msra.mxu3 %v3963_v23  ;;  %v3985_v18 = vld [vmem:[%s6288_s3 + $0x1b8] sm:$0xff]  ;;  %vm6369_vm10 = vmmov %vm6368_vm1 }
 0x71a   : > { %2721 = vmatpush.msrb.mxu1 %v3964_v17  ;;  %2752 = vmatpush.msra.mxu2 %v3965_v63 }
 0x71b   : > { %2693 = vmatpush.msrb.mxu0 %v3966_v11  ;;  %2667 = vmatpush.msra.mxu3 %v3967_v21 }
 0x71c   : > { %2722 = vmatpush.msrb.mxu1 %v3968_v59  ;;  %2753 = vmatpush.msra.mxu2 %v3969_v22 }
 0x71d   : > { %2694 = vmatpush.msrb.mxu0 %v3970_v25  ;;  %2668 = vmatpush.msra.mxu3 %v3971_v8 }
 0x71e   : > { %2723 = vmatpush.msrb.mxu1 %v3972_v1  ;;  %2754 = vmatpush.msra.mxu2 %v3973_v32 }
 0x71f   : > { %2695 = vmatpush.msrb.mxu0 %v3974_v14  ;;  %2669 = vmatpush.msra.mxu3 %v3975_v19 }
 0x720   : > { %2724 = vmatpush.msrb.mxu1 %v3976_v31  ;;  %2755 = vmatpush.msra.mxu2 %v3977_v47 }
 0x721   : > { %2696 = vmatpush.msrb.mxu0 %v3978_v57  ;;  %2670 = vmatpush.msra.mxu3 %v3979_v34 }
 0x722   : > { %2725 = vmatpush.msrb.mxu1 %v3980_v46  ;;  %2756 = vmatpush.msra.mxu2 %v3981_v5 }
 0x723   : > { %2697 = vmatpush.msrb.mxu0 %v3982_v13  ;;  %2671 = vmatpush.msra.mxu3 %v3983_v35 }
 0x724   : > { %2726 = vmatpush.msrb.mxu1 %v3984_v0  ;;  %2757 = vmatpush.msra.mxu2 %v3985_v18 }
 0x725   : > { %2698 = vmatpush.msrb.mxu0 %v3986_v26  ;;  %2672 = vmatpush.msra.mxu3 %v3987_v29 }
 0x726   : > { %2727 = vmatpush.msrb.mxu1 %v3988_v60  ;;  %2758 = vmatpush.msra.mxu2 %v3989_v54 }
 0x727   : > { %2699 = vmatpush.msrb.mxu0 %v3990_v37  ;;  %2673 = vmatpush.msra.mxu3 %v3991_v15 }
 0x728   : > { %2728 = vmatpush.msrb.mxu1 %v3992_v10  ;;  %2759 = vmatpush.msra.mxu2 %v3993_v28 }
 0x729   : > { %2700 = vmatpush.msrb.mxu0 %v3994_v51  ;;  %2674 = vmatpush.msra.mxu3 %v3995_v9 }
 0x72a   : > { %2729 = vmatpush.msrb.mxu1 %v3996_v48  ;;  %2760 = vmatpush.msra.mxu2 %v3997_v41 }
 0x72b   : > { %2701 = vmatpush.msrb.mxu0 %v3998_v33  ;;  %2675 = vmatpush.msra.mxu3 %v3999_v38 }
 0x72c   : > { %2730 = vmatpush.msrb.mxu1 %v4000_v16  ;;  %2761 = vmatpush.msra.mxu2 %v4001_v3 }
 0x72d   : > { %2702 = vmatpush.msrb.mxu0 %v4002_v20  ;;  %2676 = vmatpush.msra.mxu3 %v4003_v42 }
 0x72e   : > { %2731 = vmatpush.msrb.mxu1 %v4004_v50  ;;  %2762 = vmatpush.msra.mxu2 %v4005_v39 }
 0x72f   : > { %2703 = vmatpush.msrb.mxu0 %v4006_v7  ;;  %2677 = vmatpush.msra.mxu3 %v4007_v56 }
 0x730   : > { %2732 = vmatpush.msrb.mxu1 %v4008_v40  ;;  %2763 = vmatpush.msra.mxu2 %v4009_v36 }
 0x731   : > { %2704 = vmatpush.msrb.mxu0 %v4010_v62 }
 0x732   : > { %2733 = vmatpush.msrb.mxu1 %v4011_v2  ;;  %2764 = vmatpush.msra.mxu2 %v4012_v55 }
 0x733   : > { %2705 = vmatpush.msrb.mxu0 %v4013_v53 }
 0x734   : > { %3719 = vmatpush.msk.msrb.mxu2 %vm6357_vm3, %v6356_v52  ;;  %2734 = vmatpush.msrb.mxu1 %v4014_v24  ;;  %vm6370_vm3 = vmmov %vm6368_vm1 }
 0x735   : > { %2706 = vmatpush.msrb.mxu0 %v4015_v4 }
 0x736   : > { %2735 = vmatpush.msrb.mxu1 %v4016_v58 }
 0x737   : > { %3704 = vmatpush.msk.msra.mxu0 %vm6359_vm8, %v6358_v30  ;;  %vm6371_vm8 = vmmov %vm6368_vm1 }
 0x738   : > { %3709 = vmatpush.msk.msra.mxu1 %vm6361_vm5, %v6360_v6  ;;  %vm6372_vm5 = vmmov %vm6368_vm1 }
 0x747   : > { %v2344_v17 = vpop.permute.xlu2 %2343 }
 0x75f   : > { %v2348_v44 = vpop.permute.xlu0 %2347 }
 0x76f   : > { %v2551_v61 = vpop.f32.mrf.mxu1 }
 0x770   : > { %v2552_v11 = vadd.f32 %v2551_v61, %v2344_v17 }
 0x777   : > { %v2553_v27 = vpop.f32.mrf.mxu1  ;;  %v2579_v23 = vpop.f32.mrf.mxu2 }
 0x778   : > { %v2580_v63 = vadd.f32 %v2579_v23, %v2344_v17  ;;  %v2554_v1 = vadd.f32 %v2553_v27, %v2348_v44 }
 0x77f   : > { %v2581_v43 = vpop.f32.mrf.mxu2 }
 0x780   : > { %v2582_v8 = vadd.f32 %v2581_v43, %v2348_v44 }
 0x782   : > { %v2565_v21 = vpop.f32.mrf.mxu0  ;;  %v2593_v59 = vpop.f32.mrf.mxu1 }
 0x783   : > { %v6088_v22 = vadd.f32 %v2565_v21, %v2552_v11  ;;  %v6090_v25 = vadd.f32 %v2593_v59, %v2580_v63 }
 0x785   : > { %2678 = vmatmul.f32.vlgmr.msra.gmra.mxu3 %v6088_v22  ;;  %2707 = vmatmul.f32.vlgmr.msrb.gmra.mxu0 %v6090_v25  ;;  %v2654_v35 = vmul.f32 %v6088_v22, %v6088_v22  ;;  %v2655_v0 = vmul.f32 %v6090_v25, %v6090_v25 }
 0x78a   : > { %v2567_v32 = vpop.f32.mrf.mxu0  ;;  %v2595_v14 = vpop.f32.mrf.mxu1 }
 0x78b   : > { %v6094_v19 = vadd.f32 %v2567_v32, %v2554_v1  ;;  %v6096_v31 = vadd.f32 %v2595_v14, %v2582_v8 }
 0x78d   : > { %2681 = vmatmul.f32.gmra.mxu3 %v6094_v19  ;;  %2710 = vmatmul.f32.gmra.mxu0 %v6096_v31  ;;  %v2658_v28 = vmul.f32 %v6094_v19, %v6094_v19  ;;  %v2659_v51 = vmul.f32 %v6096_v31, %v6096_v31 }
 0x791   : > { %v2607_v47 = vpop.f32.mrf.mxu3 }
 0x792   : > { %v2608_v57 = vadd.f32 %v2607_v47, %v2344_v17 }
 0x794   : > { %v2621_v46 = vpop.f32.mrf.mxu0 }
 0x795   : > { %v2635_v34 = vpop.f32.mrf.mxu2  ;;  %v6104_v18 = vadd.f32 %v2621_v46, %v2608_v57  ;;  %2684 = vmatmul.f32.gmra.mxu3 %v2654_v35  ;;  %2713 = vmatmul.f32.gmra.mxu0 %v2655_v0  ;;  %v4017_v57 = vld [vmem:[%s6292_s7] sm:$0xff]  ;;  %v4018_v46 = vld [vmem:[%s6292_s7 + $0x8] sm:$0xff] }
 0x796   : > { %v2636_v5 = vadd.f32 %v2635_v34, %v2344_v17  ;;  %v2649_v13 = vpop.f32.mrf.mxu1  ;;  %v6365_v34 = vrot.slane %v5044_v12, 1 }
 0x797   : > { %2736 = vmatmul.f32.vlgmr.msrb.gmra.mxu1 %v6104_v18  ;;  %v2656_v41 = vmul.f32 %v6104_v18, %v6104_v18 }
 0x798   : > { %v6106_v26 = vadd.f32 %v2649_v13, %v2636_v5  ;;  %v4065_v5 = vmov 4  }
 0x799   : > { %v2609_v29 = vpop.f32.mrf.mxu3  ;;  %3875 = vset.pattern.permute.xlu2 %v4065_v5  ;;  %3876 = vset.pattern.permute.xlu0 %v4065_v5 }
 0x79a   : > { %2765 = vmatmul.f32.vlgmr.msra.gmra.mxu2 %v6106_v26  ;;  %v2610_v60 = vadd.f32 %v2609_v29, %v2348_v44  ;;  %v2657_v33 = vmul.f32 %v6106_v26, %v6106_v26  ;;  %2852 = vperm.xlu0 %3876, %v5824_v45  }
 0x79c   : > { %v2623_v37 = vpop.f32.mrf.mxu0 }
 0x79d   : > { %v2637_v54 = vpop.f32.mrf.mxu2  ;;  %v6114_v9 = vadd.f32 %v2623_v37, %v2610_v60  ;;  %2687 = vmatmul.f32.gmra.mxu3 %v2658_v28  ;;  %2716 = vmatmul.f32.gmra.mxu0 %v2659_v51 }
 0x79e   : > { %v2638_v15 = vadd.f32 %v2637_v54, %v2348_v44  ;;  %v2651_v10 = vpop.f32.mrf.mxu1 }
 0x79f   : > { %2739 = vmatmul.f32.gmra.mxu1 %v6114_v9  ;;  %v2660_v38 = vmul.f32 %v6114_v9, %v6114_v9 }
 0x7a0   : > { %v6116_v48 = vadd.f32 %v2651_v10, %v2638_v15 }
 0x7a2   : > { %2768 = vmatmul.f32.gmra.mxu2 %v6116_v48  ;;  %v2661_v16 = vmul.f32 %v6116_v48, %v6116_v48 }
 0x7a7   : > { %2742 = vmatmul.f32.gmra.mxu1 %v2656_v41 }
 0x7aa   : > { %2771 = vmatmul.f32.gmra.mxu2 %v2657_v33  ;;  %v4066_v33 = vmov 5  }
 0x7ab   : > { %3878 = vset.pattern.permute.xlu0 %v4066_v33 }
 0x7af   : > { %2745 = vmatmul.f32.gmra.mxu1 %v2660_v38 }
 0x7b2   : > { %2774 = vmatmul.f32.gmra.mxu2 %v2661_v16 }
 0x802   : > { %v2708_v3 = vpop.f32.mrf.mxu0 }
 0x808   : > { %v2679_v20 = vpop.f32.mrf.mxu3 }
 0x809   : > { %v2709_v42 = vadd.f32 %v2708_v3, %v2679_v20 }
 0x80a   : > { %v2711_v50 = vpop.f32.mrf.mxu0 }
 0x810   : > { %v2682_v39 = vpop.f32.mrf.mxu3 }
 0x811   : > { %v2712_v7 = vadd.f32 %v2711_v50, %v2682_v39 }
 0x812   : > { %v2714_v4 = vpop.f32.mrf.mxu0 }
 0x814   : > { %v2737_v56 = vpop.f32.mrf.mxu1 }
 0x815   : > { %v2738_v40 = vadd.f32 %v2737_v56, %v2709_v42 }
 0x818   : > { %v2685_v53 = vpop.f32.mrf.mxu3 }
 0x819   : > { %v2715_v23 = vadd.f32 %v2714_v4, %v2685_v53 }
 0x81a   : > { %v2717_v61 = vpop.f32.mrf.mxu0 }
 0x81c   : > { %v2740_v2 = vpop.f32.mrf.mxu1 }
 0x81d   : > { %v2766_v36 = vpop.f32.mrf.mxu2  ;;  %v2741_v55 = vadd.f32 %v2740_v2, %v2712_v7 }
 0x81e   : > { %v2767_v62 = vadd.f32 %v2766_v36, %v2738_v40 }
 0x820   : > { %v2688_v6 = vpop.f32.mrf.mxu3 }
 0x821   : > { %v2718_v17 = vadd.f32 %v2717_v61, %v2688_v6 }
 0x824   : > { %v2743_v58 = vpop.f32.mrf.mxu1 }
 0x825   : > { %v2769_v52 = vpop.f32.mrf.mxu2  ;;  %v2744_v63 = vadd.f32 %v2743_v58, %v2715_v23 }
 0x826   : > { %v2770_v24 = vadd.f32 %v2769_v52, %v2741_v55 }
 0x82c   : > { %v2746_v27 = vpop.f32.mrf.mxu1 }
 0x82d   : > { %v2772_v30 = vpop.f32.mrf.mxu2  ;;  %v2747_v11 = vadd.f32 %v2746_v27, %v2718_v17 }
 0x82e   : > { %v2773_v59 = vadd.f32 %v2772_v30, %v2744_v63 }
 0x835   : > { %v2775_v21 = vpop.f32.mrf.mxu2 }
 0x836   : > { %v2776_v44 = vadd.f32 %v2775_v21, %v2747_v11 }
 0x838   : > { %v3870_v43 = vpack.i.bf16 %v2773_v59, %v2776_v44 }
 0x83a   : > { %3871 = vrot.lane.b32.xlu1 %v3870_v43, %s4060_s20 }
 0x8ac   : > { %v3872_v8 = vpop.permute.xlu1 %3871 }
 0x8ad   : > { %v3874_v1 = vunpack.i.h.bf16 %v3872_v8  ;;  %v3873_v32 = vunpack.i.l.bf16 %v3872_v8 }
 0x8af   : > { %v2787_v14 = vsel %vm6362_vm6, %v2770_v24, %v3873_v32  ;;  %v2786_v47 = vsel %vm6363_vm7, %v2767_v62, %v3874_v1  ;;  %vm6373_vm6 = vmmov %vm6368_vm1 }
 0x8b0   : > { %2802 = vmatpush.msrb.mxu3 %v2787_v14  ;;  %vm6374_vm7 = vmmov %vm6368_vm1 }
 0x8b2   : > { %2803 = vmatpush.msrb.mxu3 %v2786_v47 }
 0x8b3   : > { %3702 = vmatmul.msk.f32.vlgmr.msrb.gmra.mxu3 %vm6364_vm9, %v4017_v57  ;;  %vm6375_vm9 = vmmov %vm6368_vm1 }
 0x8b4   : > { %3714 = vmatpush.msk.msra.mxu3 %vm6366_vm14, %v6365_v34  ;;  %vm6376_vm14 = vmmov %vm6368_vm1 }
 0x8bb   : > { %3703 = vmatmul.msk.f32.gmra.mxu3 %vm6367_vm2, %v4018_v46  ;;  %vm6377_vm2 = vmmov %vm6368_vm1 }
 0x936   : > { %v2805_v13 = vpop.f32.mrf.mxu3 }
 0x937   : > { %v2811_v35 = vmul.f32 0.001953125, %v2805_v13 }
 0x939   : > { %v2813_v0 = vmul.f32 %v2811_v35, %v2811_v35 }
 0x93b   : > { %2817 = vrot.lane.b32.xlu2 %v2813_v0, %s4060_s20 }
 0x93e   : > { %v2808_v29 = vpop.f32.mrf.mxu3 }
 0x93f   : > { %v2812_v12 = vmul.f32 0.001953125, %v2808_v29 }
 0x941   : > { %v2814_v60 = vmul.f32 %v2812_v12, %v2812_v12 }
 0x943   : > { %2819 = vrot.lane.b32.xlu1 %v2814_v60, %s4060_s20  ;;  %2848 = vperm.xlu2 %3875, %v5828_v49  }
 0x94b   : > { %3877 = vset.pattern.permute.xlu2 %v4066_v33 }
 0x94c   : > { %2868 = vperm.xlu2 %3877, %v5828_v49   ;;  %v2853_v49 = vpop.permute.xlu0 %2852 }
 0x954   : > { %2872 = vperm.xlu2 %3877, %v5824_v45  }
 0x995   : > { %v2818_v54 = vpop.permute.xlu2 %2817 }
 0x996   : > { %v2823_v37 = vsub.f32 %v2811_v35, %v2818_v54 }
 0x998   : > { %v2825_v15 = vadd.f32 1e-05, %v2823_v37 }
 0x99a   : > { %3915 = vrsqrt.f32 %v2825_v15  ;;  %vm2833_vm4 = vweird.f32 %v2825_v15 }
 0x99d   : > { %v2849_v3 = vpop.permute.xlu2 %2848 }
 0x9a0   : > { %v3916_v10 = vpop.eup %3915 }
 0x9a1   : > { %v2828_v28 = vmul.f32 %v3916_v10, %v2825_v15  ;;  %vm2834_vm0 = vweird.f32 %v3916_v10 }
 0x9a2   : > { %vm2835_vm12 = vmor %vm2833_vm4, %vm2834_vm0 }
 0x9a3   : > { %v2829_v51 = vmul.f32 %v3916_v10, %v2828_v28  ;;  %vm6378_vm0 = vmmov %vm6368_vm1 }
 0x9a4   : > { %vm6379_vm4 = vmmov %vm6378_vm0 }
 0x9a5   : > { %v2830_v41 = vmul.f32 0.5, %v2829_v51 }
 0x9a6   : > { %v2869_v45 = vpop.permute.xlu2 %2868 }
 0x9a7   : > { %v2831_v38 = vsub.f32 1.5, %v2830_v41 }
 0x9a9   : > { %v2832_v16 = vmul.f32 %v3916_v10, %v2831_v38 }
 0x9ab   : > { %v2836_v20 = vsel %vm2835_vm12, %v3916_v10, %v2832_v16  ;;  %vm6380_vm12 = vmmov %vm6378_vm0 }
 0x9ac   : > { %v2855_v42 = vmul.f32 %v2849_v3, %v2836_v20 }
 0x9ae   : > { %2859 = vrot.lane.b32.xlu1 %v2855_v42, %s4063_s11  ;;  %v2873_v61 = vpop.permute.xlu2 %2872 }
 0x9b5   : > { %v2820_v50 = vpop.permute.xlu1 %2819 }
 0x9b6   : > { %v2824_v39 = vsub.f32 %v2812_v12, %v2820_v50 }
 0x9b8   : > { %v2826_v7 = vadd.f32 1e-05, %v2824_v39 }
 0x9ba   : > { %3917 = vrsqrt.f32 %v2826_v7  ;;  %vm2843_vm13 = vweird.f32 %v2826_v7 }
 0x9c0   : > { %v3918_v56 = vpop.eup %3917 }
 0x9c1   : > { %v2838_v40 = vmul.f32 %v3918_v56, %v2826_v7  ;;  %vm2844_vm11 = vweird.f32 %v3918_v56 }
 0x9c2   : > { %vm2845_vm15 = vmor %vm2843_vm13, %vm2844_vm11 }
 0x9c3   : > { %v2839_v36 = vmul.f32 %v3918_v56, %v2838_v40  ;;  %vm6381_vm11 = vmmov %vm6378_vm0 }
 0x9c4   : > { %vm6382_vm13 = vmmov %vm6378_vm0 }
 0x9c5   : > { %v2840_v62 = vmul.f32 0.5, %v2839_v36 }
 0x9c7   : > { %v2841_v2 = vsub.f32 1.5, %v2840_v62 }
 0x9c9   : > { %v2842_v55 = vmul.f32 %v3918_v56, %v2841_v2 }
 0x9cb   : > { %v2846_v53 = vsel %vm2845_vm15, %v3918_v56, %v2842_v55  ;;  %vm6383_vm15 = vmmov %vm6378_vm0 }
 0x9cc   : > { %v2856_v52 = vmul.f32 %v2853_v49, %v2846_v53 }
 0x9ce   : > { %2861 = vrot.lane.b32.xlu1 %v2856_v52, %s4063_s11 }
 0xa20   : > { %v2860_v24 = vpop.permute.xlu1 %2859 }
 0xa21   : > { %3705 = vmatmul.msk.f32.vlgmr.msra.gmra.mxu0 %vm6368_vm1, %v2860_v24  ;;  %3710 = vmatmul.msk.f32.vlgmr.msra.gmra.mxu1 %vm6369_vm10, %v2860_v24  ;;  %v2865_v4 = vmul.f32 %v2860_v24, %v2811_v35 }
 0xa22   : > { %3715 = vmatmul.msk.f32.vlgmr.msra.gmra.mxu3 %vm6370_vm3, %v2860_v24  ;;  %3720 = vmatmul.msk.f32.vlgmr.msrb.gmra.mxu2 %vm6371_vm8, %v2860_v24 }
 0xa23   : > { %v2875_v58 = vsub.f32 %v2869_v45, %v2865_v4 }
 0xa25   : > { %2879 = vrot.lane.b32.xlu0 %v2875_v58, %s4060_s20 }
 0xa40   : > { %v2862_v30 = vpop.permute.xlu1 %2861 }
 0xa41   : > { %3706 = vmatmul.msk.f32.gmra.mxu0 %vm6372_vm5, %v2862_v30  ;;  %3711 = vmatmul.msk.f32.gmra.mxu1 %vm6373_vm6, %v2862_v30  ;;  %v2866_v6 = vmul.f32 %v2862_v30, %v2812_v12 }
 0xa42   : > { %3716 = vmatmul.msk.f32.gmra.mxu3 %vm6374_vm7, %v2862_v30  ;;  %3721 = vmatmul.msk.f32.gmra.mxu2 %vm6375_vm9, %v2862_v30 }
 0xa43   : > { %v2876_v27 = vsub.f32 %v2873_v61, %v2866_v6 }
 0xa45   : > { %2881 = vrot.lane.b32.xlu1 %v2876_v27, %s4060_s20 }
 0xa97   : > { %v2880_v23 = vpop.permute.xlu0 %2879 }
 0xa98   : > { %2883 = vrot.lane.b32.xlu2 %v2880_v23, %s4063_s11 }
 0xa9e   : > { %v2912_v21 = vpop.f32.mrf.mxu0  ;;  %v2941_v59 = vpop.f32.mrf.mxu1 }
 0xa9f   : > { %v3011_v32 = vmul.f32 %v2912_v21, %v6088_v22  ;;  %v3012_v14 = vmul.f32 %v2941_v59, %v6090_v25 }
 0xaa5   : > { %v2970_v44 = vpop.f32.mrf.mxu3  ;;  %v2999_v43 = vpop.f32.mrf.mxu2 }
 0xaa6   : > { %v3013_v29 = vmul.f32 %v2970_v44, %v6104_v18  ;;  %v3014_v12 = vmul.f32 %v2999_v43, %v6106_v26  ;;  %v4019_v43 = vld [vmem:[%s6293_s8] sm:$0xff] }
 0xab7   : > { %v2882_v17 = vpop.permute.xlu1 %2881 }
 0xab8   : > { %2885 = vrot.lane.b32.xlu0 %v2882_v17, %s4063_s11 }
 0xabe   : > { %v6170_v8 = vpop.f32.mrf.mxu0  ;;  %v6172_v1 = vpop.f32.mrf.mxu1 }
 0xac5   : > { %v6176_v47 = vpop.f32.mrf.mxu3  ;;  %v6178_v57 = vpop.f32.mrf.mxu2 }
 0xaf2   : > { %v2884_v63 = vpop.permute.xlu2 %2883 }
 0xaf3   : > { %3707 = vmatmul.msk.f32.gmra.mxu0 %vm6376_vm14, %v2884_v63  ;;  %3712 = vmatmul.msk.f32.gmra.mxu1 %vm6377_vm2, %v2884_v63 }
 0xaf4   : > { %3717 = vmatmul.msk.f32.gmra.mxu3 %vm6378_vm0, %v2884_v63  ;;  %3722 = vmatmul.msk.f32.gmra.mxu2 %vm6379_vm4, %v2884_v63 }
 0xb2a   : > { %v2886_v11 = vpop.permute.xlu0 %2885 }
 0xb2b   : > { %3708 = vmatmul.msk.f32.gmra.mxu0 %vm6380_vm12, %v2886_v11  ;;  %3713 = vmatmul.msk.f32.gmra.mxu1 %vm6381_vm11, %v2886_v11 }
 0xb2c   : > { %3718 = vmatmul.msk.f32.gmra.mxu3 %vm6382_vm13, %v2886_v11  ;;  %3723 = vmatmul.msk.f32.gmra.mxu2 %vm6383_vm15, %v2886_v11 }
 0xb70   : > { %v2918_v34 = vpop.f32.mrf.mxu0  ;;  %v2947_v46 = vpop.f32.mrf.mxu1 }
 0xb71   : > { %v3019_v5 = vadd.f32 %v3011_v32, %v2918_v34  ;;  %v6180_v13 = vadd.f32 %v3012_v14, %v2947_v46  ;;  %v4020_v46 = vld [vmem:[%s6293_s8 + $0x8] sm:$0xff] }
 0xb73   : > { %v3724_v35 = vmul.f32 -1.442695, %v3019_v5  ;;  %v3725_v0 = vmul.f32 -1.442695, %v6180_v13 }
 0xb75   : > { %3919 = vpow2.f32 %v3724_v35 }
 0xb76   : > { %3921 = vpow2.f32 %v3725_v0 }
 0xb77   : > { %v2976_v22 = vpop.f32.mrf.mxu3  ;;  %v3005_v25 = vpop.f32.mrf.mxu2 }
 0xb78   : > { %v6185_v60 = vadd.f32 %v3013_v29, %v2976_v22  ;;  %v6187_v54 = vadd.f32 %v3014_v12, %v3005_v25 }
 0xb7a   : > { %v3726_v37 = vmul.f32 -1.442695, %v6185_v60  ;;  %v3727_v15 = vmul.f32 -1.442695, %v6187_v54 }
 0xb7b   : > { %v3920_v10 = vpop.eup %3919 }
 0xb7c   : > { %v3922_v28 = vpop.eup %3921  ;;  %v3051_v51 = vadd.f32 1.0, %v3920_v10  ;;  %3923 = vpow2.f32 %v3726_v37 }
 0xb7d   : > { %v3052_v41 = vadd.f32 1.0, %v3922_v28  ;;  %3925 = vpow2.f32 %v3727_v15  ;;  %v4021_v28 = vld [vmem:[%s6293_s8 + $0x10] sm:$0xff] }
 0xb7e   : > { %3927 = vrcp.f32 %v3051_v51  ;;  %v3068_v39 = vand.u32 2147483647, %v3051_v51  ;;  %v3070_v7 = vand.u32 2147483648, %v3051_v51  ;;  %vm3064_vm3 = vweird.f32 %v3051_v51 }
 0xb7f   : > { %3929 = vrcp.f32 %v3052_v41  ;;  %v3083_v36 = vand.u32 2147483647, %v3052_v41  ;;  %v3085_v62 = vand.u32 2147483648, %v3052_v41  ;;  %vm3079_vm5 = vweird.f32 %v3052_v41 }
 0xb80   : > { %v3071_v53 = vor.u32 1.1754944e-38, %v3070_v7  ;;  %vm3069_vm6 = vcmp.eq.f32.partialorder %v3068_v39, 8.507059e+37  ;;  %v3018_v39 = vmul.f32 %v6178_v57, %v6116_v48 }
 0xb81   : > { %vm3084_vm9 = vcmp.eq.f32.partialorder %v3083_v36, 8.507059e+37  ;;  %v3086_v58 = vor.u32 1.1754944e-38, %v3085_v62 }
 0xb82   : > { %v3924_v18 = vpop.eup %3923 }
 0xb83   : > { %v3926_v26 = vpop.eup %3925  ;;  %v3053_v33 = vadd.f32 1.0, %v3924_v18  ;;  %v4022_v18 = vld [vmem:[%s6293_s8 + $0x18] sm:$0xff] }
 0xb84   : > { %v3928_v38 = vpop.eup %3927  ;;  %v6191_v16 = vadd.f32 1.0, %v3926_v26 }
 0xb85   : > { %v3930_v3 = vpop.eup %3929  ;;  %v3060_v20 = vmul.f32 %v3928_v38, %v3051_v51  ;;  %3931 = vrcp.f32 %v3053_v33  ;;  %vm3065_vm1 = vweird.f32 %v3928_v38  ;;  %v3098_v63 = vand.u32 2147483647, %v3053_v33 }
 0xb86   : > { %v3075_v42 = vmul.f32 %v3930_v3, %v3052_v41  ;;  %3933 = vrcp.f32 %v6191_v16  ;;  %vm3080_vm10 = vweird.f32 %v3930_v3  ;;  %vm3066_vm8 = vmor %vm3064_vm3, %vm3065_vm1  ;;  %v3100_v11 = vand.u32 2147483648, %v3053_v33 }
 0xb87   : > { %v3061_v50 = vsub.f32 1.0, %v3060_v20  ;;  %vm3081_vm7 = vmor %vm3079_vm5, %vm3080_vm10  ;;  %vm3094_vm2 = vweird.f32 %v3053_v33  ;;  %v3113_v14 = vand.u32 2147483647, %v6191_v16  ;;  %v3115_v34 = vand.u32 2147483648, %v6191_v16 }
 0xb88   : > { %v3076_v56 = vsub.f32 1.0, %v3075_v42  ;;  %v3101_v0 = vor.u32 1.1754944e-38, %v3100_v11  ;;  %vm3099_vm12 = vcmp.eq.f32.partialorder %v3098_v63, 8.507059e+37  ;;  %vm3109_vm11 = vweird.f32 %v6191_v16 }
 0xb89   : > { %v3062_v40 = vmul.f32 %v3928_v38, %v3061_v50  ;;  %v3116_v25 = vor.u32 1.1754944e-38, %v3115_v34  ;;  %vm3114_vm15 = vcmp.eq.f32.partialorder %v3113_v14, 8.507059e+37  ;;  %v3017_v50 = vmul.f32 %v6176_v47, %v6114_v9 }
 0xb8a   : > { %v3077_v2 = vmul.f32 %v3930_v3, %v3076_v56 }
 0xb8b   : > { %v3932_v49 = vpop.eup %3931  ;;  %v3063_v55 = vadd.f32 %v3928_v38, %v3062_v40 }
 0xb8c   : > { %v3078_v52 = vadd.f32 %v3930_v3, %v3077_v2  ;;  %v3090_v24 = vmul.f32 %v3932_v49, %v3053_v33  ;;  %v3934_v45 = vpop.eup %3933  ;;  %vm3095_vm14 = vweird.f32 %v3932_v49  ;;  %v3016_v33 = vmul.f32 %v6172_v1, %v6096_v31 }
 0xb8d   : > { %v3067_v4 = vsel %vm3066_vm8, %v3928_v38, %v3063_v55  ;;  %v3105_v27 = vmul.f32 %v3934_v45, %v6191_v16  ;;  %vm3110_vm0 = vweird.f32 %v3934_v45  ;;  %vm3096_vm4 = vmor %vm3094_vm2, %vm3095_vm14 }
 0xb8e   : > { %v3072_v30 = vsel %vm3069_vm6, %v3071_v53, %v3067_v4  ;;  %v3082_v6 = vsel %vm3081_vm7, %v3930_v3, %v3078_v52  ;;  %v3091_v61 = vsub.f32 1.0, %v3090_v24  ;;  %vm3111_vm13 = vmor %vm3109_vm11, %vm3110_vm0 }
 0xb8f   : > { %v3179_v23 = vmul.f32 %v3072_v30, %v3019_v5  ;;  %v3087_v17 = vsel %vm3084_vm9, %v3086_v58, %v3082_v6  ;;  %v3106_v44 = vsub.f32 1.0, %v3105_v27 }
 0xb90   : > { %v3180_v21 = vmul.f32 %v3087_v17, %v6180_v13  ;;  %v3092_v59 = vmul.f32 %v3932_v49, %v3091_v61 }
 0xb91   : > { %v3187_v32 = vadd.f32 %v4019_v43, %v3179_v23  ;;  %v3107_v13 = vmul.f32 %v3934_v45, %v3106_v44 }
 0xb92   : > { %v3188_v5 = vadd.f32 %v4020_v46, %v3180_v21  ;;  %v3093_v35 = vadd.f32 %v3932_v49, %v3092_v59 }
 0xb93   : > { %3195 = vst [vmem:[%s6293_s8] sm:$0xff] %v3187_v32  ;;  %v3108_v12 = vadd.f32 %v3934_v45, %v3107_v13 }
 0xb94   : > { %3196 = vst [vmem:[%s6293_s8 + $0x8] sm:$0xff] %v3188_v5  ;;  %v3097_v29 = vsel %vm3096_vm4, %v3932_v49, %v3093_v35 }
 0xb95   : > { %v3102_v22 = vsel %vm3099_vm12, %v3101_v0, %v3097_v29  ;;  %v3112_v15 = vsel %vm3111_vm13, %v3934_v45, %v3108_v12 }
 0xb96   : > { %v3181_v37 = vmul.f32 %v3102_v22, %v6185_v60  ;;  %v3117_v10 = vsel %vm3114_vm15, %v3116_v25, %v3112_v15  ;;  %v3015_v60 = vmul.f32 %v6170_v8, %v6094_v19  ;;  %v4023_v25 = vld [vmem:[%s6293_s8 + $0x20] sm:$0xff] }
 0xb97   : > { %v3182_v41 = vmul.f32 %v3117_v10, %v6187_v54 }
 0xb98   : > { %v3189_v51 = vadd.f32 %v4021_v28, %v3181_v37  ;;  %v4024_v28 = vld [vmem:[%s6293_s8 + $0x28] sm:$0xff] }
 0xb99   : > { %v3190_v26 = vadd.f32 %v4022_v18, %v3182_v41 }
 0xb9a   : > { %3197 = vst [vmem:[%s6293_s8 + $0x10] sm:$0xff] %v3189_v51 }
 0xb9b   : > { %3198 = vst [vmem:[%s6293_s8 + $0x18] sm:$0xff] %v3190_v26 }
 0xba8   : > { %v2921_v54 = vpop.f32.mrf.mxu0  ;;  %v2950_v38 = vpop.f32.mrf.mxu1 }
 0xba9   : > { %v3023_v16 = vadd.f32 %v3015_v60, %v2921_v54  ;;  %v6229_v3 = vadd.f32 %v3016_v33, %v2950_v38 }
 0xbab   : > { %v3728_v20 = vmul.f32 -1.442695, %v3023_v16  ;;  %v3729_v42 = vmul.f32 -1.442695, %v6229_v3 }
 0xbad   : > { %3935 = vpow2.f32 %v3728_v20 }
 0xbae   : > { %3937 = vpow2.f32 %v3729_v42  ;;  %v4025_v42 = vld [vmem:[%s6293_s8 + $0x30] sm:$0xff] }
 0xbaf   : > { %v2979_v19 = vpop.f32.mrf.mxu3  ;;  %v3008_v8 = vpop.f32.mrf.mxu2 }
 0xbb0   : > { %v6236_v7 = vadd.f32 %v3017_v50, %v2979_v19  ;;  %v6238_v31 = vadd.f32 %v3018_v39, %v3008_v8  ;;  %v4026_v19 = vld [vmem:[%s6293_s8 + $0x38] sm:$0xff] }
 0xbb2   : > { %v3730_v1 = vmul.f32 -1.442695, %v6236_v7  ;;  %v3731_v56 = vmul.f32 -1.442695, %v6238_v31 }
 0xbb3   : > { %v3936_v40 = vpop.eup %3935 }
 0xbb4   : > { %v3938_v36 = vpop.eup %3937  ;;  %v3055_v62 = vadd.f32 1.0, %v3936_v40  ;;  %3939 = vpow2.f32 %v3730_v1 }
 0xbb5   : > { %v3056_v2 = vadd.f32 1.0, %v3938_v36  ;;  %3941 = vpow2.f32 %v3731_v56 }
 0xbb6   : > { %3943 = vrcp.f32 %v3055_v62  ;;  %v3128_v45 = vand.u32 2147483647, %v3055_v62  ;;  %v3130_v4 = vand.u32 2147483648, %v3055_v62  ;;  %vm3124_vm3 = vweird.f32 %v3055_v62 }
 0xbb7   : > { %3945 = vrcp.f32 %v3056_v2  ;;  %v3143_v6 = vand.u32 2147483647, %v3056_v2  ;;  %v3145_v61 = vand.u32 2147483648, %v3056_v2  ;;  %vm3139_vm5 = vweird.f32 %v3056_v2 }
 0xbb8   : > { %v3131_v63 = vor.u32 1.1754944e-38, %v3130_v4  ;;  %vm3129_vm6 = vcmp.eq.f32.partialorder %v3128_v45, 8.507059e+37 }
 0xbb9   : > { %vm3144_vm9 = vcmp.eq.f32.partialorder %v3143_v6, 8.507059e+37  ;;  %v3146_v43 = vor.u32 1.1754944e-38, %v3145_v61 }
 0xbba   : > { %v3940_v9 = vpop.eup %3939 }
 0xbbb   : > { %v3942_v48 = vpop.eup %3941  ;;  %v3057_v47 = vadd.f32 1.0, %v3940_v9 }
 0xbbc   : > { %v3944_v57 = vpop.eup %3943  ;;  %v6242_v49 = vadd.f32 1.0, %v3942_v48 }
 0xbbd   : > { %v3946_v55 = vpop.eup %3945  ;;  %v3120_v53 = vmul.f32 %v3944_v57, %v3055_v62  ;;  %3947 = vrcp.f32 %v3057_v47  ;;  %vm3125_vm1 = vweird.f32 %v3944_v57  ;;  %v3158_v13 = vand.u32 2147483647, %v3057_v47 }
 0xbbe   : > { %v3135_v52 = vmul.f32 %v3946_v55, %v3056_v2  ;;  %3949 = vrcp.f32 %v6242_v49  ;;  %vm3140_vm10 = vweird.f32 %v3946_v55  ;;  %vm3126_vm8 = vmor %vm3124_vm3, %vm3125_vm1  ;;  %v3160_v0 = vand.u32 2147483648, %v3057_v47 }
 0xbbf   : > { %v3121_v24 = vsub.f32 1.0, %v3120_v53  ;;  %vm3141_vm7 = vmor %vm3139_vm5, %vm3140_vm10  ;;  %vm3154_vm2 = vweird.f32 %v3057_v47  ;;  %v3173_v15 = vand.u32 2147483647, %v6242_v49  ;;  %v3175_v10 = vand.u32 2147483648, %v6242_v49 }
 0xbc0   : > { %v3136_v58 = vsub.f32 1.0, %v3135_v52  ;;  %v3161_v26 = vor.u32 1.1754944e-38, %v3160_v0  ;;  %vm3159_vm12 = vcmp.eq.f32.partialorder %v3158_v13, 8.507059e+37  ;;  %vm3169_vm11 = vweird.f32 %v6242_v49 }
 0xbc1   : > { %v3122_v30 = vmul.f32 %v3944_v57, %v3121_v24  ;;  %v3176_v38 = vor.u32 1.1754944e-38, %v3175_v10  ;;  %vm3174_vm15 = vcmp.eq.f32.partialorder %v3173_v15, 8.507059e+37 }
 0xbc2   : > { %v3137_v27 = vmul.f32 %v3946_v55, %v3136_v58 }
 0xbc3   : > { %v3948_v23 = vpop.eup %3947  ;;  %v3123_v17 = vadd.f32 %v3944_v57, %v3122_v30 }
 0xbc4   : > { %v3138_v11 = vadd.f32 %v3946_v55, %v3137_v27  ;;  %v3150_v21 = vmul.f32 %v3948_v23, %v3057_v47  ;;  %v3950_v59 = vpop.eup %3949  ;;  %vm3155_vm14 = vweird.f32 %v3948_v23 }
 0xbc5   : > { %v3127_v44 = vsel %vm3126_vm8, %v3944_v57, %v3123_v17  ;;  %v3165_v46 = vmul.f32 %v3950_v59, %v6242_v49  ;;  %vm3170_vm0 = vweird.f32 %v3950_v59  ;;  %vm3156_vm4 = vmor %vm3154_vm2, %vm3155_vm14 }
 0xbc6   : > { %v3132_v32 = vsel %vm3129_vm6, %v3131_v63, %v3127_v44  ;;  %v3142_v14 = vsel %vm3141_vm7, %v3946_v55, %v3138_v11  ;;  %v3151_v34 = vsub.f32 1.0, %v3150_v21  ;;  %vm3171_vm13 = vmor %vm3169_vm11, %vm3170_vm0 }
 0xbc7   : > { %v3183_v5 = vmul.f32 %v3132_v32, %v3023_v16  ;;  %v3147_v35 = vsel %vm3144_vm9, %v3146_v43, %v3142_v14  ;;  %v3166_v22 = vsub.f32 1.0, %v3165_v46 }
 0xbc8   : > { %v3184_v29 = vmul.f32 %v3147_v35, %v6229_v3  ;;  %v3152_v12 = vmul.f32 %v3948_v23, %v3151_v34 }
 0xbc9   : > { %v3191_v37 = vadd.f32 %v4023_v25, %v3183_v5  ;;  %v3167_v18 = vmul.f32 %v3950_v59, %v3166_v22 }
 0xbca   : > { %v3192_v51 = vadd.f32 %v4024_v28, %v3184_v29  ;;  %v3153_v41 = vadd.f32 %v3948_v23, %v3152_v12 }
 0xbcb   : > { %3199 = vst [vmem:[%s6293_s8 + $0x20] sm:$0xff] %v3191_v37  ;;  %v3168_v33 = vadd.f32 %v3950_v59, %v3167_v18 }
 0xbcc   : > { %3200 = vst [vmem:[%s6293_s8 + $0x28] sm:$0xff] %v3192_v51  ;;  %v3157_v60 = vsel %vm3156_vm4, %v3948_v23, %v3153_v41 }
 0xbcd   : > { %v3162_v54 = vsel %vm3159_vm12, %v3161_v26, %v3157_v60  ;;  %v3172_v3 = vsel %vm3171_vm13, %v3950_v59, %v3168_v33 }
 0xbce   : > { %v3185_v16 = vmul.f32 %v3162_v54, %v6236_v7  ;;  %v3177_v20 = vsel %vm3174_vm15, %v3176_v38, %v3172_v3 }
 0xbcf   : > { %v3186_v39 = vmul.f32 %v3177_v20, %v6238_v31 }
 0xbd0   : > { %v3193_v50 = vadd.f32 %v4025_v42, %v3185_v16 }
 0xbd1   : > { %v3194_v8 = vadd.f32 %v4026_v19, %v3186_v39 }
 0xbd2   : > { %3201 = vst [vmem:[%s6293_s8 + $0x30] sm:$0xff] %v3193_v50 }
 0xbd3   : > { %3202 = vst [vmem:[%s6293_s8 + $0x38] sm:$0xff] %v3194_v8 }
 0xbd4 PF: > { %s18_s29 = sadd.s32 1, %s4049_s29   ;;  %s6384_s27 = smov %s4045_s28 }
 0xbd5   : > { %p15_p6 = scmp.ge.s32.totalorder %s18_s29, 4   ;;  %s6385_s28 = smov %s6387_s30 }
 0xbd7   :  { %17 = sbr.rel (!%p15_p6) target bundleno = 2 (0x2), region = 105 }

</bundles_post_ra>
